<compile_context>
chip_gen: v7x
topology: tpu7x:2x2x1
jax: 0.10.0
libtpu: 0.0.40
codegen_flags: <defaults>
</compile_context>

<pallas_src>
import jax
import jax.numpy as jnp
from jax import lax
from jax.experimental import pallas as pl
from jax.experimental.pallas import tpu as pltpu

# ----------------------------- model constants ------------------------------
DENSE_FEATURES = 512
FIRST_IN_CHANNELS = 3
FIRST_OUT_CHANNELS = 32
SECOND_OUT_CHANNELS = 64
THIRD_OUT_CHANNELS = 128
KERNEL_SIZE = 3
PADDING = 1
POOL_STRIDE = 2
N_CLASSES = 2
BN_EPS = 1e-5
FC2_PAD = 128                    # pad fc2 output to 128 lanes for a lane-dense store

# Small, forward-consistent example shapes (image_size is a ctor arg of CustomCNN).
BATCH = 2
IMAGE_SIZE = 16                  # 16 // 2**3 = 2 -> fc1 in = 128*2*2 = 512
H1 = IMAGE_SIZE
H2 = H1 // POOL_STRIDE
H3 = H2 // POOL_STRIDE
FSIZE = H3 // POOL_STRIDE        # final feature-map side (2)
FC1_IN = THIRD_OUT_CHANNELS * FSIZE * FSIZE


# ------------------------------ fused Pallas kernel --------------------------
def fused_cnn_kernel(x_ref,
                     w1_ref, s1_ref, t1_ref,
                     w2_ref, s2_ref, t2_ref,
                     w3_ref, s3_ref, t3_ref,
                     fw1_ref, fb1_ref, fw2_ref, fb2_ref,
                     out_ref,
                     xpad1, act1, xpad2, act2, xpad3, act3):
    """One image per grid step: 3 fused conv+BN+ReLU+pool stages + fc1+ReLU+fc2."""

    def zero_border(xpad_ref):
        # Zero only the 1-px padding frame; the interior is fully overwritten below.
        Hp, Wp, C = xpad_ref.shape
        zrow = jnp.zeros((1, Wp, C), xpad_ref.dtype)
        zcol = jnp.zeros((Hp, 1, C), xpad_ref.dtype)
        xpad_ref[pl.ds(0, 1), :, :] = zrow
        xpad_ref[pl.ds(Hp - 1, 1), :, :] = zrow
        xpad_ref[:, pl.ds(0, 1), :] = zcol
        xpad_ref[:, pl.ds(Wp - 1, 1), :] = zcol

    def conv_bn_relu(xpad_ref, act_ref, w_ref, scale_ref, shift_ref):
        """3x3 same-pad conv via in-kernel im2col (9 shifted VMEM windows) + folded BN + ReLU."""
        H, W, Cout = act_ref.shape
        Cin = xpad_ref.shape[2]
        taps = [xpad_ref[pl.ds(dy, H), pl.ds(dx, W), :]
                for dy in range(KERNEL_SIZE) for dx in range(KERNEL_SIZE)]
        patches = jnp.concatenate(taps, axis=-1).astype(jnp.bfloat16)   # (H, W, 9*Cin)
        # Row-batched bf16 MXU matmul with f32 accumulation (see header for why not flat).
        w_b = jnp.broadcast_to(w_ref[...], (H, KERNEL_SIZE * KERNEL_SIZE * Cin, Cout))
        acc = lax.dot_general(patches, w_b,
                              dimension_numbers=(((2,), (1,)), ((0,), (0,))),
                              preferred_element_type=jnp.float32)       # (H, W, Cout) f32
        # Folded BatchNorm(eval) + conv bias as per-channel affine, then ReLU (f32 epilogue,
        # v5e-safe: no bf16 VPU ops needed).
        act_ref[...] = jnp.maximum(acc * scale_ref[...] + shift_ref[...], 0.0)

    def pool2x2_into_next_pad(act_ref, dst_pad_ref):
        """2x2 max-pool via four strided VMEM views, written straight into the next
        stage's padded-image interior (never leaves VMEM)."""
        Ho, Wo = act_ref.shape[0] // POOL_STRIDE, act_ref.shape[1] // POOL_STRIDE
        a = act_ref[pl.ds(0, Ho, stride=2), pl.ds(0, Wo, stride=2), :]
        b = act_ref[pl.ds(0, Ho, stride=2), pl.ds(1, Wo, stride=2), :]
        c = act_ref[pl.ds(1, Ho, stride=2), pl.ds(0, Wo, stride=2), :]
        d = act_ref[pl.ds(1, Ho, stride=2), pl.ds(1, Wo, stride=2), :]
        dst_pad_ref[pl.ds(PADDING, Ho), pl.ds(PADDING, Wo), :] = jnp.maximum(
            jnp.maximum(a, b), jnp.maximum(c, d))

    zero_border(xpad1)
    zero_border(xpad2)
    zero_border(xpad3)

    # ---- stage 1 ----
    xpad1[pl.ds(PADDING, H1), pl.ds(PADDING, H1), :] = x_ref[0]
    conv_bn_relu(xpad1, act1, w1_ref, s1_ref, t1_ref)
    pool2x2_into_next_pad(act1, xpad2)
    # ---- stage 2 ----
    conv_bn_relu(xpad2, act2, w2_ref, s2_ref, t2_ref)
    pool2x2_into_next_pad(act2, xpad3)
    # ---- stage 3 ----
    conv_bn_relu(xpad3, act3, w3_ref, s3_ref, t3_ref)

    # pool3 + NHWC flatten fused: max over each 2x2 window -> (1, C) vector, lane-concat the
    # FSIZE*FSIZE vectors in (h, w) order (fc1_w rows were pre-permuted to match).
    def pooled_vec(ph, pw):
        v = act3[pl.ds(POOL_STRIDE * ph, POOL_STRIDE),
                 pl.ds(POOL_STRIDE * pw, POOL_STRIDE), :]               # (2, 2, C) f32
        return jnp.max(jnp.max(v, axis=1), axis=0, keepdims=True)       # (1, C)

    flat = jnp.concatenate([pooled_vec(ph, pw)
                            for ph in range(FSIZE) for pw in range(FSIZE)],
                           axis=-1)                                      # (1, FC1_IN)

    # ---- fused MLP: fc1 + ReLU + (dropout = identity in eval) + fc2 ----
    h = jnp.dot(flat.astype(jnp.bfloat16), fw1_ref[...],
                preferred_element_type=jnp.float32)
    h = jnp.maximum(h + fb1_ref[...], 0.0)
    # TODO(synk): nn.Dropout(0.5) is stochastic in train mode; identity here (eval mode).
    logits = jnp.dot(h.astype(jnp.bfloat16), fw2_ref[...],
                     preferred_element_type=jnp.float32) + fb2_ref[...]
    out_ref[0] = logits                                                  # (1, FC2_PAD) lane-dense


# ------------------------------ pallas_call wrapper ---------------------------
def fused_cnn_call(x_nhwc, prep):
    N = x_nhwc.shape[0]
    return pl.pallas_call(
        fused_cnn_kernel,
        out_shape=jax.ShapeDtypeStruct((N, 1, FC2_PAD), jnp.float32),
        grid_spec=pltpu.PrefetchScalarGridSpec(
            num_scalar_prefetch=0,
            grid=(N,),
            in_specs=[
                pl.BlockSpec((1, H1, H1, FIRST_IN_CHANNELS), lambda n: (n, 0, 0, 0)),
                pl.BlockSpec((KERNEL_SIZE**2 * FIRST_IN_CHANNELS, FIRST_OUT_CHANNELS),
                             lambda n: (0, 0)),
                pl.BlockSpec((1, FIRST_OUT_CHANNELS), lambda n: (0, 0)),
                pl.BlockSpec((1, FIRST_OUT_CHANNELS), lambda n: (0, 0)),
                pl.BlockSpec((KERNEL_SIZE**2 * FIRST_OUT_CHANNELS, SECOND_OUT_CHANNELS),
                             lambda n: (0, 0)),
                pl.BlockSpec((1, SECOND_OUT_CHANNELS), lambda n: (0, 0)),
                pl.BlockSpec((1, SECOND_OUT_CHANNELS), lambda n: (0, 0)),
                pl.BlockSpec((KERNEL_SIZE**2 * SECOND_OUT_CHANNELS, THIRD_OUT_CHANNELS),
                             lambda n: (0, 0)),
                pl.BlockSpec((1, THIRD_OUT_CHANNELS), lambda n: (0, 0)),
                pl.BlockSpec((1, THIRD_OUT_CHANNELS), lambda n: (0, 0)),
                pl.BlockSpec((FC1_IN, DENSE_FEATURES), lambda n: (0, 0)),
                pl.BlockSpec((1, DENSE_FEATURES), lambda n: (0, 0)),
                pl.BlockSpec((DENSE_FEATURES, FC2_PAD), lambda n: (0, 0)),
                pl.BlockSpec((1, FC2_PAD), lambda n: (0, 0)),
            ],
            out_specs=pl.BlockSpec((1, 1, FC2_PAD), lambda n: (n, 0, 0)),
            scratch_shapes=[
                pltpu.VMEM((H1 + 2 * PADDING, H1 + 2 * PADDING, FIRST_IN_CHANNELS), jnp.float32),
                pltpu.VMEM((H1, H1, FIRST_OUT_CHANNELS), jnp.float32),
                pltpu.VMEM((H2 + 2 * PADDING, H2 + 2 * PADDING, FIRST_OUT_CHANNELS), jnp.float32),
                pltpu.VMEM((H2, H2, SECOND_OUT_CHANNELS), jnp.float32),
                pltpu.VMEM((H3 + 2 * PADDING, H3 + 2 * PADDING, SECOND_OUT_CHANNELS), jnp.float32),
                pltpu.VMEM((H3, H3, THIRD_OUT_CHANNELS), jnp.float32),
            ],
        ),
        compiler_params=pltpu.CompilerParams(dimension_semantics=("parallel",)),
    )(x_nhwc,
      prep["conv1_wmat"], prep["conv1_scale"], prep["conv1_shift"],
      prep["conv2_wmat"], prep["conv2_scale"], prep["conv2_shift"],
      prep["conv3_wmat"], prep["conv3_scale"], prep["conv3_shift"],
      prep["fc1_w"], prep["fc1_b"], prep["fc2_w"], prep["fc2_b"])


# ------------------------------ parameters ------------------------------------
def init_params(key):
    ks = jax.random.split(key, 16)
    chans = [(FIRST_IN_CHANNELS, FIRST_OUT_CHANNELS),
             (FIRST_OUT_CHANNELS, SECOND_OUT_CHANNELS),
             (SECOND_OUT_CHANNELS, THIRD_OUT_CHANNELS)]
    params = {}
    for i, (cin, cout) in enumerate(chans):
        k0, k1, k2, k3 = jax.random.split(ks[i], 4)
        params[f"conv{i+1}_w"] = 0.05 * jax.random.normal(
            k0, (KERNEL_SIZE, KERNEL_SIZE, cin, cout), jnp.float32)      # HWIO
        params[f"conv{i+1}_b"] = 0.01 * jax.random.normal(k1, (cout,), jnp.float32)
        params[f"bn{i+1}_gamma"] = 1.0 + 0.1 * jax.random.normal(k2, (cout,), jnp.float32)
        params[f"bn{i+1}_beta"] = 0.1 * jax.random.normal(k3, (cout,), jnp.float32)
        params[f"bn{i+1}_mean"] = 0.05 * jax.random.normal(ks[8 + i], (cout,), jnp.float32)
        params[f"bn{i+1}_var"] = 1.0 + 0.1 * jax.random.uniform(ks[11 + i], (cout,), jnp.float32)

    # fc1_w rows follow the torch NCHW flatten order (c, h, w); permuted at prep time.
    params["fc1_w"] = 0.02 * jax.random.normal(ks[4], (FC1_IN, DENSE_FEATURES), jnp.float32)
    params["fc1_b"] = 0.01 * jax.random.normal(ks[5], (DENSE_FEATURES,), jnp.float32)
    params["fc2_w"] = 0.02 * jax.random.normal(ks[6], (DENSE_FEATURES, N_CLASSES), jnp.float32)
    params["fc2_b"] = 0.01 * jax.random.normal(ks[7], (N_CLASSES,), jnp.float32)
    return params


def prepare_params(params):
    """One-time prep: fold BN into scale/shift, reshape conv weights to matmul form,
    cast MXU operands to bf16, permute fc1 rows to NHWC flatten order, pad fc2 to 128 lanes."""
    prep = {}
    for i in (1, 2, 3):
        w = params[f"conv{i}_w"]                             # (3, 3, Cin, Cout) HWIO
        cout = w.shape[-1]
        scale = params[f"bn{i}_gamma"] / jnp.sqrt(params[f"bn{i}_var"] + BN_EPS)
        shift = params[f"bn{i}_beta"] + (params[f"conv{i}_b"] - params[f"bn{i}_mean"]) * scale
        prep[f"conv{i}_wmat"] = w.reshape(-1, cout).astype(jnp.bfloat16)     # (9*Cin, Cout)
        prep[f"conv{i}_scale"] = scale.reshape(1, cout).astype(jnp.float32)
        prep[f"conv{i}_shift"] = shift.reshape(1, cout).astype(jnp.float32)

    # Permute fc1 rows from torch flatten order (c, h, w) -> NHWC flatten order (h, w, c),
    # so the kernel's lane-concat flatten needs no transpose.
    C = THIRD_OUT_CHANNELS
    w1 = params["fc1_w"].reshape(C, FSIZE, FSIZE, DENSE_FEATURES)
    w1 = jnp.transpose(w1, (1, 2, 0, 3)).reshape(FC1_IN, DENSE_FEATURES)
    prep["fc1_w"] = w1.astype(jnp.bfloat16)
    prep["fc1_b"] = params["fc1_b"].reshape(1, DENSE_FEATURES).astype(jnp.float32)

    pad = FC2_PAD - N_CLASSES
    prep["fc2_w"] = jnp.pad(params["fc2_w"], ((0, 0), (0, pad))).astype(jnp.bfloat16)
    prep["fc2_b"] = jnp.pad(params["fc2_b"], (0, pad)).reshape(1, FC2_PAD).astype(jnp.float32)
    return prep


# ------------------------------ forward pass -----------------------------------
@jax.jit
def custom_cnn_forward(x_nchw, prep):
    x = jnp.transpose(x_nchw, (0, 2, 3, 1))        # NCHW -> NHWC once at the boundary
    out = fused_cnn_call(x, prep)                  # (N, 1, FC2_PAD)
    return out[:, 0, :N_CLASSES]                   # drop fc2 lane padding


if __name__ == "__main__":
    key = jax.random.PRNGKey(0)
    kx, kp = jax.random.split(key)
    x = jax.random.normal(kx, (BATCH, FIRST_IN_CHANNELS, IMAGE_SIZE, IMAGE_SIZE), jnp.float32)
    params = init_params(kp)
    prep = prepare_params(params)

    logits = custom_cnn_forward(x, prep)
    jax.block_until_ready(logits)

    assert logits.shape == (BATCH, N_CLASSES) and logits.dtype == jnp.float32
    assert bool(jnp.all(jnp.isfinite(logits)))
    print("KERNEL_OK")
</pallas_src>

<mosaic_0001>
module attributes {stable_mosaic.version = 11 : i64} {
  func.func @fused_cnn_kernel(%arg0: i32, %arg1: memref<1x16x16x3xf32, #tpu.memory_space<vmem>>, %arg2: memref<27x32xbf16, #tpu.memory_space<vmem>>, %arg3: memref<1x32xf32, #tpu.memory_space<vmem>>, %arg4: memref<1x32xf32, #tpu.memory_space<vmem>>, %arg5: memref<288x64xbf16, #tpu.memory_space<vmem>>, %arg6: memref<1x64xf32, #tpu.memory_space<vmem>>, %arg7: memref<1x64xf32, #tpu.memory_space<vmem>>, %arg8: memref<576x128xbf16, #tpu.memory_space<vmem>>, %arg9: memref<1x128xf32, #tpu.memory_space<vmem>>, %arg10: memref<1x128xf32, #tpu.memory_space<vmem>>, %arg11: memref<512x512xbf16, #tpu.memory_space<vmem>>, %arg12: memref<1x512xf32, #tpu.memory_space<vmem>>, %arg13: memref<512x128xbf16, #tpu.memory_space<vmem>>, %arg14: memref<1x128xf32, #tpu.memory_space<vmem>>, %arg15: memref<1x1x128xf32, #tpu.memory_space<vmem>>, %arg16: memref<18x18x3xf32, #tpu.memory_space<vmem>>, %arg17: memref<16x16x32xf32, #tpu.memory_space<vmem>>, %arg18: memref<10x10x32xf32, #tpu.memory_space<vmem>>, %arg19: memref<8x8x64xf32, #tpu.memory_space<vmem>>, %arg20: memref<6x6x64xf32, #tpu.memory_space<vmem>>, %arg21: memref<4x4x128xf32, #tpu.memory_space<vmem>>) attributes {dimension_semantics = [#tpu.dimension_semantics<parallel>], iteration_bounds = array<i64: 2>, scalar_prefetch = 0 : i64, scratch_operands = 6 : i64, tpu.core_type = #tpu.core_type<tc>, window_params = [{transform_indices = @transform_0, window_bounds = array<i64: 1, 16, 16, 3>}, {pipeline_mode = #tpu.pipeline_mode<synchronous>, transform_indices = @transform_1, window_bounds = array<i64: 27, 32>}, {pipeline_mode = #tpu.pipeline_mode<synchronous>, transform_indices = @transform_2, window_bounds = array<i64: 1, 32>}, {pipeline_mode = #tpu.pipeline_mode<synchronous>, transform_indices = @transform_3, window_bounds = array<i64: 1, 32>}, {pipeline_mode = #tpu.pipeline_mode<synchronous>, transform_indices = @transform_4, window_bounds = array<i64: 288, 64>}, {pipeline_mode = #tpu.pipeline_mode<synchronous>, transform_indices = @transform_5, window_bounds = array<i64: 1, 64>}, {pipeline_mode = #tpu.pipeline_mode<synchronous>, transform_indices = @transform_6, window_bounds = array<i64: 1, 64>}, {pipeline_mode = #tpu.pipeline_mode<synchronous>, transform_indices = @transform_7, window_bounds = array<i64: 576, 128>}, {pipeline_mode = #tpu.pipeline_mode<synchronous>, transform_indices = @transform_8, window_bounds = array<i64: 1, 128>}, {pipeline_mode = #tpu.pipeline_mode<synchronous>, transform_indices = @transform_9, window_bounds = array<i64: 1, 128>}, {pipeline_mode = #tpu.pipeline_mode<synchronous>, transform_indices = @transform_10, window_bounds = array<i64: 512, 512>}, {pipeline_mode = #tpu.pipeline_mode<synchronous>, transform_indices = @transform_11, window_bounds = array<i64: 1, 512>}, {pipeline_mode = #tpu.pipeline_mode<synchronous>, transform_indices = @transform_12, window_bounds = array<i64: 512, 128>}, {pipeline_mode = #tpu.pipeline_mode<synchronous>, transform_indices = @transform_13, window_bounds = array<i64: 1, 128>}, {transform_indices = @transform_14, window_bounds = array<i64: 1, 1, 128>}]} {
    %cst = arith.constant 0.000000e+00 : f32
    %0 = vector.broadcast %cst : f32 to vector<1x18x3xf32>
    %cst_0 = arith.constant 0.000000e+00 : f32
    %1 = vector.broadcast %cst_0 : f32 to vector<18x1x3xf32>
    %c0 = arith.constant 0 : index
    %c0_1 = arith.constant 0 : index
    %c0_2 = arith.constant 0 : index
    %2 = vector.load %arg16[%c0, %c0_1, %c0_2] : memref<18x18x3xf32, #tpu.memory_space<vmem>>, vector<1x18x3xf32>
    tpu.vector_store %arg16[%c0, %c0_1, %c0_2], %0 {strides = array<i32>} : memref<18x18x3xf32, #tpu.memory_space<vmem>>, vector<1x18x3xf32>,
    %c17 = arith.constant 17 : index
    %c0_3 = arith.constant 0 : index
    %c0_4 = arith.constant 0 : index
    %3 = vector.load %arg16[%c17, %c0_3, %c0_4] : memref<18x18x3xf32, #tpu.memory_space<vmem>>, vector<1x18x3xf32>
    tpu.vector_store %arg16[%c17, %c0_3, %c0_4], %0 {strides = array<i32>} : memref<18x18x3xf32, #tpu.memory_space<vmem>>, vector<1x18x3xf32>,
    %c0_5 = arith.constant 0 : index
    %c0_6 = arith.constant 0 : index
    %c0_7 = arith.constant 0 : index
    %4 = vector.load %arg16[%c0_5, %c0_6, %c0_7] : memref<18x18x3xf32, #tpu.memory_space<vmem>>, vector<18x1x3xf32>
    tpu.vector_store %arg16[%c0_5, %c0_6, %c0_7], %1 {strides = array<i32>} : memref<18x18x3xf32, #tpu.memory_space<vmem>>, vector<18x1x3xf32>,
    %c0_8 = arith.constant 0 : index
    %c17_9 = arith.constant 17 : index
    %c0_10 = arith.constant 0 : index
    %5 = vector.load %arg16[%c0_8, %c17_9, %c0_10] : memref<18x18x3xf32, #tpu.memory_space<vmem>>, vector<18x1x3xf32>
    tpu.vector_store %arg16[%c0_8, %c17_9, %c0_10], %1 {strides = array<i32>} : memref<18x18x3xf32, #tpu.memory_space<vmem>>, vector<18x1x3xf32>,
    %cst_11 = arith.constant 0.000000e+00 : f32
    %6 = vector.broadcast %cst_11 : f32 to vector<1x10x32xf32>
    %cst_12 = arith.constant 0.000000e+00 : f32
    %7 = vector.broadcast %cst_12 : f32 to vector<10x1x32xf32>
    %c0_13 = arith.constant 0 : index
    %c0_14 = arith.constant 0 : index
    %c0_15 = arith.constant 0 : index
    %8 = vector.load %arg18[%c0_13, %c0_14, %c0_15] : memref<10x10x32xf32, #tpu.memory_space<vmem>>, vector<1x10x32xf32>
    tpu.vector_store %arg18[%c0_13, %c0_14, %c0_15], %6 {strides = array<i32>} : memref<10x10x32xf32, #tpu.memory_space<vmem>>, vector<1x10x32xf32>,
    %c9 = arith.constant 9 : index
    %c0_16 = arith.constant 0 : index
    %c0_17 = arith.constant 0 : index
    %9 = vector.load %arg18[%c9, %c0_16, %c0_17] : memref<10x10x32xf32, #tpu.memory_space<vmem>>, vector<1x10x32xf32>
    tpu.vector_store %arg18[%c9, %c0_16, %c0_17], %6 {strides = array<i32>} : memref<10x10x32xf32, #tpu.memory_space<vmem>>, vector<1x10x32xf32>,
    %c0_18 = arith.constant 0 : index
    %c0_19 = arith.constant 0 : index
    %c0_20 = arith.constant 0 : index
    %10 = vector.load %arg18[%c0_18, %c0_19, %c0_20] : memref<10x10x32xf32, #tpu.memory_space<vmem>>, vector<10x1x32xf32>
    tpu.vector_store %arg18[%c0_18, %c0_19, %c0_20], %7 {strides = array<i32>} : memref<10x10x32xf32, #tpu.memory_space<vmem>>, vector<10x1x32xf32>,
    %c0_21 = arith.constant 0 : index
    %c9_22 = arith.constant 9 : index
    %c0_23 = arith.constant 0 : index
    %11 = vector.load %arg18[%c0_21, %c9_22, %c0_23] : memref<10x10x32xf32, #tpu.memory_space<vmem>>, vector<10x1x32xf32>
    tpu.vector_store %arg18[%c0_21, %c9_22, %c0_23], %7 {strides = array<i32>} : memref<10x10x32xf32, #tpu.memory_space<vmem>>, vector<10x1x32xf32>,
    %cst_24 = arith.constant 0.000000e+00 : f32
    %12 = vector.broadcast %cst_24 : f32 to vector<1x6x64xf32>
    %cst_25 = arith.constant 0.000000e+00 : f32
    %13 = vector.broadcast %cst_25 : f32 to vector<6x1x64xf32>
    %c0_26 = arith.constant 0 : index
    %c0_27 = arith.constant 0 : index
    %c0_28 = arith.constant 0 : index
    %14 = vector.load %arg20[%c0_26, %c0_27, %c0_28] : memref<6x6x64xf32, #tpu.memory_space<vmem>>, vector<1x6x64xf32>
    tpu.vector_store %arg20[%c0_26, %c0_27, %c0_28], %12 {strides = array<i32>} : memref<6x6x64xf32, #tpu.memory_space<vmem>>, vector<1x6x64xf32>,
    %c5 = arith.constant 5 : index
    %c0_29 = arith.constant 0 : index
    %c0_30 = arith.constant 0 : index
    %15 = vector.load %arg20[%c5, %c0_29, %c0_30] : memref<6x6x64xf32, #tpu.memory_space<vmem>>, vector<1x6x64xf32>
    tpu.vector_store %arg20[%c5, %c0_29, %c0_30], %12 {strides = array<i32>} : memref<6x6x64xf32, #tpu.memory_space<vmem>>, vector<1x6x64xf32>,
    %c0_31 = arith.constant 0 : index
    %c0_32 = arith.constant 0 : index
    %c0_33 = arith.constant 0 : index
    %16 = vector.load %arg20[%c0_31, %c0_32, %c0_33] : memref<6x6x64xf32, #tpu.memory_space<vmem>>, vector<6x1x64xf32>
    tpu.vector_store %arg20[%c0_31, %c0_32, %c0_33], %13 {strides = array<i32>} : memref<6x6x64xf32, #tpu.memory_space<vmem>>, vector<6x1x64xf32>,
    %c0_34 = arith.constant 0 : index
    %c5_35 = arith.constant 5 : index
    %c0_36 = arith.constant 0 : index
    %17 = vector.load %arg20[%c0_34, %c5_35, %c0_36] : memref<6x6x64xf32, #tpu.memory_space<vmem>>, vector<6x1x64xf32>
    tpu.vector_store %arg20[%c0_34, %c5_35, %c0_36], %13 {strides = array<i32>} : memref<6x6x64xf32, #tpu.memory_space<vmem>>, vector<6x1x64xf32>,
    %c0_37 = arith.constant 0 : index
    %c0_38 = arith.constant 0 : index
    %c0_39 = arith.constant 0 : index
    %c0_40 = arith.constant 0 : index
    %18 = vector.load %arg1[%c0_37, %c0_38, %c0_39, %c0_40] : memref<1x16x16x3xf32, #tpu.memory_space<vmem>>, vector<1x16x16x3xf32>
    %19 = vector.shape_cast %18 : vector<1x16x16x3xf32> to vector<16x16x3xf32>
    %c1 = arith.constant 1 : index
    %c1_41 = arith.constant 1 : index
    %c0_42 = arith.constant 0 : index
    %20 = vector.load %arg16[%c1, %c1_41, %c0_42] : memref<18x18x3xf32, #tpu.memory_space<vmem>>, vector<16x16x3xf32>
    tpu.vector_store %arg16[%c1, %c1_41, %c0_42], %19 {strides = array<i32>} : memref<18x18x3xf32, #tpu.memory_space<vmem>>, vector<16x16x3xf32>,
    %c0_43 = arith.constant 0 : index
    %c0_44 = arith.constant 0 : index
    %c0_45 = arith.constant 0 : index
    %21 = vector.load %arg16[%c0_43, %c0_44, %c0_45] : memref<18x18x3xf32, #tpu.memory_space<vmem>>, vector<16x16x3xf32>
    %c0_46 = arith.constant 0 : index
    %c1_47 = arith.constant 1 : index
    %c0_48 = arith.constant 0 : index
    %22 = vector.load %arg16[%c0_46, %c1_47, %c0_48] : memref<18x18x3xf32, #tpu.memory_space<vmem>>, vector<16x16x3xf32>
    %c0_49 = arith.constant 0 : index
    %c2 = arith.constant 2 : index
    %c0_50 = arith.constant 0 : index
    %23 = vector.load %arg16[%c0_49, %c2, %c0_50] : memref<18x18x3xf32, #tpu.memory_space<vmem>>, vector<16x16x3xf32>
    %c1_51 = arith.constant 1 : index
    %c0_52 = arith.constant 0 : index
    %c0_53 = arith.constant 0 : index
    %24 = vector.load %arg16[%c1_51, %c0_52, %c0_53] : memref<18x18x3xf32, #tpu.memory_space<vmem>>, vector<16x16x3xf32>
    %c1_54 = arith.constant 1 : index
    %c1_55 = arith.constant 1 : index
    %c0_56 = arith.constant 0 : index
    %25 = vector.load %arg16[%c1_54, %c1_55, %c0_56] : memref<18x18x3xf32, #tpu.memory_space<vmem>>, vector<16x16x3xf32>
    %c1_57 = arith.constant 1 : index
    %c2_58 = arith.constant 2 : index
    %c0_59 = arith.constant 0 : index
    %26 = vector.load %arg16[%c1_57, %c2_58, %c0_59] : memref<18x18x3xf32, #tpu.memory_space<vmem>>, vector<16x16x3xf32>
    %c2_60 = arith.constant 2 : index
    %c0_61 = arith.constant 0 : index
    %c0_62 = arith.constant 0 : index
    %27 = vector.load %arg16[%c2_60, %c0_61, %c0_62] : memref<18x18x3xf32, #tpu.memory_space<vmem>>, vector<16x16x3xf32>
    %c2_63 = arith.constant 2 : index
    %c1_64 = arith.constant 1 : index
    %c0_65 = arith.constant 0 : index
    %28 = vector.load %arg16[%c2_63, %c1_64, %c0_65] : memref<18x18x3xf32, #tpu.memory_space<vmem>>, vector<16x16x3xf32>
    %c2_66 = arith.constant 2 : index
    %c2_67 = arith.constant 2 : index
    %c0_68 = arith.constant 0 : index
    %29 = vector.load %arg16[%c2_66, %c2_67, %c0_68] : memref<18x18x3xf32, #tpu.memory_space<vmem>>, vector<16x16x3xf32>
    %30 = tpu.concatenate %21, %22, %23, %24, %25, %26, %27, %28, %29 in 2 : vector<16x16x3xf32>, vector<16x16x3xf32>, vector<16x16x3xf32>, vector<16x16x3xf32>, vector<16x16x3xf32>, vector<16x16x3xf32>, vector<16x16x3xf32>, vector<16x16x3xf32>, vector<16x16x3xf32> -> vector<16x16x27xf32>
    %31 = arith.truncf %30 : vector<16x16x27xf32> to vector<16x16x27xbf16>
    %c0_69 = arith.constant 0 : index
    %c0_70 = arith.constant 0 : index
    %32 = vector.load %arg2[%c0_69, %c0_70] : memref<27x32xbf16, #tpu.memory_space<vmem>>, vector<27x32xbf16>
    %33 = vector.shape_cast %32 : vector<27x32xbf16> to vector<1x27x32xbf16>
    %34 = vector.broadcast %33 : vector<1x27x32xbf16> to vector<16x27x32xbf16>
    %cst_71 = arith.constant dense<0.000000e+00> : vector<16x16x32xf32>
    %35 = tpu.matmul %31, %34, %cst_71 {dimension_numbers = #tpu.dot_dimension_numbers<[2], [1], [1], [2], [0, 0, 0, 1, 1, 2], [0], [0]>} : vector<16x16x27xbf16>, vector<16x27x32xbf16>, vector<16x16x32xf32> -> vector<16x16x32xf32>
    %c0_72 = arith.constant 0 : index
    %c0_73 = arith.constant 0 : index
    %36 = vector.load %arg3[%c0_72, %c0_73] : memref<1x32xf32, #tpu.memory_space<vmem>>, vector<1x32xf32>
    %37 = vector.shape_cast %36 : vector<1x32xf32> to vector<1x1x32xf32>
    %38 = vector.broadcast %37 : vector<1x1x32xf32> to vector<16x16x32xf32>
    %39 = arith.mulf %35, %38 : vector<16x16x32xf32>
    %c0_74 = arith.constant 0 : index
    %c0_75 = arith.constant 0 : index
    %40 = vector.load %arg4[%c0_74, %c0_75] : memref<1x32xf32, #tpu.memory_space<vmem>>, vector<1x32xf32>
    %41 = vector.shape_cast %40 : vector<1x32xf32> to vector<1x1x32xf32>
    %42 = vector.broadcast %41 : vector<1x1x32xf32> to vector<16x16x32xf32>
    %43 = arith.addf %39, %42 : vector<16x16x32xf32>
    %cst_76 = arith.constant 0.000000e+00 : f32
    %44 = vector.broadcast %cst_76 : f32 to vector<16x16x32xf32>
    %45 = arith.maximumf %43, %44 : vector<16x16x32xf32>
    %c0_77 = arith.constant 0 : index
    %c0_78 = arith.constant 0 : index
    %c0_79 = arith.constant 0 : index
    %46 = vector.load %arg17[%c0_77, %c0_78, %c0_79] : memref<16x16x32xf32, #tpu.memory_space<vmem>>, vector<16x16x32xf32>
    tpu.vector_store %arg17[%c0_77, %c0_78, %c0_79], %45 {strides = array<i32>} : memref<16x16x32xf32, #tpu.memory_space<vmem>>, vector<16x16x32xf32>,
    %c0_80 = arith.constant 0 : index
    %c0_81 = arith.constant 0 : index
    %c0_82 = arith.constant 0 : index
    %47 = tpu.strided_load %arg17[%c0_80, %c0_81, %c0_82] {strides = array<i32: 2, 2, 1>} : memref<16x16x32xf32, #tpu.memory_space<vmem>>, vector<8x8x32xf32>
    %c0_83 = arith.constant 0 : index
    %c1_84 = arith.constant 1 : index
    %c0_85 = arith.constant 0 : index
    %48 = tpu.strided_load %arg17[%c0_83, %c1_84, %c0_85] {strides = array<i32: 2, 2, 1>} : memref<16x16x32xf32, #tpu.memory_space<vmem>>, vector<8x8x32xf32>
    %c1_86 = arith.constant 1 : index
    %c0_87 = arith.constant 0 : index
    %c0_88 = arith.constant 0 : index
    %49 = tpu.strided_load %arg17[%c1_86, %c0_87, %c0_88] {strides = array<i32: 2, 2, 1>} : memref<16x16x32xf32, #tpu.memory_space<vmem>>, vector<8x8x32xf32>
    %c1_89 = arith.constant 1 : index
    %c1_90 = arith.constant 1 : index
    %c0_91 = arith.constant 0 : index
    %50 = tpu.strided_load %arg17[%c1_89, %c1_90, %c0_91] {strides = array<i32: 2, 2, 1>} : memref<16x16x32xf32, #tpu.memory_space<vmem>>, vector<8x8x32xf32>
    %51 = arith.maximumf %47, %48 : vector<8x8x32xf32>
    %52 = arith.maximumf %49, %50 : vector<8x8x32xf32>
    %53 = arith.maximumf %51, %52 : vector<8x8x32xf32>
    %c1_92 = arith.constant 1 : index
    %c1_93 = arith.constant 1 : index
    %c0_94 = arith.constant 0 : index
    %54 = vector.load %arg18[%c1_92, %c1_93, %c0_94] : memref<10x10x32xf32, #tpu.memory_space<vmem>>, vector<8x8x32xf32>
    tpu.vector_store %arg18[%c1_92, %c1_93, %c0_94], %53 {strides = array<i32>} : memref<10x10x32xf32, #tpu.memory_space<vmem>>, vector<8x8x32xf32>,
    %c0_95 = arith.constant 0 : index
    %c0_96 = arith.constant 0 : index
    %c0_97 = arith.constant 0 : index
    %55 = vector.load %arg18[%c0_95, %c0_96, %c0_97] : memref<10x10x32xf32, #tpu.memory_space<vmem>>, vector<8x8x32xf32>
    %c0_98 = arith.constant 0 : index
    %c1_99 = arith.constant 1 : index
    %c0_100 = arith.constant 0 : index
    %56 = vector.load %arg18[%c0_98, %c1_99, %c0_100] : memref<10x10x32xf32, #tpu.memory_space<vmem>>, vector<8x8x32xf32>
    %c0_101 = arith.constant 0 : index
    %c2_102 = arith.constant 2 : index
    %c0_103 = arith.constant 0 : index
    %57 = vector.load %arg18[%c0_101, %c2_102, %c0_103] : memref<10x10x32xf32, #tpu.memory_space<vmem>>, vector<8x8x32xf32>
    %c1_104 = arith.constant 1 : index
    %c0_105 = arith.constant 0 : index
    %c0_106 = arith.constant 0 : index
    %58 = vector.load %arg18[%c1_104, %c0_105, %c0_106] : memref<10x10x32xf32, #tpu.memory_space<vmem>>, vector<8x8x32xf32>
    %c1_107 = arith.constant 1 : index
    %c1_108 = arith.constant 1 : index
    %c0_109 = arith.constant 0 : index
    %59 = vector.load %arg18[%c1_107, %c1_108, %c0_109] : memref<10x10x32xf32, #tpu.memory_space<vmem>>, vector<8x8x32xf32>
    %c1_110 = arith.constant 1 : index
    %c2_111 = arith.constant 2 : index
    %c0_112 = arith.constant 0 : index
    %60 = vector.load %arg18[%c1_110, %c2_111, %c0_112] : memref<10x10x32xf32, #tpu.memory_space<vmem>>, vector<8x8x32xf32>
    %c2_113 = arith.constant 2 : index
    %c0_114 = arith.constant 0 : index
    %c0_115 = arith.constant 0 : index
    %61 = vector.load %arg18[%c2_113, %c0_114, %c0_115] : memref<10x10x32xf32, #tpu.memory_space<vmem>>, vector<8x8x32xf32>
    %c2_116 = arith.constant 2 : index
    %c1_117 = arith.constant 1 : index
    %c0_118 = arith.constant 0 : index
    %62 = vector.load %arg18[%c2_116, %c1_117, %c0_118] : memref<10x10x32xf32, #tpu.memory_space<vmem>>, vector<8x8x32xf32>
    %c2_119 = arith.constant 2 : index
    %c2_120 = arith.constant 2 : index
    %c0_121 = arith.constant 0 : index
    %63 = vector.load %arg18[%c2_119, %c2_120, %c0_121] : memref<10x10x32xf32, #tpu.memory_space<vmem>>, vector<8x8x32xf32>
    %64 = tpu.concatenate %55, %56, %57, %58, %59, %60, %61, %62, %63 in 2 : vector<8x8x32xf32>, vector<8x8x32xf32>, vector<8x8x32xf32>, vector<8x8x32xf32>, vector<8x8x32xf32>, vector<8x8x32xf32>, vector<8x8x32xf32>, vector<8x8x32xf32>, vector<8x8x32xf32> -> vector<8x8x288xf32>
    %65 = arith.truncf %64 : vector<8x8x288xf32> to vector<8x8x288xbf16>
    %c0_122 = arith.constant 0 : index
    %c0_123 = arith.constant 0 : index
    %66 = vector.load %arg5[%c0_122, %c0_123] : memref<288x64xbf16, #tpu.memory_space<vmem>>, vector<288x64xbf16>
    %67 = vector.shape_cast %66 : vector<288x64xbf16> to vector<1x288x64xbf16>
    %68 = vector.broadcast %67 : vector<1x288x64xbf16> to vector<8x288x64xbf16>
    %cst_124 = arith.constant dense<0.000000e+00> : vector<8x8x64xf32>
    %69 = tpu.matmul %65, %68, %cst_124 {dimension_numbers = #tpu.dot_dimension_numbers<[2], [1], [1], [2], [0, 0, 0, 1, 1, 2], [0], [0]>} : vector<8x8x288xbf16>, vector<8x288x64xbf16>, vector<8x8x64xf32> -> vector<8x8x64xf32>
    %c0_125 = arith.constant 0 : index
    %c0_126 = arith.constant 0 : index
    %70 = vector.load %arg6[%c0_125, %c0_126] : memref<1x64xf32, #tpu.memory_space<vmem>>, vector<1x64xf32>
    %71 = vector.shape_cast %70 : vector<1x64xf32> to vector<1x1x64xf32>
    %72 = vector.broadcast %71 : vector<1x1x64xf32> to vector<8x8x64xf32>
    %73 = arith.mulf %69, %72 : vector<8x8x64xf32>
    %c0_127 = arith.constant 0 : index
    %c0_128 = arith.constant 0 : index
    %74 = vector.load %arg7[%c0_127, %c0_128] : memref<1x64xf32, #tpu.memory_space<vmem>>, vector<1x64xf32>
    %75 = vector.shape_cast %74 : vector<1x64xf32> to vector<1x1x64xf32>
    %76 = vector.broadcast %75 : vector<1x1x64xf32> to vector<8x8x64xf32>
    %77 = arith.addf %73, %76 : vector<8x8x64xf32>
    %cst_129 = arith.constant 0.000000e+00 : f32
    %78 = vector.broadcast %cst_129 : f32 to vector<8x8x64xf32>
    %79 = arith.maximumf %77, %78 : vector<8x8x64xf32>
    %c0_130 = arith.constant 0 : index
    %c0_131 = arith.constant 0 : index
    %c0_132 = arith.constant 0 : index
    %80 = vector.load %arg19[%c0_130, %c0_131, %c0_132] : memref<8x8x64xf32, #tpu.memory_space<vmem>>, vector<8x8x64xf32>
    tpu.vector_store %arg19[%c0_130, %c0_131, %c0_132], %79 {strides = array<i32>} : memref<8x8x64xf32, #tpu.memory_space<vmem>>, vector<8x8x64xf32>,
    %c0_133 = arith.constant 0 : index
    %c0_134 = arith.constant 0 : index
    %c0_135 = arith.constant 0 : index
    %81 = tpu.strided_load %arg19[%c0_133, %c0_134, %c0_135] {strides = array<i32: 2, 2, 1>} : memref<8x8x64xf32, #tpu.memory_space<vmem>>, vector<4x4x64xf32>
    %c0_136 = arith.constant 0 : index
    %c1_137 = arith.constant 1 : index
    %c0_138 = arith.constant 0 : index
    %82 = tpu.strided_load %arg19[%c0_136, %c1_137, %c0_138] {strides = array<i32: 2, 2, 1>} : memref<8x8x64xf32, #tpu.memory_space<vmem>>, vector<4x4x64xf32>
    %c1_139 = arith.constant 1 : index
    %c0_140 = arith.constant 0 : index
    %c0_141 = arith.constant 0 : index
    %83 = tpu.strided_load %arg19[%c1_139, %c0_140, %c0_141] {strides = array<i32: 2, 2, 1>} : memref<8x8x64xf32, #tpu.memory_space<vmem>>, vector<4x4x64xf32>
    %c1_142 = arith.constant 1 : index
    %c1_143 = arith.constant 1 : index
    %c0_144 = arith.constant 0 : index
    %84 = tpu.strided_load %arg19[%c1_142, %c1_143, %c0_144] {strides = array<i32: 2, 2, 1>} : memref<8x8x64xf32, #tpu.memory_space<vmem>>, vector<4x4x64xf32>
    %85 = arith.maximumf %81, %82 : vector<4x4x64xf32>
    %86 = arith.maximumf %83, %84 : vector<4x4x64xf32>
    %87 = arith.maximumf %85, %86 : vector<4x4x64xf32>
    %c1_145 = arith.constant 1 : index
    %c1_146 = arith.constant 1 : index
    %c0_147 = arith.constant 0 : index
    %88 = vector.load %arg20[%c1_145, %c1_146, %c0_147] : memref<6x6x64xf32, #tpu.memory_space<vmem>>, vector<4x4x64xf32>
    tpu.vector_store %arg20[%c1_145, %c1_146, %c0_147], %87 {strides = array<i32>} : memref<6x6x64xf32, #tpu.memory_space<vmem>>, vector<4x4x64xf32>,
    %c0_148 = arith.constant 0 : index
    %c0_149 = arith.constant 0 : index
    %c0_150 = arith.constant 0 : index
    %89 = vector.load %arg20[%c0_148, %c0_149, %c0_150] : memref<6x6x64xf32, #tpu.memory_space<vmem>>, vector<4x4x64xf32>
    %c0_151 = arith.constant 0 : index
    %c1_152 = arith.constant 1 : index
    %c0_153 = arith.constant 0 : index
    %90 = vector.load %arg20[%c0_151, %c1_152, %c0_153] : memref<6x6x64xf32, #tpu.memory_space<vmem>>, vector<4x4x64xf32>
    %c0_154 = arith.constant 0 : index
    %c2_155 = arith.constant 2 : index
    %c0_156 = arith.constant 0 : index
    %91 = vector.load %arg20[%c0_154, %c2_155, %c0_156] : memref<6x6x64xf32, #tpu.memory_space<vmem>>, vector<4x4x64xf32>
    %c1_157 = arith.constant 1 : index
    %c0_158 = arith.constant 0 : index
    %c0_159 = arith.constant 0 : index
    %92 = vector.load %arg20[%c1_157, %c0_158, %c0_159] : memref<6x6x64xf32, #tpu.memory_space<vmem>>, vector<4x4x64xf32>
    %c1_160 = arith.constant 1 : index
    %c1_161 = arith.constant 1 : index
    %c0_162 = arith.constant 0 : index
    %93 = vector.load %arg20[%c1_160, %c1_161, %c0_162] : memref<6x6x64xf32, #tpu.memory_space<vmem>>, vector<4x4x64xf32>
    %c1_163 = arith.constant 1 : index
    %c2_164 = arith.constant 2 : index
    %c0_165 = arith.constant 0 : index
    %94 = vector.load %arg20[%c1_163, %c2_164, %c0_165] : memref<6x6x64xf32, #tpu.memory_space<vmem>>, vector<4x4x64xf32>
    %c2_166 = arith.constant 2 : index
    %c0_167 = arith.constant 0 : index
    %c0_168 = arith.constant 0 : index
    %95 = vector.load %arg20[%c2_166, %c0_167, %c0_168] : memref<6x6x64xf32, #tpu.memory_space<vmem>>, vector<4x4x64xf32>
    %c2_169 = arith.constant 2 : index
    %c1_170 = arith.constant 1 : index
    %c0_171 = arith.constant 0 : index
    %96 = vector.load %arg20[%c2_169, %c1_170, %c0_171] : memref<6x6x64xf32, #tpu.memory_space<vmem>>, vector<4x4x64xf32>
    %c2_172 = arith.constant 2 : index
    %c2_173 = arith.constant 2 : index
    %c0_174 = arith.constant 0 : index
    %97 = vector.load %arg20[%c2_172, %c2_173, %c0_174] : memref<6x6x64xf32, #tpu.memory_space<vmem>>, vector<4x4x64xf32>
    %98 = tpu.concatenate %89, %90, %91, %92, %93, %94, %95, %96, %97 in 2 : vector<4x4x64xf32>, vector<4x4x64xf32>, vector<4x4x64xf32>, vector<4x4x64xf32>, vector<4x4x64xf32>, vector<4x4x64xf32>, vector<4x4x64xf32>, vector<4x4x64xf32>, vector<4x4x64xf32> -> vector<4x4x576xf32>
    %99 = arith.truncf %98 : vector<4x4x576xf32> to vector<4x4x576xbf16>
    %c0_175 = arith.constant 0 : index
    %c0_176 = arith.constant 0 : index
    %100 = vector.load %arg8[%c0_175, %c0_176] : memref<576x128xbf16, #tpu.memory_space<vmem>>, vector<576x128xbf16>
    %101 = vector.shape_cast %100 : vector<576x128xbf16> to vector<1x576x128xbf16>
    %102 = vector.broadcast %101 : vector<1x576x128xbf16> to vector<4x576x128xbf16>
    %cst_177 = arith.constant dense<0.000000e+00> : vector<4x4x128xf32>
    %103 = tpu.matmul %99, %102, %cst_177 {dimension_numbers = #tpu.dot_dimension_numbers<[2], [1], [1], [2], [0, 0, 0, 1, 1, 2], [0], [0]>} : vector<4x4x576xbf16>, vector<4x576x128xbf16>, vector<4x4x128xf32> -> vector<4x4x128xf32>
    %c0_178 = arith.constant 0 : index
    %c0_179 = arith.constant 0 : index
    %104 = vector.load %arg9[%c0_178, %c0_179] : memref<1x128xf32, #tpu.memory_space<vmem>>, vector<1x128xf32>
    %105 = vector.shape_cast %104 : vector<1x128xf32> to vector<1x1x128xf32>
    %106 = vector.broadcast %105 : vector<1x1x128xf32> to vector<4x4x128xf32>
    %107 = arith.mulf %103, %106 : vector<4x4x128xf32>
    %c0_180 = arith.constant 0 : index
    %c0_181 = arith.constant 0 : index
    %108 = vector.load %arg10[%c0_180, %c0_181] : memref<1x128xf32, #tpu.memory_space<vmem>>, vector<1x128xf32>
    %109 = vector.shape_cast %108 : vector<1x128xf32> to vector<1x1x128xf32>
    %110 = vector.broadcast %109 : vector<1x1x128xf32> to vector<4x4x128xf32>
    %111 = arith.addf %107, %110 : vector<4x4x128xf32>
    %cst_182 = arith.constant 0.000000e+00 : f32
    %112 = vector.broadcast %cst_182 : f32 to vector<4x4x128xf32>
    %113 = arith.maximumf %111, %112 : vector<4x4x128xf32>
    %c0_183 = arith.constant 0 : index
    %c0_184 = arith.constant 0 : index
    %c0_185 = arith.constant 0 : index
    %114 = vector.load %arg21[%c0_183, %c0_184, %c0_185] : memref<4x4x128xf32, #tpu.memory_space<vmem>>, vector<4x4x128xf32>
    tpu.vector_store %arg21[%c0_183, %c0_184, %c0_185], %113 {strides = array<i32>} : memref<4x4x128xf32, #tpu.memory_space<vmem>>, vector<4x4x128xf32>,
    %c0_186 = arith.constant 0 : index
    %c0_187 = arith.constant 0 : index
    %c0_188 = arith.constant 0 : index
    %115 = vector.load %arg21[%c0_186, %c0_187, %c0_188] : memref<4x4x128xf32, #tpu.memory_space<vmem>>, vector<2x2x128xf32>
    %cst_189 = arith.constant dense<0xFF800000> : vector<2x128xf32>
    %116 = vector.multi_reduction <maximumf>, %115, %cst_189 [1] : vector<2x2x128xf32> to vector<2x128xf32>
    %cst_190 = arith.constant dense<0xFF800000> : vector<128xf32>
    %117 = vector.multi_reduction <maximumf>, %116, %cst_190 [0] : vector<2x128xf32> to vector<128xf32>
    %118 = vector.shape_cast %117 : vector<128xf32> to vector<1x128xf32>
    %c0_191 = arith.constant 0 : index
    %c2_192 = arith.constant 2 : index
    %c0_193 = arith.constant 0 : index
    %119 = vector.load %arg21[%c0_191, %c2_192, %c0_193] : memref<4x4x128xf32, #tpu.memory_space<vmem>>, vector<2x2x128xf32>
    %cst_194 = arith.constant dense<0xFF800000> : vector<2x128xf32>
    %120 = vector.multi_reduction <maximumf>, %119, %cst_194 [1] : vector<2x2x128xf32> to vector<2x128xf32>
    %cst_195 = arith.constant dense<0xFF800000> : vector<128xf32>
    %121 = vector.multi_reduction <maximumf>, %120, %cst_195 [0] : vector<2x128xf32> to vector<128xf32>
    %122 = vector.shape_cast %121 : vector<128xf32> to vector<1x128xf32>
    %c2_196 = arith.constant 2 : index
    %c0_197 = arith.constant 0 : index
    %c0_198 = arith.constant 0 : index
    %123 = vector.load %arg21[%c2_196, %c0_197, %c0_198] : memref<4x4x128xf32, #tpu.memory_space<vmem>>, vector<2x2x128xf32>
    %cst_199 = arith.constant dense<0xFF800000> : vector<2x128xf32>
    %124 = vector.multi_reduction <maximumf>, %123, %cst_199 [1] : vector<2x2x128xf32> to vector<2x128xf32>
    %cst_200 = arith.constant dense<0xFF800000> : vector<128xf32>
    %125 = vector.multi_reduction <maximumf>, %124, %cst_200 [0] : vector<2x128xf32> to vector<128xf32>
    %126 = vector.shape_cast %125 : vector<128xf32> to vector<1x128xf32>
    %c2_201 = arith.constant 2 : index
    %c2_202 = arith.constant 2 : index
    %c0_203 = arith.constant 0 : index
    %127 = vector.load %arg21[%c2_201, %c2_202, %c0_203] : memref<4x4x128xf32, #tpu.memory_space<vmem>>, vector<2x2x128xf32>
    %cst_204 = arith.constant dense<0xFF800000> : vector<2x128xf32>
    %128 = vector.multi_reduction <maximumf>, %127, %cst_204 [1] : vector<2x2x128xf32> to vector<2x128xf32>
    %cst_205 = arith.constant dense<0xFF800000> : vector<128xf32>
    %129 = vector.multi_reduction <maximumf>, %128, %cst_205 [0] : vector<2x128xf32> to vector<128xf32>
    %130 = vector.shape_cast %129 : vector<128xf32> to vector<1x128xf32>
    %131 = tpu.concatenate %118, %122, %126, %130 in 1 : vector<1x128xf32>, vector<1x128xf32>, vector<1x128xf32>, vector<1x128xf32> -> vector<1x512xf32>
    %132 = arith.truncf %131 : vector<1x512xf32> to vector<1x512xbf16>
    %c0_206 = arith.constant 0 : index
    %c0_207 = arith.constant 0 : index
    %133 = vector.load %arg11[%c0_206, %c0_207] : memref<512x512xbf16, #tpu.memory_space<vmem>>, vector<512x512xbf16>
    %cst_208 = arith.constant dense<0.000000e+00> : vector<1x512xf32>
    %134 = tpu.matmul %132, %133, %cst_208 {dimension_numbers = #tpu.dot_dimension_numbers<[1], [0], [0], [1], [0, 0, 1, 1], [], []>} : vector<1x512xbf16>, vector<512x512xbf16>, vector<1x512xf32> -> vector<1x512xf32>
    %c0_209 = arith.constant 0 : index
    %c0_210 = arith.constant 0 : index
    %135 = vector.load %arg12[%c0_209, %c0_210] : memref<1x512xf32, #tpu.memory_space<vmem>>, vector<1x512xf32>
    %136 = arith.addf %134, %135 : vector<1x512xf32>
    %cst_211 = arith.constant 0.000000e+00 : f32
    %137 = vector.broadcast %cst_211 : f32 to vector<1x512xf32>
    %138 = arith.maximumf %136, %137 : vector<1x512xf32>
    %139 = arith.truncf %138 : vector<1x512xf32> to vector<1x512xbf16>
    %c0_212 = arith.constant 0 : index
    %c0_213 = arith.constant 0 : index
    %140 = vector.load %arg13[%c0_212, %c0_213] : memref<512x128xbf16, #tpu.memory_space<vmem>>, vector<512x128xbf16>
    %cst_214 = arith.constant dense<0.000000e+00> : vector<1x128xf32>
    %141 = tpu.matmul %139, %140, %cst_214 {dimension_numbers = #tpu.dot_dimension_numbers<[1], [0], [0], [1], [0, 0, 1, 1], [], []>} : vector<1x512xbf16>, vector<512x128xbf16>, vector<1x128xf32> -> vector<1x128xf32>
    %c0_215 = arith.constant 0 : index
    %c0_216 = arith.constant 0 : index
    %142 = vector.load %arg14[%c0_215, %c0_216] : memref<1x128xf32, #tpu.memory_space<vmem>>, vector<1x128xf32>
    %143 = arith.addf %141, %142 : vector<1x128xf32>
    %c0_217 = arith.constant 0 : index
    %c0_218 = arith.constant 0 : index
    %c0_219 = arith.constant 0 : index
    %144 = vector.load %arg15[%c0_217, %c0_218, %c0_219] : memref<1x1x128xf32, #tpu.memory_space<vmem>>, vector<1x1x128xf32>
    %145 = vector.shape_cast %144 : vector<1x1x128xf32> to vector<1x128xf32>
    %146 = vector.shape_cast %143 : vector<1x128xf32> to vector<1x1x128xf32>
    tpu.vector_store %arg15[%c0_217, %c0_218, %c0_219], %146 {strides = array<i32>} : memref<1x1x128xf32, #tpu.memory_space<vmem>>, vector<1x1x128xf32>,
    return
  }
  func.func @transform_0(%arg0: i32) -> (i32, i32, i32, i32) {
    %c0_i32 = arith.constant 0 : i32
    %c0_i32_0 = arith.constant 0 : i32
    %c0_i32_1 = arith.constant 0 : i32
    %c0_i32_2 = arith.constant 0 : i32
    return %arg0, %c0_i32, %c0_i32_0, %c0_i32_1 : i32, i32, i32, i32
  }
  func.func @transform_1(%arg0: i32) -> (i32, i32) {
    %c0_i32 = arith.constant 0 : i32
    %c0_i32_0 = arith.constant 0 : i32
    %c0_i32_1 = arith.constant 0 : i32
    return %c0_i32, %c0_i32_0 : i32, i32
  }
  func.func @transform_2(%arg0: i32) -> (i32, i32) {
    %c0_i32 = arith.constant 0 : i32
    %c0_i32_0 = arith.constant 0 : i32
    %c0_i32_1 = arith.constant 0 : i32
    return %c0_i32, %c0_i32_0 : i32, i32
  }
  func.func @transform_3(%arg0: i32) -> (i32, i32) {
    %c0_i32 = arith.constant 0 : i32
    %c0_i32_0 = arith.constant 0 : i32
    %c0_i32_1 = arith.constant 0 : i32
    return %c0_i32, %c0_i32_0 : i32, i32
  }
  func.func @transform_4(%arg0: i32) -> (i32, i32) {
    %c0_i32 = arith.constant 0 : i32
    %c0_i32_0 = arith.constant 0 : i32
    %c0_i32_1 = arith.constant 0 : i32
    return %c0_i32, %c0_i32_0 : i32, i32
  }
  func.func @transform_5(%arg0: i32) -> (i32, i32) {
    %c0_i32 = arith.constant 0 : i32
    %c0_i32_0 = arith.constant 0 : i32
    %c0_i32_1 = arith.constant 0 : i32
    return %c0_i32, %c0_i32_0 : i32, i32
  }
  func.func @transform_6(%arg0: i32) -> (i32, i32) {
    %c0_i32 = arith.constant 0 : i32
    %c0_i32_0 = arith.constant 0 : i32
    %c0_i32_1 = arith.constant 0 : i32
    return %c0_i32, %c0_i32_0 : i32, i32
  }
  func.func @transform_7(%arg0: i32) -> (i32, i32) {
    %c0_i32 = arith.constant 0 : i32
    %c0_i32_0 = arith.constant 0 : i32
    %c0_i32_1 = arith.constant 0 : i32
    return %c0_i32, %c0_i32_0 : i32, i32
  }
  func.func @transform_8(%arg0: i32) -> (i32, i32) {
    %c0_i32 = arith.constant 0 : i32
    %c0_i32_0 = arith.constant 0 : i32
    %c0_i32_1 = arith.constant 0 : i32
    return %c0_i32, %c0_i32_0 : i32, i32
  }
  func.func @transform_9(%arg0: i32) -> (i32, i32) {
    %c0_i32 = arith.constant 0 : i32
    %c0_i32_0 = arith.constant 0 : i32
    %c0_i32_1 = arith.constant 0 : i32
    return %c0_i32, %c0_i32_0 : i32, i32
  }
  func.func @transform_10(%arg0: i32) -> (i32, i32) {
    %c0_i32 = arith.constant 0 : i32
    %c0_i32_0 = arith.constant 0 : i32
    %c0_i32_1 = arith.constant 0 : i32
    return %c0_i32, %c0_i32_0 : i32, i32
  }
  func.func @transform_11(%arg0: i32) -> (i32, i32) {
    %c0_i32 = arith.constant 0 : i32
    %c0_i32_0 = arith.constant 0 : i32
    %c0_i32_1 = arith.constant 0 : i32
    return %c0_i32, %c0_i32_0 : i32, i32
  }
  func.func @transform_12(%arg0: i32) -> (i32, i32) {
    %c0_i32 = arith.constant 0 : i32
    %c0_i32_0 = arith.constant 0 : i32
    %c0_i32_1 = arith.constant 0 : i32
    return %c0_i32, %c0_i32_0 : i32, i32
  }
  func.func @transform_13(%arg0: i32) -> (i32, i32) {
    %c0_i32 = arith.constant 0 : i32
    %c0_i32_0 = arith.constant 0 : i32
    %c0_i32_1 = arith.constant 0 : i32
    return %c0_i32, %c0_i32_0 : i32, i32
  }
  func.func @transform_14(%arg0: i32) -> (i32, i32, i32) {
    %c0_i32 = arith.constant 0 : i32
    %c0_i32_0 = arith.constant 0 : i32
    %c0_i32_1 = arith.constant 0 : i32
    return %arg0, %c0_i32, %c0_i32_0 : i32, i32, i32
  }
}

</mosaic_0001>

<bundles_post_ra>
// kernel: custom_cnn_forward.1
= control target key start
LH: loop header
LB: loop body
LE: loop exit
PB: predicated region body
PF: predicated region fallthrough
CT: control target
= control target key end

     0   :  { %19 = vsyncpa [#allocation9], 0  ;;  %s11468_s0 = inlined_call_operand.vmem [shape: f32[2,16,16,3], index: 0, kind: input, shape index: {}]   ;;  %s11469_s1 = inlined_call_operand.vmem [shape: bf16[27,32], index: 1, kind: input, shape index: {}]   ;;  %s11470_s2 = inlined_call_operand.vmem [shape: f32[1,32], index: 2, kind: input, shape index: {}]   ;;  %s11471_s3 = inlined_call_operand.vmem [shape: f32[1,32], index: 3, kind: input, shape index: {}]   ;;  %s11472_s4 = inlined_call_operand.vmem [shape: bf16[288,64], index: 4, kind: input, shape index: {}]   ;;  %s11473_s5 = inlined_call_operand.vmem [shape: f32[1,64], index: 5, kind: input, shape index: {}]   ;;  %s11474_s6 = inlined_call_operand.vmem [shape: f32[1,64], index: 6, kind: input, shape index: {}]   ;;  %s11475_s7 = inlined_call_operand.vmem [shape: bf16[576,128], index: 7, kind: input, shape index: {}]   ;;  %s11476_s8 = inlined_call_operand.vmem [shape: f32[1,128], index: 8, kind: input, shape index: {}]   ;;  %s11477_s9 = inlined_call_operand.vmem [shape: f32[1,128], index: 9, kind: input, shape index: {}]   ;;  %s11478_s10 = inlined_call_operand.hbm [shape: bf16[512,512], index: 10, kind: input, shape index: {}]   ;;  %s11479_s11 = inlined_call_operand.vmem [shape: f32[1,512], index: 11, kind: input, shape index: {}]   ;;  %s11480_s12 = inlined_call_operand.vmem [shape: bf16[512,128], index: 12, kind: input, shape index: {}]   ;;  %s11481_s13 = inlined_call_operand.vmem [shape: f32[1,128], index: 13, kind: input, shape index: {}]   ;;  %s11482_s14 = inlined_call_operand.hbm [shape: f32[2,1,128], index: 14, kind: output, shape index: {}]  }
   0x1   :  { %20 = vsyncpa [#allocation10], 0 }
   0x2   :  { %22 = vsyncpa [#allocation10 + $0x1], 0  ;;  %s9224_s29 = smov 0   ;;  %s9226_s30 = smov 0  }
   0x3   :  { %s9228_s15 = smov 0   ;;  %s9230_s16 = smov 0  }
   0x4 LB: > { %11490 = sst [smem:[#allocation14_spill]] %s9125_s15  ;;  %s9245_s17 = sadd.s32 4294967295, %s9129_s16   ;;  %s9129_s16 = sphi %s9230_s16, %s11504_s16   ;;  %s9125_s15 = sphi %s9228_s15, %s11506_s15   ;;  %s9121_s30 = sphi %s9226_s30, %s11508_s30   ;;  %s9117_s29 = sphi %s9224_s29, %s11507_s29  }
   0x5   : > { %s6859_s18 = sadd.s32 4294967294, %s9129_s16   ;;  %s9249_s19 = sadd.s32 1, %s9129_s16  }
   0x6   : > { %11491 = sst [smem:[#allocation15_spill]] %s9249_s19  ;;  %s334_s20 = sadd.s32 1, %s9125_s15 }
   0x7   : > { %s331_s21 = ssub.s32 %s9129_s16, %s9249_s19  ;;  %p344_p0 = scmp.ne.s32.totalorder %s9125_s15, %s9121_s30 }
   0x8   : > { %p332_p1 = scmp.eq.s32.totalorder %s331_s21, 0  ;;  %p345_p2 = scmp.eq.s32.totalorder %s9245_s17, 1 }
   0x9   : > { %p350_p3 = scmp.ne.s32.totalorder %s9121_s30, %s9117_s29  ;;  %p351_p4 = scmp.eq.s32.totalorder %s6859_s18, 1 }
   0xa   : > { %s9260_s22 = scalar_select %p332_p1, %s9125_s15, %s334_s20  }
   0xb   : > { %p9262_p5 = por %p345_p2, %p344_p0  ;;  %p9266_p6 = por %p351_p4, %p350_p3 }
   0xc   : > { %11492 = sst [smem:[#allocation16_spill]] %s9260_s22  ;;  %p6860_p7 = scmp.ge.s32.totalorder %s9129_s16, 1 }
   0xd   : > { %s11493_s23 = scalar_select %p9262_p5, 1, 0 }
   0xe   : > { %s11494_s24 = scalar_select %p9266_p6, 1, 0 }
   0xf   : > { %p358_p8 = scmp.lt.s32.totalorder %s9129_s16, 3  ;;  %p11487_p9 = scmp.eq.s32.totalorder %s9245_s17, 0 }
  0x10   : > { %11495 = sst [smem:[#allocation17_spill]] %s11494_s24  ;;  %s9131_s26 = smov [#allocation8]  }
  0x11   : > { %p9273_p10 = pnand %p6860_p7, %p358_p8  ;;  %s397_s27 = sshll.u32 %s9131_s26, 4  ;;  %s398_s27 = int_to_ptr.vmem [resolvable:$true] %s397_s27 }
  0x12   : > { %s9035_s21 = scalar_lea.hbm %s11478_s10, 16384 }
  0x13   : > { %s11496_s25 = scalar_select %p9273_p10, 1, 0 }
  0x14   : > { %p7867_p11 = pneg %p9273_p10  ;;  %p9036_p13 = scmp.ne.s32.totalorder %s11478_s10, %s9035_s21 }
  0x15   : > { %p9042_p3 = scmp.lt.u32.totalorder %s9035_s21, %s11478_s10 }
  0x16   : > { %p9281_p12 = pnand %p11487_p9, %p7867_p11 }
  0x18   : > { %p9037_p0 = pneg %p9281_p12 }
  0x1a   : > { %p9038_p1 = pnand %p9037_p0, %p9036_p13 }
  0x1c   : > { %p9039_p2 = pneg %p9038_p1 }
  0x1e   : > { %p9044_p4 = pnand %p9042_p3, %p9039_p2 }
  0x20   : > { %9047 = shalt.err (!%p9044_p4)
}
  0x21   : > { %s9048_s24 = scalar_lea.vmem %s398_s27, 16384  ;;  %p9056_p9 = scmp.lt.s32.totalorder %s398_s27, %s398_s27 }
  0x22   : > { %p9049_p7 = scmp.ne.s32.totalorder %s398_s27, %s9048_s24  ;;  %p9057_p6 = scmp.lt.s32.totalorder %s9048_s24, %s9048_s24 }
  0x24   : > { %p9051_p8 = pnand %p9049_p7, %p9037_p0  ;;  %p9058_p5 = por %p9057_p6, %p9056_p9 }
  0x26   : > { %p9052_p11 = pneg %p9051_p8 }
  0x28   : > { %p9059_p10 = pnand %p9058_p5, %p9052_p11 }
  0x2a   : > { %9062 = shalt.err (!%p9059_p10)
}
  0x2b   : > { %s9132_s15 = smov 256   ;;  %s9133_s22 = smov 16  }
  0x2c   : > { %7870 = dma.hbm_to_vmem [thread:$0]  (!%p9281_p12), %s11478_s10, 16384, %s398_s27, [#allocation9], %s9132_s15, %s9132_s15, %s9133_s22  }
  0x2d   : > { %p11498_p13 = scmp.ne.s32.totalorder %s11496_s25, 0 }
  0x2e   : > { %p11499_p1 = scmp.eq.s32.totalorder (!%p11498_p13), %s9245_s17, 0 }
  0x2f   : > { %430 = sbr.rel (%p11498_p13) target bundleno = 1944 (0x798), region = 76 }
  0x36   : > { %9108 = dma.done.wait (%p11499_p1), [#allocation9], 16384   ;;  %p11500_p0 = pmov %p11499_p1 }
  0x37   : > { %vm481_vm0 = vcmask 23552   ;;  %vm484_vm1 = vcmask 17408   ;;  %vm490_vm2 = vcmask 16384   ;;  %v9134_v0 = vmov 0.0   ;;  %p475_p5 = scmp.lt.s32.totalorder %s9245_s17, 1  ;;  %s9135_s21 = smov 3  }
  0x38   : > { %9110 = vsyncadd (%p11500_p0), [#allocation9], 4294950912  ;;  %482 = vst.msk [vmem:[#allocation2] sm:$0xff] %vm481_vm0, %v9134_v0  ;;  %7609 = vmatprep.subr.bf16.mxu0 %v9134_v0  ;;  %7617 = vmatprep.subr.bf16.mxu1 %v9134_v0  ;;  %s9136_s26 = smov 6   ;;  %s9137_s15 = smov 9   ;;  %vm2248_vm3 = vcmask 1044480  }
  0x39   : > { %483 = vst.msk [vmem:[#allocation2 + $0x8] sm:$0xff] %vm481_vm0, %v9134_v0  ;;  %487 = vst.msk [vmem:[#allocation2 + $0x198] sm:$0xff] %vm481_vm0, %v9134_v0  ;;  %s476_s19 = scalar_select %p475_p5, %s9245_s17, 1  ;;  %vm2249_vm4 = vcmask 1045504   ;;  %v9140_v50 = vmov 65535   ;;  %v8727_v54 = vld [vmem:[%s11469_s1] sm:$0xff]  }
  0x3a   : > { %485 = vst.msk [vmem:[#allocation2 + $0x10] sm:$0x3] %vm484_vm1, %v9134_v0  ;;  %489 = vst.msk [vmem:[#allocation2 + $0x1a8] sm:$0x3] %vm484_vm1, %v9134_v0  ;;  %s9138_s22 = smov 12   ;;  %s9139_s18 = smov 15   ;;  %7610 = vmatpush3.bf16.msra.mxu0 %v8727_v54  ;;  %7618 = vmatpush3.bf16.msra.mxu1 %v8727_v54 }
  0x3b   : > { %488 = vst.msk [vmem:[#allocation2 + $0x1a0] sm:$0xff] %vm481_vm0, %v9134_v0  ;;  %s7120_s24 = sshll.u32 %s476_s19, 8  ;;  %v2250_v51 = vsel %vm2248_vm3, 4294967295, %v9140_v50  ;;  %s9141_s20 = smov 18   ;;  %vm9142_vm5 = vmmov 0   ;;  %7611 = vmatprep.subr.bf16.mxu0 %v9134_v0  ;;  %7619 = vmatprep.subr.bf16.mxu1 %v9134_v0  ;;  %vm1982_vm6 = vcmask 48128  }
  0x3c   : > { %492 = vst.msk [vmem:[#allocation2 + $0x18] sm:$0x1] %vm490_vm2, %v9134_v0  ;;  %493 = vst.msk [vmem:[#allocation2 + $0x30] sm:$0x1] %vm490_vm2, %v9134_v0  ;;  %s9396_s28 = scalar_lea.vmem %s11468_s0, %s7120_s24  ;;  %v2251_v55 = vsel %vm2249_vm4, %v2250_v51, 0  ;;  %7613 = vmatprep.mubr.msk.bf16.mxu0 %vm9142_vm5, %v9134_v0  ;;  %7621 = vmatprep.mubr.msk.bf16.mxu1 %vm9142_vm5, %v9134_v0  ;;  %s9143_s19 = smov 21  }
  0x3d   : > { %494 = vst.msk [vmem:[#allocation2 + $0x48] sm:$0x1] %vm490_vm2, %v9134_v0  ;;  %495 = vst.msk [vmem:[#allocation2 + $0x60] sm:$0x1] %vm490_vm2, %v9134_v0  ;;  %v572_v6 = vld [vmem:[%s9396_s28] sm:$0xff]  ;;  %v573_v7 = vld [vmem:[%s9396_s28 + $0x8] sm:$0xff] }
  0x3e   : > { %496 = vst.msk [vmem:[#allocation2 + $0x78] sm:$0x1] %vm490_vm2, %v9134_v0  ;;  %497 = vst.msk [vmem:[#allocation2 + $0x90] sm:$0x1] %vm490_vm2, %v9134_v0  ;;  %v574_v9 = vld [vmem:[%s9396_s28 + $0x10] sm:$0xff]  ;;  %v575_v10 = vld [vmem:[%s9396_s28 + $0x18] sm:$0xff] }
  0x3f   : > { %498 = vst.msk [vmem:[#allocation2 + $0xa8] sm:$0x1] %vm490_vm2, %v9134_v0  ;;  %499 = vst.msk [vmem:[#allocation2 + $0xc0] sm:$0x1] %vm490_vm2, %v9134_v0  ;;  %v576_v11 = vld [vmem:[%s9396_s28 + $0x20] sm:$0xff]  ;;  %v577_v12 = vld [vmem:[%s9396_s28 + $0x28] sm:$0xff] }
  0x40   : > { %500 = vst.msk [vmem:[#allocation2 + $0xd8] sm:$0x1] %vm490_vm2, %v9134_v0  ;;  %501 = vst.msk [vmem:[#allocation2 + $0xf0] sm:$0x1] %vm490_vm2, %v9134_v0  ;;  %v669_v1 = vld [vmem:[#allocation2 + $0x1] sm:$0xff]  ;;  %v578_v13 = vld [vmem:[%s9396_s28 + $0x30] sm:$0xff] }
  0x41   : > { %502 = vst.msk [vmem:[#allocation2 + $0x108] sm:$0x1] %vm490_vm2, %v9134_v0  ;;  %503 = vst.msk [vmem:[#allocation2 + $0x120] sm:$0x1] %vm490_vm2, %v9134_v0  ;;  %v670_v2 = vld [vmem:[#allocation2 + $0x9] sm:$0xff]  ;;  %v579_v14 = vld [vmem:[%s9396_s28 + $0x38] sm:$0xff] }
  0x42   : > { %504 = vst.msk [vmem:[#allocation2 + $0x138] sm:$0x1] %vm490_vm2, %v9134_v0  ;;  %505 = vst.msk [vmem:[#allocation2 + $0x150] sm:$0x1] %vm490_vm2, %v9134_v0  ;;  %v701_v3 = vld [vmem:[#allocation2 + $0x2] sm:$0xff]  ;;  %v7927_v4 = vpack.i.bf16 %v670_v2, %v669_v1  ;;  %v582_v17 = vld [vmem:[%s9396_s28 + $0x50] sm:$0xff] }
  0x43   : > { %506 = vst.msk [vmem:[#allocation2 + $0x168] sm:$0x1] %vm490_vm2, %v9134_v0  ;;  %507 = vst.msk [vmem:[#allocation2 + $0x180] sm:$0x1] %vm490_vm2, %v9134_v0  ;;  %v580_v15 = vld [vmem:[%s9396_s28 + $0x40] sm:$0xff]  ;;  %v581_v16 = vld [vmem:[%s9396_s28 + $0x48] sm:$0xff] }
  0x44   : > { %510 = vst.msk [vmem:[#allocation2 + $0x29] sm:$0x1] %vm490_vm2, %v9134_v0  ;;  %511 = vst.msk [vmem:[#allocation2 + $0x41] sm:$0x1] %vm490_vm2, %v9134_v0  ;;  %7928 = vrot.lane.b32.xlu0 %v7927_v4, %s9135_s21  ;;  %v583_v18 = vld [vmem:[%s9396_s28 + $0x58] sm:$0xff]  ;;  %v584_v19 = vld [vmem:[%s9396_s28 + $0x60] sm:$0xff] }
  0x45   : > { %512 = vst.msk [vmem:[#allocation2 + $0x59] sm:$0x1] %vm490_vm2, %v9134_v0  ;;  %513 = vst.msk [vmem:[#allocation2 + $0x71] sm:$0x1] %vm490_vm2, %v9134_v0  ;;  %v585_v20 = vld [vmem:[%s9396_s28 + $0x68] sm:$0xff]  ;;  %v586_v21 = vld [vmem:[%s9396_s28 + $0x70] sm:$0xff] }
  0x46   : > { %514 = vst.msk [vmem:[#allocation2 + $0x89] sm:$0x1] %vm490_vm2, %v9134_v0  ;;  %515 = vst.msk [vmem:[#allocation2 + $0xa1] sm:$0x1] %vm490_vm2, %v9134_v0  ;;  %v587_v22 = vld [vmem:[%s9396_s28 + $0x78] sm:$0xff]  ;;  %v588_v23 = vld [vmem:[%s9396_s28 + $0x80] sm:$0xff] }
  0x47   : > { %516 = vst.msk [vmem:[#allocation2 + $0xb9] sm:$0x1] %vm490_vm2, %v9134_v0  ;;  %517 = vst.msk [vmem:[#allocation2 + $0xd1] sm:$0x1] %vm490_vm2, %v9134_v0  ;;  %v589_v24 = vld [vmem:[%s9396_s28 + $0x88] sm:$0xff]  ;;  %v590_v25 = vld [vmem:[%s9396_s28 + $0x90] sm:$0xff] }
  0x48   : > { %518 = vst.msk [vmem:[#allocation2 + $0xe9] sm:$0x1] %vm490_vm2, %v9134_v0  ;;  %519 = vst.msk [vmem:[#allocation2 + $0x101] sm:$0x1] %vm490_vm2, %v9134_v0  ;;  %v591_v26 = vld [vmem:[%s9396_s28 + $0x98] sm:$0xff]  ;;  %v592_v58 = vld [vmem:[%s9396_s28 + $0xa0] sm:$0xff] }
  0x49   : > { %520 = vst.msk [vmem:[#allocation2 + $0x119] sm:$0x1] %vm490_vm2, %v9134_v0  ;;  %521 = vst.msk [vmem:[#allocation2 + $0x131] sm:$0x1] %vm490_vm2, %v9134_v0  ;;  %v8728_v57 = vld [vmem:[%s11469_s1 + $0x8] sm:$0x3f]  }
  0x4a   : > { %522 = vst.msk [vmem:[#allocation2 + $0x149] sm:$0x1] %vm490_vm2, %v9134_v0  ;;  %523 = vst.msk [vmem:[#allocation2 + $0x161] sm:$0x1] %vm490_vm2, %v9134_v0  ;;  %v593_v59 = vld [vmem:[%s9396_s28 + $0xa8] sm:$0xff]  ;;  %v9471_v60 = vand.u32 %v8728_v57, %v2251_v55  ;;  %s9144_s24 = smov 24  }
  0x4b   : > { %524 = vst.msk [vmem:[#allocation2 + $0x179] sm:$0x1] %vm490_vm2, %v9134_v0  ;;  %525 = vst.msk [vmem:[#allocation2 + $0x191] sm:$0x1] %vm490_vm2, %v9134_v0  ;;  %v594_v1 = vld [vmem:[%s9396_s28 + $0xb0] sm:$0xff]  ;;  %v595_v2 = vld [vmem:[%s9396_s28 + $0xb8] sm:$0xff] }
  0x4c   : > { %491 = vst.msk [vmem:[#allocation2] sm:$0x1] %vm490_vm2, %v9134_v0  ;;  %509 = vst.msk [vmem:[#allocation2 + $0x11] sm:$0x1] %vm490_vm2, %v9134_v0  ;;  %7612 = vmatpush3.bf16.msra.mxu0 %v9471_v60  ;;  %7620 = vmatpush3.bf16.msra.mxu1 %v9471_v60  ;;  %vm2015_vm7 = vcmask 72704   ;;  %vm2048_vm8 = vcmask 97280  }
  0x4d   : > { %526 = vst.msk [vmem:[#allocation2 + $0x1a9] sm:$0x1] %vm490_vm2, %v9134_v0  ;;  %508 = vst.msk [vmem:[#allocation2 + $0x198] sm:$0x1] %vm490_vm2, %v9134_v0  ;;  %7625 = vmatprep.subr.bf16.mxu0 %v9134_v0  ;;  %7633 = vmatprep.subr.bf16.mxu1 %v9134_v0  ;;  %vm2081_vm9 = vcmask 121856   ;;  %vm2114_vm10 = vcmask 146432  }
  0x4e   : > { %605 = vst.msk [vmem:[#allocation2 + $0x19] sm:$0xff] %vm481_vm0, %v572_v6  ;;  %606 = vst.msk [vmem:[#allocation2 + $0x21] sm:$0xff] %vm481_vm0, %v573_v7  ;;  %vm2147_vm11 = vcmask 171008   ;;  %vm2180_vm12 = vcmask 195584   ;;  %vm2244_vm13 = vcmask 220160   ;;  %vm527_vm14 = vcmask 261120  }
  0x4f   : > { %607 = vst.msk [vmem:[#allocation2 + $0x31] sm:$0xff] %vm481_vm0, %v574_v9  ;;  %608 = vst.msk [vmem:[#allocation2 + $0x39] sm:$0xff] %vm481_vm0, %v575_v10  ;;  %v596_v9 = vld [vmem:[%s9396_s28 + $0xc0] sm:$0xff]  ;;  %vm529_vm15 = vcmask 254976   ;;  %vm534_vm1 = vcmask 253952   ;;  %vm3476_vm2 = vcmask 785408  }
  0x50   : > { %609 = vst.msk [vmem:[#allocation2 + $0x49] sm:$0xff] %vm481_vm0, %v576_v11  ;;  %610 = vst.msk [vmem:[#allocation2 + $0x51] sm:$0xff] %vm481_vm0, %v577_v12  ;;  %v597_v12 = vld [vmem:[%s9396_s28 + $0xc8] sm:$0xff]  ;;  %vm555_vm3 = vcmask 521216   ;;  %vm559_vm4 = vcmask 516096   ;;  %p11501_p9 = scmp.ne.s32.totalorder %s11493_s23, 0 }
  0x51   : > { %611 = vst.msk [vmem:[#allocation2 + $0x61] sm:$0xff] %vm481_vm0, %v578_v13  ;;  %612 = vst.msk [vmem:[#allocation2 + $0x69] sm:$0xff] %vm481_vm0, %v579_v14 }
  0x52   : > { %613 = vst.msk [vmem:[#allocation2 + $0x79] sm:$0xff] %vm481_vm0, %v580_v15  ;;  %614 = vst.msk [vmem:[#allocation2 + $0x81] sm:$0xff] %vm481_vm0, %v581_v16 }
  0x53   : > { %v702_v5 = vld [vmem:[#allocation2 + $0xa] sm:$0xff]  ;;  %615 = vst.msk [vmem:[#allocation2 + $0x91] sm:$0xff] %vm481_vm0, %v582_v17  ;;  %616 = vst.msk [vmem:[#allocation2 + $0x99] sm:$0xff] %vm481_vm0, %v583_v18 }
  0x54   : > { %v7932_v8 = vpack.i.bf16 %v702_v5, %v701_v3  ;;  %617 = vst.msk [vmem:[#allocation2 + $0xa9] sm:$0xff] %vm481_vm0, %v584_v19  ;;  %618 = vst.msk [vmem:[#allocation2 + $0xb1] sm:$0xff] %vm481_vm0, %v585_v20 }
  0x55   : > { %619 = vst.msk [vmem:[#allocation2 + $0xc1] sm:$0xff] %vm481_vm0, %v586_v21  ;;  %620 = vst.msk [vmem:[#allocation2 + $0xc9] sm:$0xff] %vm481_vm0, %v587_v22  ;;  %v703_v27 = vld [vmem:[#allocation2 + $0x1a] sm:$0xff]  ;;  %v704_v28 = vld [vmem:[#allocation2 + $0x22] sm:$0xff] }
  0x56   : > { %7933 = vrot.lane.b32.xlu1 %v7932_v8, %s9136_s26  ;;  %621 = vst.msk [vmem:[#allocation2 + $0xd9] sm:$0xff] %vm481_vm0, %v588_v23  ;;  %622 = vst.msk [vmem:[#allocation2 + $0xe1] sm:$0xff] %vm481_vm0, %v589_v24  ;;  %v671_v29 = vld [vmem:[#allocation2 + $0x19] sm:$0xff]  ;;  %v7942_v30 = vpack.i.bf16 %v704_v28, %v703_v27  ;;  %v672_v31 = vld [vmem:[#allocation2 + $0x21] sm:$0xff] }
  0x57   : > { %623 = vst.msk [vmem:[#allocation2 + $0xf1] sm:$0xff] %vm481_vm0, %v590_v25  ;;  %624 = vst.msk [vmem:[#allocation2 + $0xf9] sm:$0xff] %vm481_vm0, %v591_v26  ;;  %v735_v32 = vld [vmem:[#allocation2 + $0x30] sm:$0xff]  ;;  %v736_v33 = vld [vmem:[#allocation2 + $0x38] sm:$0xff]  ;;  %v7937_v34 = vpack.i.bf16 %v672_v31, %v671_v29 }
  0x58   : > { %v9440_v35 = vld [vmem:[#allocation2 + $0x18] sm:$0xff]  ;;  %v9442_v36 = vld [vmem:[#allocation2 + $0x20] sm:$0xff]  ;;  %v7952_v37 = vpack.i.bf16 %v736_v33, %v735_v32  ;;  %v832_v45 = vld [vmem:[#allocation2 + $0x48] sm:$0xff]  ;;  %625 = vst.msk [vmem:[#allocation2 + $0x109] sm:$0xff] %vm481_vm0, %v592_v58 }
  0x59   : > { %7938 = vrot.lane.b32.xlu0 %v7937_v34, %s9135_s21  ;;  %v7947_v38 = vpack.i.bf16 %v9442_v36, %v9440_v35  ;;  %v767_v39 = vld [vmem:[#allocation2 + $0x31] sm:$0xff]  ;;  %v768_v40 = vld [vmem:[#allocation2 + $0x39] sm:$0xff]  ;;  %v864_v48 = vld [vmem:[#allocation2 + $0x49] sm:$0xff]  ;;  %626 = vst.msk [vmem:[#allocation2 + $0x111] sm:$0xff] %vm481_vm0, %v593_v59 }
  0x5a   : > { %7943 = vrot.lane.b32.xlu1 %v7942_v30, %s9136_s26  ;;  %v7962_v41 = vpack.i.bf16 %v768_v40, %v767_v39  ;;  %v799_v42 = vld [vmem:[#allocation2 + $0x32] sm:$0xff]  ;;  %v800_v43 = vld [vmem:[#allocation2 + $0x3a] sm:$0xff]  ;;  %v896_v53 = vld [vmem:[#allocation2 + $0x4a] sm:$0xff]  ;;  %627 = vst.msk [vmem:[#allocation2 + $0x121] sm:$0xff] %vm481_vm0, %v594_v1 }
  0x5b   : > { %v7972_v44 = vpack.i.bf16 %v800_v43, %v799_v42  ;;  %v833_v46 = vld [vmem:[#allocation2 + $0x50] sm:$0xff]  ;;  %v739_v62 = vld [vmem:[#allocation2 + $0x60] sm:$0xff]  ;;  %v740_v63 = vld [vmem:[#allocation2 + $0x68] sm:$0xff]  ;;  %628 = vst.msk [vmem:[#allocation2 + $0x129] sm:$0xff] %vm481_vm0, %v595_v2 }
  0x5c   : > { %v7982_v47 = vpack.i.bf16 %v833_v46, %v832_v45  ;;  %v865_v49 = vld [vmem:[#allocation2 + $0x51] sm:$0xff]  ;;  %v771_v3 = vld [vmem:[#allocation2 + $0x61] sm:$0xff]  ;;  %v772_v4 = vld [vmem:[#allocation2 + $0x69] sm:$0xff]  ;;  %v8032_v5 = vpack.i.bf16 %v740_v63, %v739_v62  ;;  %629 = vst.msk [vmem:[#allocation2 + $0x139] sm:$0xff] %vm481_vm0, %v596_v9 }
  0x5d   : > { %7948 = vrot.lane.b32.xlu0 %v7947_v38, %s9137_s15  ;;  %v7992_v52 = vpack.i.bf16 %v865_v49, %v864_v48  ;;  %v897_v56 = vld [vmem:[#allocation2 + $0x52] sm:$0xff]  ;;  %v803_v6 = vld [vmem:[#allocation2 + $0x62] sm:$0xff]  ;;  %v804_v7 = vld [vmem:[#allocation2 + $0x6a] sm:$0xff]  ;;  %v8042_v8 = vpack.i.bf16 %v772_v4, %v771_v3  ;;  %630 = vst.msk [vmem:[#allocation2 + $0x141] sm:$0xff] %vm481_vm0, %v597_v12 }
  0x5e   : > { %7953 = vrot.lane.b32.xlu1 %v7952_v37, %s9137_s15  ;;  %v8002_v61 = vpack.i.bf16 %v897_v56, %v896_v53  ;;  %v836_v10 = vld [vmem:[#allocation2 + $0x78] sm:$0xff]  ;;  %v837_v11 = vld [vmem:[#allocation2 + $0x80] sm:$0xff]  ;;  %v8052_v13 = vpack.i.bf16 %v804_v7, %v803_v6  ;;  %v598_v21 = vld [vmem:[%s9396_s28 + $0xd0] sm:$0xff]  ;;  %528 = vst.msk [vmem:[#allocation4] sm:$0xff] %vm527_vm14, %v9134_v0 }
  0x5f   : > { %v868_v14 = vld [vmem:[#allocation2 + $0x79] sm:$0xff]  ;;  %v869_v15 = vld [vmem:[#allocation2 + $0x81] sm:$0xff]  ;;  %v8062_v16 = vpack.i.bf16 %v837_v11, %v836_v10  ;;  %v743_v23 = vld [vmem:[#allocation2 + $0x90] sm:$0xff]  ;;  %631 = vst.msk [vmem:[#allocation2 + $0x151] sm:$0xff] %vm481_vm0, %v598_v21 }
  0x60   : > { %v8072_v17 = vpack.i.bf16 %v869_v15, %v868_v14  ;;  %v900_v18 = vld [vmem:[#allocation2 + $0x7a] sm:$0xff]  ;;  %v901_v19 = vld [vmem:[#allocation2 + $0x82] sm:$0xff]  ;;  %v775_v25 = vld [vmem:[#allocation2 + $0x91] sm:$0xff]  ;;  %532 = vst.msk [vmem:[#allocation4 + $0x90] sm:$0xff] %vm527_vm14, %v9134_v0 }
  0x61   : > { %7958 = vrot.lane.b32.xlu0 %v7937_v34, %s9138_s22  ;;  %v8082_v20 = vpack.i.bf16 %v901_v19, %v900_v18  ;;  %v599_v22 = vld [vmem:[%s9396_s28 + $0xd8] sm:$0xff]  ;;  %v600_v31 = vld [vmem:[%s9396_s28 + $0xe0] sm:$0xff]  ;;  %v840_v32 = vld [vmem:[#allocation2 + $0xa8] sm:$0xff]  ;;  %530 = vst.msk [vmem:[#allocation4 + $0x8] sm:$0x3] %vm529_vm15, %v9134_v0 }
  0x62   : > { %7963 = vrot.lane.b32.xlu1 %v7962_v41, %s9138_s22  ;;  %v744_v24 = vld [vmem:[#allocation2 + $0x98] sm:$0xff]  ;;  %632 = vst.msk [vmem:[#allocation2 + $0x159] sm:$0xff] %vm481_vm0, %v599_v22  ;;  %v841_v33 = vld [vmem:[#allocation2 + $0xb0] sm:$0xff]  ;;  %v601_v34 = vld [vmem:[%s9396_s28 + $0xe8] sm:$0xff] }
  0x63   : > { %v776_v26 = vld [vmem:[#allocation2 + $0x99] sm:$0xff]  ;;  %v8112_v27 = vpack.i.bf16 %v744_v24, %v743_v23  ;;  %633 = vst.msk [vmem:[#allocation2 + $0x169] sm:$0xff] %vm481_vm0, %v600_v31  ;;  %634 = vst.msk [vmem:[#allocation2 + $0x171] sm:$0xff] %vm481_vm0, %v601_v34  ;;  %v872_v38 = vld [vmem:[#allocation2 + $0xa9] sm:$0xff]  ;;  %v8142_v40 = vpack.i.bf16 %v841_v33, %v840_v32 }
  0x64   : > { %v807_v28 = vld [vmem:[#allocation2 + $0x92] sm:$0xff]  ;;  %v808_v29 = vld [vmem:[#allocation2 + $0x9a] sm:$0xff]  ;;  %v904_v42 = vld [vmem:[#allocation2 + $0xaa] sm:$0xff]  ;;  %546 = vst.msk [vmem:[#allocation4 + $0x19] sm:$0x1] %vm534_vm1, %v9134_v0 }
  0x65   : > { %7968 = vrot.lane.b32.xlu0 %v7942_v30, %s9139_s18  ;;  %v8122_v30 = vpack.i.bf16 %v776_v26, %v775_v25  ;;  %v873_v39 = vld [vmem:[#allocation2 + $0xb1] sm:$0xff]  ;;  %v748_v48 = vld [vmem:[#allocation2 + $0xc8] sm:$0xff]  ;;  %v845_v56 = vld [vmem:[#allocation2 + $0xe0] sm:$0xff]  ;;  %533 = vst.msk [vmem:[#allocation4 + $0x98] sm:$0x3] %vm529_vm15, %v9134_v0 }
  0x66   : > { %7973 = vrot.lane.b32.xlu1 %v7972_v44, %s9139_s18  ;;  %v905_v43 = vld [vmem:[#allocation2 + $0xb2] sm:$0xff]  ;;  %v779_v49 = vld [vmem:[#allocation2 + $0xc1] sm:$0xff]  ;;  %v780_v50 = vld [vmem:[#allocation2 + $0xc9] sm:$0xff]  ;;  %535 = vst.msk [vmem:[#allocation4] sm:$0x1] %vm534_vm1, %v9134_v0 }
  0x67   : > { %v602_v45 = vld [vmem:[%s9396_s28 + $0xf0] sm:$0xff]  ;;  %v603_v46 = vld [vmem:[%s9396_s28 + $0xf8] sm:$0xff]  ;;  %v8202_v54 = vpack.i.bf16 %v780_v50, %v779_v49  ;;  %v877_v59 = vld [vmem:[#allocation2 + $0xe1] sm:$0xff]  ;;  %536 = vst.msk [vmem:[#allocation4 + $0x10] sm:$0x1] %vm534_vm1, %v9134_v0 }
  0x68   : > { %635 = vst.msk [vmem:[#allocation2 + $0x181] sm:$0xff] %vm481_vm0, %v602_v45  ;;  %636 = vst.msk [vmem:[#allocation2 + $0x189] sm:$0xff] %vm481_vm0, %v603_v46  ;;  %v812_v53 = vld [vmem:[#allocation2 + $0xca] sm:$0xff]  ;;  %v844_v55 = vld [vmem:[#allocation2 + $0xd8] sm:$0xff] }
  0x69   : > { %7978 = vrot.lane.b32.xlu0 %v7952_v37, %s9141_s20  ;;  %v8132_v37 = vpack.i.bf16 %v808_v29, %v807_v28  ;;  %v876_v58 = vld [vmem:[#allocation2 + $0xd9] sm:$0xff]  ;;  %v9545_v62 = vpack.i.bf16 %v845_v56, %v844_v55  ;;  %v909_v3 = vld [vmem:[#allocation2 + $0xe2] sm:$0xff]  ;;  %v751_v9 = vld [vmem:[#allocation2 + $0xf0] sm:$0xff]  ;;  %537 = vst.msk [vmem:[#allocation4 + $0x20] sm:$0x1] %vm534_vm1, %v9134_v0 }
  0x6a   : > { %7983 = vrot.lane.b32.xlu1 %v7982_v47, %s9141_s20  ;;  %v9550_v1 = vpack.i.bf16 %v877_v59, %v876_v58  ;;  %v908_v2 = vld [vmem:[#allocation2 + $0xda] sm:$0xff]  ;;  %v638_v11 = vld [vmem:[#allocation2 + $0x8] sm:$0xff]  ;;  %v783_v19 = vld [vmem:[#allocation2 + $0xf1] sm:$0xff]  ;;  %538 = vst.msk [vmem:[#allocation4 + $0x30] sm:$0x1] %vm534_vm1, %v9134_v0 }
  0x6b   : > { %v9555_v6 = vpack.i.bf16 %v909_v3, %v908_v2  ;;  %v752_v10 = vld [vmem:[#allocation2 + $0xf8] sm:$0xff]  ;;  %v637_v12 = vld [vmem:[#allocation2] sm:$0xff]  ;;  %v848_v23 = vld [vmem:[#allocation2 + $0x108] sm:$0xff]  ;;  %539 = vst.msk [vmem:[#allocation4 + $0x40] sm:$0x1] %vm534_vm1, %v9134_v0 }
  0x6c   : > { %v815_v21 = vld [vmem:[#allocation2 + $0xf2] sm:$0xff]  ;;  %v816_v22 = vld [vmem:[#allocation2 + $0xfa] sm:$0xff]  ;;  %v9572_v28 = vpack.i.bf16 %v752_v10, %v751_v9  ;;  %540 = vst.msk [vmem:[#allocation4 + $0x50] sm:$0x1] %vm534_vm1, %v9134_v0  ;;  %541 = vst.msk [vmem:[#allocation4 + $0x60] sm:$0x1] %vm534_vm1, %v9134_v0 }
  0x6d   : > { %7988 = vrot.lane.b32.xlu0 %v7962_v41, %s9143_s19  ;;  %v849_v24 = vld [vmem:[#allocation2 + $0x110] sm:$0xff]  ;;  %542 = vst.msk [vmem:[#allocation4 + $0x70] sm:$0x1] %vm534_vm1, %v9134_v0  ;;  %543 = vst.msk [vmem:[#allocation4 + $0x80] sm:$0x1] %vm534_vm1, %v9134_v0 }
  0x6e   : > { %7993 = vrot.lane.b32.xlu1 %v7992_v52, %s9143_s19  ;;  %v9591_v45 = vpack.i.bf16 %v849_v24, %v848_v23  ;;  %544 = vst.msk [vmem:[#allocation4 + $0x90] sm:$0x1] %vm534_vm1, %v9134_v0  ;;  %547 = vst.msk [vmem:[#allocation4 + $0x29] sm:$0x1] %vm534_vm1, %v9134_v0 }
  0x6f   : > { %548 = vst.msk [vmem:[#allocation4 + $0x39] sm:$0x1] %vm534_vm1, %v9134_v0  ;;  %549 = vst.msk [vmem:[#allocation4 + $0x49] sm:$0x1] %vm534_vm1, %v9134_v0 }
  0x70   : > { %550 = vst.msk [vmem:[#allocation4 + $0x59] sm:$0x1] %vm534_vm1, %v9134_v0  ;;  %551 = vst.msk [vmem:[#allocation4 + $0x69] sm:$0x1] %vm534_vm1, %v9134_v0 }
  0x71   : > { %7998 = vrot.lane.b32.xlu0 %v7972_v44, %s9144_s24  ;;  %552 = vst.msk [vmem:[#allocation4 + $0x79] sm:$0x1] %vm534_vm1, %v9134_v0  ;;  %553 = vst.msk [vmem:[#allocation4 + $0x89] sm:$0x1] %vm534_vm1, %v9134_v0 }
  0x72   : > { %8003 = vrot.lane.b32.xlu1 %v8002_v61, %s9144_s24  ;;  %545 = vst.msk [vmem:[#allocation4 + $0x9] sm:$0x1] %vm534_vm1, %v9134_v0  ;;  %554 = vst.msk [vmem:[#allocation4 + $0x99] sm:$0x1] %vm534_vm1, %v9134_v0 }
  0x73   : > { %556 = vst.msk [vmem:[#allocation6] sm:$0x3f] %vm555_vm3, %v9134_v0  ;;  %558 = vst.msk [vmem:[#allocation6 + $0x28] sm:$0x3f] %vm555_vm3, %v9134_v0 }
  0x74   : > { %561 = vst.msk [vmem:[#allocation6 + $0x8] sm:$0x1] %vm559_vm4, %v9134_v0  ;;  %562 = vst.msk [vmem:[#allocation6 + $0x10] sm:$0x1] %vm559_vm4, %v9134_v0 }
  0x75   : > { %8008 = vrot.lane.b32.xlu0 %v7962_v41, %s9135_s21  ;;  %v8152_v41 = vpack.i.bf16 %v873_v39, %v872_v38  ;;  %563 = vst.msk [vmem:[#allocation6 + $0x18] sm:$0x1] %vm559_vm4, %v9134_v0  ;;  %564 = vst.msk [vmem:[#allocation6 + $0x20] sm:$0x1] %vm559_vm4, %v9134_v0 }
  0x76   : > { %8013 = vrot.lane.b32.xlu1 %v7992_v52, %s9135_s21  ;;  %567 = vst.msk [vmem:[#allocation6 + $0xd] sm:$0x1] %vm559_vm4, %v9134_v0  ;;  %568 = vst.msk [vmem:[#allocation6 + $0x15] sm:$0x1] %vm559_vm4, %v9134_v0 }
  0x77   : > { %569 = vst.msk [vmem:[#allocation6 + $0x1d] sm:$0x1] %vm559_vm4, %v9134_v0  ;;  %570 = vst.msk [vmem:[#allocation6 + $0x25] sm:$0x1] %vm559_vm4, %v9134_v0 }
  0x78   : > { %560 = vst.msk [vmem:[#allocation6] sm:$0x1] %vm559_vm4, %v9134_v0  ;;  %566 = vst.msk [vmem:[#allocation6 + $0x5] sm:$0x1] %vm559_vm4, %v9134_v0 }
  0x79   : > { %8018 = vrot.lane.b32.xlu0 %v7972_v44, %s9136_s26  ;;  %v8162_v44 = vpack.i.bf16 %v905_v43, %v904_v42  ;;  %565 = vst.msk [vmem:[#allocation6 + $0x28] sm:$0x1] %vm559_vm4, %v9134_v0  ;;  %571 = vst.msk [vmem:[#allocation6 + $0x2d] sm:$0x1] %vm559_vm4, %v9134_v0 }
  0x7a   : > { %8023 = vrot.lane.b32.xlu1 %v8002_v61, %s9136_s26 }
  0x7d   : > { %8028 = vrot.lane.b32.xlu0 %v7982_v47, %s9137_s15  ;;  %v747_v47 = vld [vmem:[#allocation2 + $0xc0] sm:$0xff] }
  0x7e   : > { %8033 = vrot.lane.b32.xlu1 %v8032_v5, %s9137_s15  ;;  %v8192_v51 = vpack.i.bf16 %v748_v48, %v747_v47 }
  0x81   : > { %8038 = vrot.lane.b32.xlu0 %v7992_v52, %s9138_s22  ;;  %v811_v52 = vld [vmem:[#allocation2 + $0xc2] sm:$0xff] }
  0x82   : > { %8043 = vrot.lane.b32.xlu1 %v8042_v8, %s9138_s22  ;;  %v8212_v57 = vpack.i.bf16 %v812_v53, %v811_v52 }
  0x85   : > { %8048 = vrot.lane.b32.xlu0 %v8002_v61, %s9139_s18 }
  0x86   : > { %8053 = vrot.lane.b32.xlu1 %v8052_v13, %s9139_s18 }
  0x89   : > { %8058 = vrot.lane.b32.xlu0 %v8032_v5, %s9141_s20 }
  0x8a   : > { %8063 = vrot.lane.b32.xlu1 %v8062_v16, %s9141_s20 }
  0x8d   : > { %8068 = vrot.lane.b32.xlu0 %v8042_v8, %s9143_s19 }
  0x8e   : > { %8073 = vrot.lane.b32.xlu1 %v8072_v17, %s9143_s19 }
  0x91   : > { %8078 = vrot.lane.b32.xlu0 %v8052_v13, %s9144_s24 }
  0x92   : > { %8083 = vrot.lane.b32.xlu1 %v8082_v20, %s9144_s24 }
  0x95   : > { %8088 = vrot.lane.b32.xlu0 %v8042_v8, %s9135_s21 }
  0x96   : > { %8093 = vrot.lane.b32.xlu1 %v8072_v17, %s9135_s21 }
  0x99   : > { %8098 = vrot.lane.b32.xlu0 %v8052_v13, %s9136_s26 }
  0x9a   : > { %8103 = vrot.lane.b32.xlu1 %v8082_v20, %s9136_s26 }
  0x9d   : > { %8108 = vrot.lane.b32.xlu0 %v8062_v16, %s9137_s15 }
  0x9e   : > { %8113 = vrot.lane.b32.xlu1 %v8112_v27, %s9137_s15 }
  0xa1   : > { %8118 = vrot.lane.b32.xlu0 %v8072_v17, %s9138_s22 }
  0xa2   : > { %8123 = vrot.lane.b32.xlu1 %v8122_v30, %s9138_s22 }
  0xa5   : > { %8128 = vrot.lane.b32.xlu0 %v8082_v20, %s9139_s18  ;;  %v784_v20 = vld [vmem:[#allocation2 + $0xf9] sm:$0xff] }
  0xa6   : > { %8133 = vrot.lane.b32.xlu1 %v8132_v37, %s9139_s18  ;;  %v9585_v42 = vpack.i.bf16 %v784_v20, %v783_v19 }
  0xa9   : > { %8138 = vrot.lane.b32.xlu0 %v8112_v27, %s9141_s20 }
  0xaa   : > { %8143 = vrot.lane.b32.xlu1 %v8142_v40, %s9141_s20 }
  0xad   : > { %8148 = vrot.lane.b32.xlu0 %v8122_v30, %s9143_s19 }
  0xae   : > { %8153 = vrot.lane.b32.xlu1 %v8152_v41, %s9143_s19 }
  0xb1   : > { %8158 = vrot.lane.b32.xlu0 %v8132_v37, %s9144_s24 }
  0xb2   : > { %8163 = vrot.lane.b32.xlu1 %v8162_v44, %s9144_s24 }
  0xb5   : > { %8168 = vrot.lane.b32.xlu0 %v8122_v30, %s9135_s21 }
  0xb6   : > { %8173 = vrot.lane.b32.xlu1 %v8152_v41, %s9135_s21  ;;  %v7929_v63 = vpop.permute.xlu0 %7928 }
  0xb7   : > { %v7931_v14 = vunpack.i.h.bf16 %v7929_v63  ;;  %v7930_v15 = vunpack.i.l.bf16 %v7929_v63 }
  0xb9   : > { %8178 = vrot.lane.b32.xlu0 %v8132_v37, %s9136_s26  ;;  %v1951_v29 = vsel %vm481_vm0, %v638_v11, %v7931_v14  ;;  %v1950_v30 = vsel %vm481_vm0, %v637_v12, %v7930_v15 }
  0xba   : > { %8183 = vrot.lane.b32.xlu1 %v8162_v44, %s9136_s26 }
  0xbd   : > { %8188 = vrot.lane.b32.xlu0 %v8142_v40, %s9137_s15 }
  0xbe   : > { %8193 = vrot.lane.b32.xlu1 %v8192_v51, %s9137_s15 }
  0xc1   : > { %8198 = vrot.lane.b32.xlu0 %v8152_v41, %s9138_s22 }
  0xc2   : > { %8203 = vrot.lane.b32.xlu1 %v8202_v54, %s9138_s22 }
  0xc5   : > { %8208 = vrot.lane.b32.xlu0 %v8162_v44, %s9139_s18 }
  0xc6   : > { %8213 = vrot.lane.b32.xlu1 %v8212_v57, %s9139_s18 }
  0xc8   : > { %v9543_v61 = vpop.permute.xlu1 %7933 }
  0xc9   : > { %8218 = vrot.lane.b32.xlu0 %v8192_v51, %s9141_s20  ;;  %v7936_v25 = vunpack.i.h.bf16 %v9543_v61  ;;  %v7935_v26 = vunpack.i.l.bf16 %v9543_v61 }
  0xca   : > { %8223 = vrot.lane.b32.xlu1 %v9545_v62, %s9141_s20 }
  0xcb   : > { %v7939_v5 = vpop.permute.xlu0 %7938  ;;  %v1983_v43 = vsel %vm1982_vm6, %v1950_v30, %v7935_v26 }
  0xcc   : > { %v7944_v4 = vpop.permute.xlu1 %7943  ;;  %v7941_v17 = vunpack.i.h.bf16 %v7939_v5  ;;  %v7940_v18 = vunpack.i.l.bf16 %v7939_v5 }
  0xcd   : > { %8228 = vrot.lane.b32.xlu0 %v8202_v54, %s9143_s19  ;;  %v7946_v31 = vunpack.i.h.bf16 %v7944_v4  ;;  %v7945_v32 = vunpack.i.l.bf16 %v7944_v4 }
  0xce   : > { %8233 = vrot.lane.b32.xlu1 %v9550_v1, %s9143_s19  ;;  %v1953_v34 = vsel %vm481_vm0, %v9442_v36, %v7941_v17  ;;  %v1952_v37 = vsel %vm481_vm0, %v9440_v35, %v7940_v18  ;;  %v1984_v36 = vsel %vm1982_vm6, %v1951_v29, %v7936_v25  ;;  %v9589_v35 = vpack.i.bf16 %v816_v22, %v815_v21 }
  0xcf   : > { %v9558_v8 = vpop.permute.xlu0 %7948  ;;  %v1985_v46 = vsel %vm1982_vm6, %v1952_v37, %v7945_v32  ;;  %v1986_v47 = vsel %vm1982_vm6, %v1953_v34, %v7946_v31  ;;  %v880_v37 = vld [vmem:[#allocation2 + $0x109] sm:$0xff] }
  0xd0   : > { %v7954_v7 = vpop.permute.xlu1 %7953  ;;  %v7951_v40 = vunpack.i.h.bf16 %v9558_v8  ;;  %v7950_v41 = vunpack.i.l.bf16 %v9558_v8 }
  0xd1   : > { %8238 = vrot.lane.b32.xlu0 %v8212_v57, %s9144_s24  ;;  %v7956_v38 = vunpack.i.h.bf16 %v7954_v7  ;;  %v7955_v39 = vunpack.i.l.bf16 %v7954_v7 }
  0xd2   : > { %8243 = vrot.lane.b32.xlu1 %v9555_v6, %s9144_s24  ;;  %v2016_v55 = vsel %vm2015_vm7, %v1983_v43, %v7950_v41  ;;  %v2017_v56 = vsel %vm2015_vm7, %v1984_v36, %v7951_v40 }
  0xd3   : > { %v9565_v16 = vpop.permute.xlu0 %7958  ;;  %v2018_v51 = vsel %vm2015_vm7, %v1985_v46, %v7955_v39  ;;  %v2019_v52 = vsel %vm2015_vm7, %v1986_v47, %v7956_v38  ;;  %v881_v38 = vld [vmem:[#allocation2 + $0x111] sm:$0xff] }
  0xd4   : > { %v9563_v13 = vpop.permute.xlu1 %7963  ;;  %v7961_v53 = vunpack.i.h.bf16 %v9565_v16  ;;  %v9642_v46 = vpack.i.bf16 %v881_v38, %v880_v37  ;;  %v913_v47 = vld [vmem:[#allocation2 + $0x112] sm:$0xff] }
  0xd5   : > { %8248 = vrot.lane.b32.xlu0 %v8202_v54, %s9135_s21  ;;  %v7966_v48 = vunpack.i.h.bf16 %v9563_v13  ;;  %v7965_v49 = vunpack.i.l.bf16 %v9563_v13  ;;  %v7960_v54 = vunpack.i.l.bf16 %v9565_v16 }
  0xd6   : > { %8253 = vrot.lane.b32.xlu1 %v9550_v1, %s9135_s21  ;;  %v2050_v11 = vsel %vm2048_vm8, %v2017_v56, %v7961_v53  ;;  %v756_v56 = vld [vmem:[#allocation2 + $0x128] sm:$0xff] }
  0xd7   : > { %v7969_v33 = vpop.permute.xlu0 %7968  ;;  %v2051_v4 = vsel %vm2048_vm8, %v2018_v51, %v7965_v49  ;;  %v2052_v5 = vsel %vm2048_vm8, %v2019_v52, %v7966_v48  ;;  %v2049_v10 = vsel %vm2048_vm8, %v2016_v55, %v7960_v54  ;;  %v9652_v49 = vld [vmem:[%s11469_s1] sm:$0xff]  }
  0xd8   : > { %v7974_v27 = vpop.permute.xlu1 %7973  ;;  %v7971_v59 = vunpack.i.h.bf16 %v7969_v33  ;;  %v7970_v61 = vunpack.i.l.bf16 %v7969_v33  ;;  %v755_v55 = vld [vmem:[#allocation2 + $0x120] sm:$0xff] }
  0xd9   : > { %8258 = vrot.lane.b32.xlu0 %v8212_v57, %s9136_s26  ;;  %v7976_v57 = vunpack.i.h.bf16 %v7974_v27  ;;  %v7975_v58 = vunpack.i.l.bf16 %v7974_v27 }
  0xda   : > { %8263 = vrot.lane.b32.xlu1 %v9555_v6, %s9136_s26  ;;  %v2082_v17 = vsel %vm2081_vm9, %v2049_v10, %v7970_v61  ;;  %v2083_v18 = vsel %vm2081_vm9, %v2050_v11, %v7971_v59  ;;  %v819_v59 = vld [vmem:[#allocation2 + $0x122] sm:$0xff] }
  0xdb   : > { %v7979_v50 = vpop.permute.xlu0 %7978  ;;  %v2085_v14 = vsel %vm2081_vm9, %v2052_v5, %v7976_v57  ;;  %v787_v57 = vld [vmem:[#allocation2 + $0x121] sm:$0xff] }
  0xdc   : > { %v7984_v44 = vpop.permute.xlu1 %7983  ;;  %v7981_v7 = vunpack.i.h.bf16 %v7979_v50  ;;  %v7980_v8 = vunpack.i.l.bf16 %v7979_v50 }
  0xdd   : > { %8268 = vrot.lane.b32.xlu0 %v9545_v62, %s9137_s15  ;;  %v7986_v63 = vunpack.i.h.bf16 %v7984_v44  ;;  %v7985_v2 = vunpack.i.l.bf16 %v7984_v44  ;;  %v2084_v62 = vsel %vm2081_vm9, %v2051_v4, %v7975_v58  ;;  %v788_v58 = vld [vmem:[#allocation2 + $0x129] sm:$0xff]  ;;  %v853_v4 = vld [vmem:[#allocation2 + $0x140] sm:$0xff] }
  0xde   : > { %8273 = vrot.lane.b32.xlu1 %v9572_v28, %s9137_s15  ;;  %v2115_v22 = vsel %vm2114_vm10, %v2082_v17, %v7980_v8  ;;  %v2116_v23 = vsel %vm2114_vm10, %v2083_v18, %v7981_v7  ;;  %v9008_v18 = vld [vmem:[#allocation2 + $0x50] sm:$0xff] }
  0xdf   : > { %v7989_v9 = vpop.permute.xlu0 %7988  ;;  %v2117_v19 = vsel %vm2114_vm10, %v2084_v62, %v7985_v2  ;;  %v2118_v20 = vsel %vm2114_vm10, %v2085_v14, %v7986_v63  ;;  %v820_v2 = vld [vmem:[#allocation2 + $0x12a] sm:$0xff]  ;;  %v9690_v62 = vpack.i.bf16 %v756_v56, %v755_v55  ;;  %v9692_v14 = vpack.i.bf16 %v788_v58, %v787_v57 }
  0xe0   : > { %v7994_v3 = vpop.permute.xlu1 %7993  ;;  %v7991_v15 = vunpack.i.h.bf16 %v7989_v9  ;;  %v7990_v16 = vunpack.i.l.bf16 %v7989_v9 }
  0xe1   : > { %v7996_v12 = vunpack.i.h.bf16 %v7994_v3  ;;  %v7995_v13 = vunpack.i.l.bf16 %v7994_v3  ;;  %8278 = vrot.lane.b32.xlu0 %v9550_v1, %s9138_s22  ;;  %v852_v3 = vld [vmem:[#allocation2 + $0x138] sm:$0xff] }
  0xe2   : > { %8283 = vrot.lane.b32.xlu1 %v9585_v42, %s9138_s22  ;;  %v2148_v31 = vsel %vm2147_vm11, %v2115_v22, %v7990_v16  ;;  %v2149_v32 = vsel %vm2147_vm11, %v2116_v23, %v7991_v15  ;;  %v9696_v16 = vpack.i.bf16 %v820_v2, %v819_v59  ;;  %v9698_v17 = vpack.i.bf16 %v853_v4, %v852_v3 }
  0xe3   : > { %v7999_v26 = vpop.permute.xlu0 %7998  ;;  %v2150_v27 = vsel %vm2147_vm11, %v2117_v19, %v7995_v13  ;;  %v2151_v1 = vsel %vm2147_vm11, %v2118_v20, %v7996_v12  ;;  %v9009_v20 = vld [vmem:[#allocation2 + $0x48] sm:$0xff] }
  0xe4   : > { %v8004_v21 = vpop.permute.xlu1 %8003  ;;  %v8001_v29 = vunpack.i.h.bf16 %v7999_v26  ;;  %v8000_v30 = vunpack.i.l.bf16 %v7999_v26  ;;  %v9011_v26 = vld [vmem:[#allocation2 + $0x30] sm:$0xff] }
  0xe5   : > { %v8006_v24 = vunpack.i.h.bf16 %v8004_v21  ;;  %v8005_v25 = vunpack.i.l.bf16 %v8004_v21  ;;  %8288 = vrot.lane.b32.xlu0 %v9555_v6, %s9139_s18  ;;  %v912_v6 = vld [vmem:[#allocation2 + $0x10a] sm:$0xff] }
  0xe6   : > { %8293 = vrot.lane.b32.xlu1 %v9589_v35, %s9139_s18  ;;  %v2181_v39 = vsel %vm2180_vm12, %v2148_v31, %v8000_v30  ;;  %v2182_v40 = vsel %vm2180_vm12, %v2149_v32, %v8001_v29 }
  0xe7   : > { %v2183_v33 = vsel %vm2180_vm12, %v2150_v27, %v8005_v25  ;;  %v2184_v34 = vsel %vm2180_vm12, %v2151_v1, %v8006_v24  ;;  %v9637_v36 = vpop.permute.xlu0 %8008  ;;  %v2213_v44 = vpack.c.bf16 %v2182_v40, %v2181_v39  ;;  %v9010_v24 = vld [vmem:[#allocation2 + $0x38] sm:$0xff] }
  0xe8   : > { %v9635_v41 = vpop.permute.xlu1 %8013  ;;  %v2214_v43 = vpack.c.bf16 %v2184_v34, %v2183_v33  ;;  %v8011_v5 = vunpack.i.h.bf16 %v9637_v36  ;;  %v8010_v7 = vunpack.i.l.bf16 %v9637_v36 }
  0xe9   : > { %8298 = vrot.lane.b32.xlu0 %v9572_v28, %s9141_s20  ;;  %7614 = vmatmul.mubr.msk.bf16.vlgmr.msra.gmra.mrb[0].mxu0 %vm2244_vm13, %v2213_v44  ;;  %v9660_v28 = vpack.i.bf16 %v913_v47, %v912_v6  ;;  %v8016_v61 = vunpack.i.h.bf16 %v9635_v41  ;;  %v8015_v63 = vunpack.i.l.bf16 %v9635_v41 }
  0xea   : > { %8303 = vrot.lane.b32.xlu1 %v9591_v45, %s9141_s20  ;;  %7622 = vmatmul.mubr.msk.bf16.vlgmr.msra.gmra.mrb[0].mxu1 %vm2244_vm13, %v2214_v43  ;;  %v1955_v25 = vsel %vm481_vm0, %v9010_v24, %v8011_v5  ;;  %v1954_v27 = vsel %vm481_vm0, %v9011_v26, %v8010_v7  ;;  %v884_v24 = vld [vmem:[#allocation2 + $0x139] sm:$0xff] }
  0xeb   : > { %7626 = vmatpush3.bf16.msra.mxu0 %v9652_v49  ;;  %7634 = vmatpush3.bf16.msra.mxu1 %v9652_v49  ;;  %v8019_v50 = vpop.permute.xlu0 %8018  ;;  %v1957_v19 = vsel %vm481_vm0, %v9008_v18, %v8016_v61  ;;  %v1956_v21 = vsel %vm481_vm0, %v9009_v20, %v8015_v63 }
  0xec   : > { %v9647_v48 = vpop.permute.xlu1 %8023  ;;  %7627 = vmatprep.subr.bf16.mxu0 %v9134_v0  ;;  %7635 = vmatprep.subr.bf16.mxu1 %v9134_v0  ;;  %v8021_v11 = vunpack.i.h.bf16 %v8019_v50  ;;  %v8020_v12 = vunpack.i.l.bf16 %v8019_v50 }
  0xed   : > { %7629 = vmatprep.mubr.msk.bf16.mxu0 %vm9142_vm5, %v9134_v0  ;;  %8308 = vrot.lane.b32.xlu0 %v9585_v42, %s9143_s19  ;;  %v8026_v8 = vunpack.i.h.bf16 %v9647_v48  ;;  %v8025_v9 = vunpack.i.l.bf16 %v9647_v48 }
  0xee   : > { %8313 = vrot.lane.b32.xlu1 %v9642_v46, %s9143_s19  ;;  %7637 = vmatprep.mubr.msk.bf16.mxu1 %vm9142_vm5, %v9134_v0  ;;  %v1987_v31 = vsel %vm1982_vm6, %v1954_v27, %v8020_v12  ;;  %v1988_v32 = vsel %vm1982_vm6, %v1955_v25, %v8021_v11  ;;  %v885_v25 = vld [vmem:[#allocation2 + $0x141] sm:$0xff] }
  0xef   : > { %7628 = vmatpush3.bf16.msra.mxu0 %v9471_v60  ;;  %7636 = vmatpush3.bf16.msra.mxu1 %v9471_v60  ;;  %v8029_v52 = vpop.permute.xlu0 %8028  ;;  %v1989_v1 = vsel %vm1982_vm6, %v1956_v21, %v8025_v9  ;;  %v1990_v29 = vsel %vm1982_vm6, %v1957_v19, %v8026_v8 }
  0xf0   : > { %v8034_v51 = vpop.permute.xlu1 %8033  ;;  %7641 = vmatprep.subr.bf16.mxu0 %v9134_v0  ;;  %7649 = vmatprep.subr.bf16.mxu1 %v9134_v0  ;;  %v8031_v22 = vunpack.i.h.bf16 %v8029_v52  ;;  %v8030_v23 = vunpack.i.l.bf16 %v8029_v52 }
  0xf1   : > { %8318 = vrot.lane.b32.xlu0 %v9589_v35, %s9144_s24  ;;  %v8035_v15 = vunpack.i.l.bf16 %v8034_v51 }
  0xf2   : > { %8323 = vrot.lane.b32.xlu1 %v9660_v28, %s9144_s24  ;;  %v2020_v41 = vsel %vm2015_vm7, %v1987_v31, %v8030_v23  ;;  %v2021_v43 = vsel %vm2015_vm7, %v1988_v32, %v8031_v22  ;;  %v9757_v32 = vpack.i.bf16 %v885_v25, %v884_v24 }
  0xf3   : > { %v9678_v54 = vpop.permute.xlu0 %8038  ;;  %v2022_v37 = vsel %vm2015_vm7, %v1989_v1, %v8035_v15 }
  0xf4   : > { %v9676_v53 = vpop.permute.xlu1 %8043  ;;  %v8041_v39 = vunpack.i.h.bf16 %v9678_v54  ;;  %v8040_v40 = vunpack.i.l.bf16 %v9678_v54 }
  0xf5   : > { %8328 = vrot.lane.b32.xlu0 %v9585_v42, %s9135_s21  ;;  %v8036_v42 = vunpack.i.h.bf16 %v8034_v51  ;;  %v8046_v33 = vunpack.i.h.bf16 %v9676_v53  ;;  %v8045_v34 = vunpack.i.l.bf16 %v9676_v53 }
  0xf6   : > { %8333 = vrot.lane.b32.xlu1 %v9642_v46, %s9135_s21  ;;  %v2053_v57 = vsel %vm2048_vm8, %v2020_v41, %v8040_v40  ;;  %v2054_v58 = vsel %vm2048_vm8, %v2021_v43, %v8041_v39  ;;  %v759_v41 = vld [vmem:[#allocation2 + $0x150] sm:$0xff]  ;;  %v760_v43 = vld [vmem:[#allocation2 + $0x158] sm:$0xff] }
  0xf7   : > { %v8049_v13 = vpop.permute.xlu0 %8048  ;;  %v2023_v38 = vsel %vm2015_vm7, %v1990_v29, %v8036_v42  ;;  %v2055_v52 = vsel %vm2048_vm8, %v2022_v37, %v8045_v34 }
  0xf8   : > { %v8054_v10 = vpop.permute.xlu1 %8053  ;;  %v8051_v6 = vunpack.i.h.bf16 %v8049_v13  ;;  %v8050_v47 = vunpack.i.l.bf16 %v8049_v13  ;;  %v2056_v53 = vsel %vm2048_vm8, %v2023_v38, %v8046_v33  ;;  %v917_v33 = vld [vmem:[#allocation2 + $0x142] sm:$0xff] }
  0xf9   : > { %8338 = vrot.lane.b32.xlu0 %v9589_v35, %s9136_s26  ;;  %v8056_v36 = vunpack.i.h.bf16 %v8054_v10  ;;  %v8055_v44 = vunpack.i.l.bf16 %v8054_v10 }
  0xfa   : > { %8343 = vrot.lane.b32.xlu1 %v9660_v28, %s9136_s26  ;;  %v2086_v4 = vsel %vm2081_vm9, %v2053_v57, %v8050_v47  ;;  %v2087_v5 = vsel %vm2081_vm9, %v2054_v58, %v8051_v6  ;;  %v823_v6 = vld [vmem:[#allocation2 + $0x152] sm:$0xff]  ;;  %v645_v58 = vld [vmem:[#allocation2 + $0x60] sm:$0xff] }
  0xfb   : > { %v8059_v35 = vpop.permute.xlu0 %8058  ;;  %v2089_v63 = vsel %vm2081_vm9, %v2056_v53, %v8056_v36  ;;  %v791_v36 = vld [vmem:[#allocation2 + $0x151] sm:$0xff] }
  0xfc   : > { %v8064_v30 = vpop.permute.xlu1 %8063  ;;  %v8061_v54 = vunpack.i.h.bf16 %v8059_v35  ;;  %v8060_v55 = vunpack.i.l.bf16 %v8059_v35 }
  0xfd   : > { %8348 = vrot.lane.b32.xlu0 %v9591_v45, %s9137_s15  ;;  %v8066_v48 = vunpack.i.h.bf16 %v8064_v30  ;;  %v8065_v50 = vunpack.i.l.bf16 %v8064_v30  ;;  %v2088_v45 = vsel %vm2081_vm9, %v2055_v52, %v8055_v44  ;;  %v792_v44 = vld [vmem:[#allocation2 + $0x159] sm:$0xff]  ;;  %v857_v52 = vld [vmem:[#allocation2 + $0x170] sm:$0xff] }
  0xfe   : > { %8353 = vrot.lane.b32.xlu1 %v9690_v62, %s9137_s15  ;;  %v2119_v10 = vsel %vm2114_vm10, %v2086_v4, %v8060_v55  ;;  %v2120_v11 = vsel %vm2114_vm10, %v2087_v5, %v8061_v54 }
  0xff   : > { %v8069_v56 = vpop.permute.xlu0 %8068  ;;  %v2121_v7 = vsel %vm2114_vm10, %v2088_v45, %v8065_v50  ;;  %v2122_v8 = vsel %vm2114_vm10, %v2089_v63, %v8066_v48  ;;  %v824_v50 = vld [vmem:[#allocation2 + $0x15a] sm:$0xff] }
 0x100   : > { %v8074_v51 = vpop.permute.xlu1 %8073  ;;  %v8071_v2 = vunpack.i.h.bf16 %v8069_v56  ;;  %v8070_v3 = vunpack.i.l.bf16 %v8069_v56  ;;  %v9802_v5 = vpack.i.bf16 %v824_v50, %v823_v6 }
 0x101   : > { %v8076_v59 = vunpack.i.h.bf16 %v8074_v51  ;;  %v8075_v61 = vunpack.i.l.bf16 %v8074_v51  ;;  %8358 = vrot.lane.b32.xlu0 %v9642_v46, %s9138_s22  ;;  %v856_v51 = vld [vmem:[#allocation2 + $0x168] sm:$0xff] }
 0x102   : > { %8363 = vrot.lane.b32.xlu1 %v9692_v14, %s9138_s22  ;;  %v2152_v20 = vsel %vm2147_vm11, %v2119_v10, %v8070_v3  ;;  %v2153_v21 = vsel %vm2147_vm11, %v2120_v11, %v8071_v2  ;;  %v9796_v2 = vpack.i.bf16 %v760_v43, %v759_v41  ;;  %v9798_v3 = vpack.i.bf16 %v792_v44, %v791_v36  ;;  %v9013_v10 = vld [vmem:[#allocation2 + $0x78] sm:$0xff] }
 0x103   : > { %v8079_v42 = vpop.permute.xlu0 %8078  ;;  %v2154_v15 = vsel %vm2147_vm11, %v2121_v7, %v8075_v61  ;;  %v2155_v46 = vsel %vm2147_vm11, %v2122_v8, %v8076_v59  ;;  %v646_v59 = vld [vmem:[#allocation2 + $0x68] sm:$0xff]  ;;  %v9804_v7 = vpack.i.bf16 %v857_v52, %v856_v51  ;;  %v9012_v8 = vld [vmem:[#allocation2 + $0x80] sm:$0xff] }
 0x104   : > { %v8084_v9 = vpop.permute.xlu1 %8083  ;;  %v8081_v18 = vunpack.i.h.bf16 %v8079_v42  ;;  %v8080_v19 = vunpack.i.l.bf16 %v8079_v42 }
 0x105   : > { %v8086_v12 = vunpack.i.h.bf16 %v8084_v9  ;;  %v8085_v13 = vunpack.i.l.bf16 %v8084_v9  ;;  %8368 = vrot.lane.b32.xlu0 %v9660_v28, %s9139_s18  ;;  %v916_v28 = vld [vmem:[#allocation2 + $0x13a] sm:$0xff] }
 0x106   : > { %8373 = vrot.lane.b32.xlu1 %v9696_v16, %s9139_s18  ;;  %v2185_v27 = vsel %vm2180_vm12, %v2152_v20, %v8080_v19  ;;  %v2186_v1 = vsel %vm2180_vm12, %v2153_v21, %v8081_v18  ;;  %v9768_v37 = vpack.i.bf16 %v917_v33, %v916_v28 }
 0x107   : > { %v2187_v22 = vsel %vm2180_vm12, %v2154_v15, %v8085_v13  ;;  %v2188_v23 = vsel %vm2180_vm12, %v2155_v46, %v8086_v12  ;;  %v2215_v30 = vpack.c.bf16 %v2186_v1, %v2185_v27  ;;  %v9752_v31 = vpop.permute.xlu0 %8088 }
 0x108   : > { %v2216_v26 = vpack.c.bf16 %v2188_v23, %v2187_v22  ;;  %v9750_v29 = vpop.permute.xlu1 %8093  ;;  %v8091_v53 = vunpack.i.h.bf16 %v9752_v31  ;;  %v8090_v54 = vunpack.i.l.bf16 %v9752_v31 }
 0x109   : > { %8378 = vrot.lane.b32.xlu0 %v9690_v62, %s9141_s20  ;;  %7630 = vmatmul.mubr.msk.bf16.vlgmr.msra.gmra.mrb[4].mxu0 %vm2244_vm13, %v2215_v30  ;;  %v8096_v47 = vunpack.i.h.bf16 %v9750_v29  ;;  %v8095_v48 = vunpack.i.l.bf16 %v9750_v29 }
 0x10a   : > { %8383 = vrot.lane.b32.xlu1 %v9698_v17, %s9141_s20  ;;  %7638 = vmatmul.mubr.msk.bf16.vlgmr.msra.gmra.mrb[4].mxu1 %vm2244_vm13, %v2216_v26  ;;  %v1959_v42 = vsel %vm481_vm0, %v646_v59, %v8091_v53  ;;  %v1958_v15 = vsel %vm481_vm0, %v645_v58, %v8090_v54 }
 0x10b   : > { %7642 = vmatpush3.bf16.msra.mxu0 %v9652_v49  ;;  %7650 = vmatpush3.bf16.msra.mxu1 %v9652_v49  ;;  %v8099_v35 = vpop.permute.xlu0 %8098  ;;  %v1961_v9 = vsel %vm481_vm0, %v9012_v8, %v8096_v47  ;;  %v1960_v11 = vsel %vm481_vm0, %v9013_v10, %v8095_v48 }
 0x10c   : > { %v8104_v34 = vpop.permute.xlu1 %8103  ;;  %7643 = vmatprep.subr.bf16.mxu0 %v9134_v0  ;;  %7651 = vmatprep.subr.bf16.mxu1 %v9134_v0  ;;  %v8101_v61 = vunpack.i.h.bf16 %v8099_v35  ;;  %v8100_v45 = vunpack.i.l.bf16 %v8099_v35 }
 0x10d   : > { %7645 = vmatprep.mubr.msk.bf16.mxu0 %vm9142_vm5, %v9134_v0  ;;  %8388 = vrot.lane.b32.xlu0 %v9692_v14, %s9143_s19  ;;  %v8106_v55 = vunpack.i.h.bf16 %v8104_v34  ;;  %v8105_v56 = vunpack.i.l.bf16 %v8104_v34 }
 0x10e   : > { %8393 = vrot.lane.b32.xlu1 %v9757_v32, %s9143_s19  ;;  %7653 = vmatprep.mubr.msk.bf16.mxu1 %vm9142_vm5, %v9134_v0  ;;  %v1991_v20 = vsel %vm1982_vm6, %v1958_v15, %v8100_v45  ;;  %v1992_v21 = vsel %vm1982_vm6, %v1959_v42, %v8101_v61 }
 0x10f   : > { %7644 = vmatpush3.bf16.msra.mxu0 %v9471_v60  ;;  %7652 = vmatpush3.bf16.msra.mxu1 %v9471_v60  ;;  %v8109_v38 = vpop.permute.xlu0 %8108  ;;  %v1993_v46 = vsel %vm1982_vm6, %v1960_v11, %v8105_v56  ;;  %v1994_v18 = vsel %vm1982_vm6, %v1961_v9, %v8106_v55 }
 0x110   : > { %v8114_v62 = vpop.permute.xlu1 %8113  ;;  %7657 = vmatprep.subr.bf16.mxu0 %v9134_v0  ;;  %7665 = vmatprep.subr.bf16.mxu1 %v9134_v0  ;;  %v8111_v12 = vunpack.i.h.bf16 %v8109_v38  ;;  %v8110_v13 = vunpack.i.l.bf16 %v8109_v38 }
 0x111   : > { %8398 = vrot.lane.b32.xlu0 %v9696_v16, %s9144_s24  ;;  %v8115_v4 = vunpack.i.l.bf16 %v8114_v62 }
 0x112   : > { %8403 = vrot.lane.b32.xlu1 %v9768_v37, %s9144_s24  ;;  %v2024_v1 = vsel %vm2015_vm7, %v1991_v20, %v8110_v13  ;;  %v2025_v29 = vsel %vm2015_vm7, %v1992_v21, %v8111_v12  ;;  %v888_v12 = vld [vmem:[#allocation2 + $0x169] sm:$0xff]  ;;  %v889_v13 = vld [vmem:[#allocation2 + $0x171] sm:$0xff] }
 0x113   : > { %v9786_v40 = vpop.permute.xlu0 %8118  ;;  %v9863_v21 = vpack.i.bf16 %v889_v13, %v888_v12 }
 0x114   : > { %v9784_v39 = vpop.permute.xlu1 %8123  ;;  %v8121_v26 = vunpack.i.h.bf16 %v9786_v40  ;;  %v8120_v27 = vunpack.i.l.bf16 %v9786_v40 }
 0x115   : > { %8408 = vrot.lane.b32.xlu0 %v9692_v14, %s9135_s21  ;;  %v8116_v14 = vunpack.i.h.bf16 %v8114_v62  ;;  %v8126_v22 = vunpack.i.h.bf16 %v9784_v39  ;;  %v8125_v23 = vunpack.i.l.bf16 %v9784_v39 }
 0x116   : > { %8413 = vrot.lane.b32.xlu1 %v9757_v32, %s9135_s21  ;;  %v2057_v36 = vsel %vm2048_vm8, %v2024_v1, %v8120_v27  ;;  %v2058_v44 = vsel %vm2048_vm8, %v2025_v29, %v8121_v26  ;;  %v763_v1 = vld [vmem:[#allocation2 + $0x180] sm:$0xff]  ;;  %v764_v29 = vld [vmem:[#allocation2 + $0x188] sm:$0xff] }
 0x117   : > { %v8129_v63 = vpop.permute.xlu0 %8128  ;;  %v2027_v25 = vsel %vm2015_vm7, %v1994_v18, %v8116_v14 }
 0x118   : > { %v8134_v57 = vpop.permute.xlu1 %8133  ;;  %v8131_v28 = vunpack.i.h.bf16 %v8129_v63  ;;  %v8130_v33 = vunpack.i.l.bf16 %v8129_v63  ;;  %v2060_v39 = vsel %vm2048_vm8, %v2027_v25, %v8126_v22  ;;  %v921_v22 = vld [vmem:[#allocation2 + $0x172] sm:$0xff] }
 0x119   : > { %8418 = vrot.lane.b32.xlu0 %v9696_v16, %s9136_s26  ;;  %v2026_v16 = vsel %vm2015_vm7, %v1993_v46, %v8115_v4  ;;  %v8136_v30 = vunpack.i.h.bf16 %v8134_v57  ;;  %v8135_v31 = vunpack.i.l.bf16 %v8134_v57 }
 0x11a   : > { %8423 = vrot.lane.b32.xlu1 %v9768_v37, %s9136_s26  ;;  %v2059_v38 = vsel %vm2048_vm8, %v2026_v16, %v8125_v23  ;;  %v2090_v52 = vsel %vm2081_vm9, %v2057_v36, %v8130_v33  ;;  %v2091_v53 = vsel %vm2081_vm9, %v2058_v44, %v8131_v28  ;;  %v827_v28 = vld [vmem:[#allocation2 + $0x182] sm:$0xff] }
 0x11b   : > { %v8139_v24 = vpop.permute.xlu0 %8138  ;;  %v2093_v48 = vsel %vm2081_vm9, %v2060_v39, %v8136_v30  ;;  %v795_v30 = vld [vmem:[#allocation2 + $0x181] sm:$0xff] }
 0x11c   : > { %v8144_v19 = vpop.permute.xlu1 %8143  ;;  %v8141_v40 = vunpack.i.h.bf16 %v8139_v24  ;;  %v8140_v41 = vunpack.i.l.bf16 %v8139_v24  ;;  %v9903_v39 = vld [vmem:[#allocation2 + $0x1a0] sm:$0xff] }
 0x11d   : > { %8428 = vrot.lane.b32.xlu0 %v9698_v17, %s9137_s15  ;;  %v8146_v34 = vunpack.i.h.bf16 %v8144_v19  ;;  %v8145_v35 = vunpack.i.l.bf16 %v8144_v19  ;;  %v2092_v17 = vsel %vm2081_vm9, %v2059_v38, %v8135_v31  ;;  %v796_v31 = vld [vmem:[#allocation2 + $0x189] sm:$0xff]  ;;  %v9901_v38 = vld [vmem:[#allocation2 + $0x198] sm:$0xff] }
 0x11e   : > { %8433 = vrot.lane.b32.xlu1 %v9796_v2, %s9137_s15  ;;  %v2123_v57 = vsel %vm2114_vm10, %v2090_v52, %v8140_v41  ;;  %v2124_v58 = vsel %vm2114_vm10, %v2091_v53, %v8141_v40  ;;  %v651_v40 = vld [vmem:[#allocation2 + $0xa8] sm:$0xff]  ;;  %v652_v41 = vld [vmem:[#allocation2 + $0xb0] sm:$0xff]  ;;  %v9906_v53 = vpack.i.bf16 %v764_v29, %v763_v1 }
 0x11f   : > { %v8149_v43 = vpop.permute.xlu0 %8148  ;;  %v2125_v54 = vsel %vm2114_vm10, %v2092_v17, %v8145_v35  ;;  %v2126_v55 = vsel %vm2114_vm10, %v2093_v48, %v8146_v34  ;;  %v650_v48 = vld [vmem:[#allocation2 + $0x98] sm:$0xff] }
 0x120   : > { %v8154_v62 = vpop.permute.xlu1 %8153  ;;  %v8151_v50 = vunpack.i.h.bf16 %v8149_v43  ;;  %v8150_v51 = vunpack.i.l.bf16 %v8149_v43  ;;  %v649_v43 = vld [vmem:[#allocation2 + $0x90] sm:$0xff] }
 0x121   : > { %v8156_v6 = vunpack.i.h.bf16 %v8154_v62  ;;  %v8155_v47 = vunpack.i.l.bf16 %v8154_v62  ;;  %8438 = vrot.lane.b32.xlu0 %v9757_v32, %s9138_s22  ;;  %v828_v62 = vld [vmem:[#allocation2 + $0x18a] sm:$0xff] }
 0x122   : > { %8443 = vrot.lane.b32.xlu1 %v9798_v3, %s9138_s22  ;;  %v2156_v8 = vsel %vm2147_vm11, %v2123_v57, %v8150_v51  ;;  %v2157_v9 = vsel %vm2147_vm11, %v2124_v58, %v8151_v50  ;;  %v8542_v57 = vpack.i.bf16 %v9903_v39, %v9901_v38 }
 0x123   : > { %v8159_v45 = vpop.permute.xlu0 %8158  ;;  %v2158_v63 = vsel %vm2147_vm11, %v2125_v54, %v8155_v47  ;;  %v2159_v32 = vsel %vm2147_vm11, %v2126_v55, %v8156_v6 }
 0x124   : > { %v8164_v56 = vpop.permute.xlu1 %8163  ;;  %v8161_v14 = vunpack.i.h.bf16 %v8159_v45  ;;  %v8160_v4 = vunpack.i.l.bf16 %v8159_v45 }
 0x125   : > { %v8166_v59 = vunpack.i.h.bf16 %v8164_v56  ;;  %v8165_v61 = vunpack.i.l.bf16 %v8164_v56  ;;  %8448 = vrot.lane.b32.xlu0 %v9768_v37, %s9139_s18  ;;  %v920_v37 = vld [vmem:[#allocation2 + $0x16a] sm:$0xff]  ;;  %v9912_v56 = vpack.i.bf16 %v828_v62, %v827_v28 }
 0x126   : > { %8453 = vrot.lane.b32.xlu1 %v9802_v5, %s9139_s18  ;;  %v2189_v15 = vsel %vm2180_vm12, %v2156_v8, %v8160_v4  ;;  %v2190_v46 = vsel %vm2180_vm12, %v2157_v9, %v8161_v14  ;;  %v9874_v16 = vpack.i.bf16 %v921_v22, %v920_v37 }
 0x127   : > { %v2191_v10 = vsel %vm2180_vm12, %v2158_v63, %v8165_v61  ;;  %v2192_v11 = vsel %vm2180_vm12, %v2159_v32, %v8166_v59  ;;  %v2217_v19 = vpack.c.bf16 %v2190_v46, %v2189_v15  ;;  %v9858_v20 = vpop.permute.xlu0 %8168 }
 0x128   : > { %v2218_v42 = vpack.c.bf16 %v2192_v11, %v2191_v10  ;;  %v9856_v18 = vpop.permute.xlu1 %8173  ;;  %v8170_v35 = vunpack.i.l.bf16 %v9858_v20  ;;  %v8171_v36 = vunpack.i.h.bf16 %v9858_v20 }
 0x129   : > { %8458 = vrot.lane.b32.xlu0 %v9796_v2, %s9141_s20  ;;  %7646 = vmatmul.mubr.msk.bf16.vlgmr.msra.gmra.mrb[8].mxu0 %vm2244_vm13, %v2217_v19  ;;  %v8176_v33 = vunpack.i.h.bf16 %v9856_v18  ;;  %v8175_v34 = vunpack.i.l.bf16 %v9856_v18 }
 0x12a   : > { %8463 = vrot.lane.b32.xlu1 %v9804_v7, %s9141_s20  ;;  %7654 = vmatmul.mubr.msk.bf16.vlgmr.msra.gmra.mrb[8].mxu1 %vm2244_vm13, %v2218_v42  ;;  %v1962_v61 = vsel %vm481_vm0, %v649_v43, %v8170_v35  ;;  %v1963_v63 = vsel %vm481_vm0, %v650_v48, %v8171_v36 }
 0x12b   : > { %7658 = vmatpush3.bf16.msra.mxu0 %v9652_v49  ;;  %7666 = vmatpush3.bf16.msra.mxu1 %v9652_v49  ;;  %v8179_v24 = vpop.permute.xlu0 %8178  ;;  %v1965_v58 = vsel %vm481_vm0, %v652_v41, %v8176_v33  ;;  %v1964_v59 = vsel %vm481_vm0, %v651_v40, %v8175_v34 }
 0x12c   : > { %v8184_v23 = vpop.permute.xlu1 %8183  ;;  %7659 = vmatprep.subr.bf16.mxu0 %v9134_v0  ;;  %7667 = vmatprep.subr.bf16.mxu1 %v9134_v0  ;;  %v8180_v47 = vunpack.i.l.bf16 %v8179_v24  ;;  %v8181_v50 = vunpack.i.h.bf16 %v8179_v24 }
 0x12d   : > { %7661 = vmatprep.mubr.msk.bf16.mxu0 %vm9142_vm5, %v9134_v0  ;;  %8468 = vrot.lane.b32.xlu0 %v9798_v3, %s9143_s19  ;;  %v8186_v44 = vunpack.i.h.bf16 %v8184_v23  ;;  %v8185_v6 = vunpack.i.l.bf16 %v8184_v23 }
 0x12e   : > { %8473 = vrot.lane.b32.xlu1 %v9863_v21, %s9143_s19  ;;  %7669 = vmatprep.mubr.msk.bf16.mxu1 %vm9142_vm5, %v9134_v0  ;;  %v1995_v4 = vsel %vm1982_vm6, %v1962_v61, %v8180_v47  ;;  %v1996_v9 = vsel %vm1982_vm6, %v1963_v63, %v8181_v50  ;;  %v893_v63 = vld [vmem:[#allocation2 + $0x1a1] sm:$0xff] }
 0x12f   : > { %7660 = vmatpush3.bf16.msra.mxu0 %v9471_v60  ;;  %7668 = vmatpush3.bf16.msra.mxu1 %v9471_v60  ;;  %v8189_v25 = vpop.permute.xlu0 %8188  ;;  %v1997_v32 = vsel %vm1982_vm6, %v1964_v59, %v8185_v6  ;;  %v1998_v14 = vsel %vm1982_vm6, %v1965_v58, %v8186_v44 }
 0x130   : > { %v8194_v2 = vpop.permute.xlu1 %8193  ;;  %7673 = vmatprep.subr.bf16.mxu0 %v9134_v0  ;;  %7681 = vmatprep.subr.bf16.mxu1 %v9134_v0  ;;  %v8190_v55 = vunpack.i.l.bf16 %v8189_v25  ;;  %v8191_v45 = vunpack.i.h.bf16 %v8189_v25 }
 0x131   : > { %8478 = vrot.lane.b32.xlu0 %v9802_v5, %s9144_s24  ;;  %v8195_v51 = vunpack.i.l.bf16 %v8194_v2  ;;  %v8196_v54 = vunpack.i.h.bf16 %v8194_v2 }
 0x132   : > { %8483 = vrot.lane.b32.xlu1 %v9874_v16, %s9144_s24  ;;  %v2028_v42 = vsel %vm2015_vm7, %v1995_v4, %v8190_v55  ;;  %v2029_v18 = vsel %vm2015_vm7, %v1996_v9, %v8191_v45  ;;  %v892_v45 = vld [vmem:[#allocation2 + $0x199] sm:$0xff] }
 0x133   : > { %v9892_v27 = vpop.permute.xlu0 %8198  ;;  %v2030_v10 = vsel %vm2015_vm7, %v1997_v32, %v8195_v51 }
 0x134   : > { %v9890_v26 = vpop.permute.xlu1 %8203  ;;  %v8201_v15 = vunpack.i.h.bf16 %v9892_v27  ;;  %v8200_v46 = vunpack.i.l.bf16 %v9892_v27 }
 0x135   : > { %8488 = vrot.lane.b32.xlu0 %v9798_v3, %s9135_s21  ;;  %v9908_v3 = vpack.i.bf16 %v796_v31, %v795_v30  ;;  %v8206_v11 = vunpack.i.h.bf16 %v9890_v26  ;;  %v8205_v12 = vunpack.i.l.bf16 %v9890_v26 }
 0x136   : > { %8493 = vrot.lane.b32.xlu1 %v9863_v21, %s9135_s21  ;;  %v2062_v30 = vsel %vm2048_vm8, %v2029_v18, %v8201_v15  ;;  %v656_v15 = vld [vmem:[#allocation2 + $0xe0] sm:$0xff]  ;;  %s7117_s21 = sshll.u32 %s9245_s17, 4  ;;  %s9148_s17 = smov [#allocation11]  }
 0x137   : > { %v8209_v52 = vpop.permute.xlu0 %8208  ;;  %v2063_v25 = vsel %vm2048_vm8, %v2030_v10, %v8205_v12  ;;  %v925_v12 = vld [vmem:[#allocation2 + $0x1a2] sm:$0xff]  ;;  %s9067_s28 = sshll.u32 %s9148_s17, 4  ;;  %s9068_s28 = int_to_ptr.vmem [resolvable:$false] %s9067_s28 }
 0x138   : > { %v8214_v17 = vpop.permute.xlu1 %8213  ;;  %v8211_v37 = vunpack.i.h.bf16 %v8209_v52  ;;  %v8210_v22 = vunpack.i.l.bf16 %v8209_v52  ;;  %s9069_s25 = scalar_lea.vmem %s9068_s28, 32 }
 0x139   : > { %8498 = vrot.lane.b32.xlu0 %v9802_v5, %s9136_s26  ;;  %v2031_v5 = vsel %vm2015_vm7, %v1998_v14, %v8196_v54  ;;  %v8216_v19 = vunpack.i.h.bf16 %v8214_v17  ;;  %v8215_v20 = vunpack.i.l.bf16 %v8214_v17 }
 0x13a   : > { %8503 = vrot.lane.b32.xlu1 %v9874_v16, %s9136_s26  ;;  %v2064_v26 = vsel %vm2048_vm8, %v2031_v5, %v8206_v11  ;;  %v2095_v41 = vsel %vm2081_vm9, %v2062_v30, %v8211_v37  ;;  %v924_v11 = vld [vmem:[#allocation2 + $0x19a] sm:$0xff]  ;;  %s9146_s26 = smov 96  }
 0x13b   : > { %v8219_v13 = vpop.permute.xlu0 %8218  ;;  %v2096_v33 = vsel %vm2081_vm9, %v2063_v25, %v8215_v20  ;;  %v2097_v34 = vsel %vm2081_vm9, %v2064_v26, %v8216_v19  ;;  %v8562_v38 = vpack.i.bf16 %v925_v12, %v924_v11 }
 0x13c   : > { %v8224_v8 = vpop.permute.xlu1 %8223  ;;  %v8221_v27 = vunpack.i.h.bf16 %v8219_v13  ;;  %v8220_v1 = vunpack.i.l.bf16 %v8219_v13 }
 0x13d   : > { %8508 = vrot.lane.b32.xlu0 %v9804_v7, %s9137_s15  ;;  %v8226_v23 = vunpack.i.h.bf16 %v8224_v8  ;;  %v8225_v24 = vunpack.i.l.bf16 %v8224_v8  ;;  %v2061_v7 = vsel %vm2048_vm8, %v2028_v42, %v8200_v46  ;;  %v655_v42 = vld [vmem:[#allocation2 + $0xd8] sm:$0xff] }
 0x13e   : > { %8513 = vrot.lane.b32.xlu1 %v9906_v53, %s9137_s15  ;;  %v2094_v40 = vsel %vm2081_vm9, %v2061_v7, %v8210_v22  ;;  %v2128_v47 = vsel %vm2114_vm10, %v2095_v41, %v8221_v27  ;;  %v653_v22 = vld [vmem:[#allocation2 + $0xc0] sm:$0xff]  ;;  %s9147_s15 = smov 64  }
 0x13f   : > { %v8229_v29 = vpop.permute.xlu0 %8228  ;;  %v2129_v43 = vsel %vm2114_vm10, %v2096_v33, %v8225_v24  ;;  %v2130_v36 = vsel %vm2114_vm10, %v2097_v34, %v8226_v23  ;;  %v2127_v6 = vsel %vm2114_vm10, %v2094_v40, %v8220_v1  ;;  %v654_v23 = vld [vmem:[#allocation2 + $0xc8] sm:$0xff] }
 0x140   : > { %v8234_v2 = vpop.permute.xlu1 %8233  ;;  %v8231_v35 = vunpack.i.h.bf16 %v8229_v29  ;;  %v8230_v62 = vunpack.i.l.bf16 %v8229_v29 }
 0x141   : > { %v8236_v31 = vunpack.i.h.bf16 %v8234_v2  ;;  %v8235_v28 = vunpack.i.l.bf16 %v8234_v2  ;;  %8518 = vrot.lane.b32.xlu0 %v9863_v21, %s9138_s22 }
 0x142   : > { %8523 = vrot.lane.b32.xlu1 %v9908_v3, %s9138_s22  ;;  %v2160_v55 = vsel %vm2147_vm11, %v2127_v6, %v8230_v62  ;;  %v2161_v58 = vsel %vm2147_vm11, %v2128_v47, %v8231_v35 }
 0x143   : > { %v8239_v50 = vpop.permute.xlu0 %8238  ;;  %v2162_v51 = vsel %vm2147_vm11, %v2129_v43, %v8235_v28  ;;  %v2163_v21 = vsel %vm2147_vm11, %v2130_v36, %v8236_v31 }
 0x144   : > { %v8244_v44 = vpop.permute.xlu1 %8243  ;;  %v8241_v52 = vunpack.i.h.bf16 %v8239_v50  ;;  %v8240_v54 = vunpack.i.l.bf16 %v8239_v50 }
 0x145   : > { %v8246_v17 = vunpack.i.h.bf16 %v8244_v44  ;;  %v8245_v48 = vunpack.i.l.bf16 %v8244_v44  ;;  %8528 = vrot.lane.b32.xlu0 %v9874_v16, %s9139_s18  ;;  %v8552_v16 = vpack.i.bf16 %v893_v63, %v892_v45 }
 0x146   : > { %8533 = vrot.lane.b32.xlu1 %v9912_v56, %s9139_s18  ;;  %v2193_v14 = vsel %vm2180_vm12, %v2160_v55, %v8240_v54  ;;  %v2194_v4 = vsel %vm2180_vm12, %v2161_v58, %v8241_v52  ;;  %s11426_s18 = scalar_lea.hbm %s11482_s14, %s7117_s21 }
 0x147   : > { %v2195_v59 = vsel %vm2180_vm12, %v2162_v51, %v8245_v48  ;;  %v2196_v61 = vsel %vm2180_vm12, %v2163_v21, %v8246_v17  ;;  %v2219_v9 = vpack.c.bf16 %v2194_v4, %v2193_v14  ;;  %v9972_v10 = vpop.permute.xlu0 %8248 }
 0x148   : > { %v2220_v32 = vpack.c.bf16 %v2196_v61, %v2195_v59  ;;  %v9970_v8 = vpop.permute.xlu1 %8253  ;;  %v8251_v46 = vunpack.i.h.bf16 %v9972_v10  ;;  %v8250_v18 = vunpack.i.l.bf16 %v9972_v10 }
 0x149   : > { %8538 = vrot.lane.b32.xlu0 %v9906_v53, %s9141_s20  ;;  %7662 = vmatmul.mubr.msk.bf16.vlgmr.msra.gmra.mrb[12].mxu0 %vm2244_vm13, %v2219_v9 }
 0x14a   : > { %8543 = vrot.lane.b32.xlu1 %v8542_v57, %s9141_s20  ;;  %7670 = vmatmul.mubr.msk.bf16.vlgmr.msra.gmra.mrb[12].mxu1 %vm2244_vm13, %v2220_v32  ;;  %v8255_v57 = vunpack.i.l.bf16 %v9970_v8  ;;  %v1967_v31 = vsel %vm481_vm0, %v654_v23, %v8251_v46  ;;  %v1966_v28 = vsel %vm481_vm0, %v653_v22, %v8250_v18 }
 0x14b   : > { %7674 = vmatpush3.bf16.msra.mxu0 %v9652_v49  ;;  %7682 = vmatpush3.bf16.msra.mxu1 %v9652_v49  ;;  %v9986_v5 = vpop.permute.xlu0 %8258 }
 0x14c   : > { %v9982_v13 = vpop.permute.xlu1 %8263  ;;  %7675 = vmatprep.subr.bf16.mxu0 %v9134_v0  ;;  %7683 = vmatprep.subr.bf16.mxu1 %v9134_v0  ;;  %v8261_v24 = vunpack.i.h.bf16 %v9986_v5  ;;  %v8260_v2 = vunpack.i.l.bf16 %v9986_v5  ;;  %v1968_v29 = vsel %vm481_vm0, %v655_v42, %v8255_v57 }
 0x14d   : > { %7677 = vmatprep.mubr.msk.bf16.mxu0 %vm9142_vm5, %v9134_v0  ;;  %8548 = vrot.lane.b32.xlu0 %v9908_v3, %s9143_s19  ;;  %v8266_v19 = vunpack.i.h.bf16 %v9982_v13  ;;  %v8265_v20 = vunpack.i.l.bf16 %v9982_v13 }
 0x14e   : > { %8553 = vrot.lane.b32.xlu1 %v8552_v16, %s9143_s19  ;;  %7685 = vmatprep.mubr.msk.bf16.mxu1 %vm9142_vm5, %v9134_v0  ;;  %v1999_v62 = vsel %vm1982_vm6, %v1966_v28, %v8260_v2  ;;  %v2000_v40 = vsel %vm1982_vm6, %v1967_v31, %v8261_v24  ;;  %s9145_s19 = smov 32  }
 0x14f   : > { %7676 = vmatpush3.bf16.msra.mxu0 %v9471_v60  ;;  %7684 = vmatpush3.bf16.msra.mxu1 %v9471_v60  ;;  %v10001_v49 = vpop.permute.xlu0 %8268  ;;  %v2001_v33 = vsel %vm1982_vm6, %v1968_v29, %v8265_v20 }
 0x150   : > { %v9997_v39 = vpop.permute.xlu1 %8273  ;;  %7689 = vmatprep.subr.bf16.mxu0 %v9134_v0  ;;  %7697 = vmatprep.subr.bf16.mxu1 %v9134_v0  ;;  %v8271_v7 = vunpack.i.h.bf16 %v10001_v49  ;;  %v8270_v30 = vunpack.i.l.bf16 %v10001_v49 }
 0x151   : > { %8558 = vrot.lane.b32.xlu0 %v9912_v56, %s9144_s24  ;;  %v8256_v56 = vunpack.i.h.bf16 %v9970_v8  ;;  %v8276_v26 = vunpack.i.h.bf16 %v9997_v39  ;;  %v8275_v27 = vunpack.i.l.bf16 %v9997_v39 }
 0x152   : > { %8563 = vrot.lane.b32.xlu1 %v8562_v38, %s9144_s24  ;;  %v2032_v48 = vsel %vm2015_vm7, %v1999_v62, %v8270_v30  ;;  %v2033_v50 = vsel %vm2015_vm7, %v2000_v40, %v8271_v7  ;;  %v10103_v7 = vld [vmem:[%s11469_s1] sm:$0xff]   ;;  %s473_s24 = sand.u32 1, %s9121_s30  }
 0x153   : > { %v8279_v3 = vpop.permute.xlu0 %8278  ;;  %v1969_v1 = vsel %vm481_vm0, %v656_v15, %v8256_v56  ;;  %v2034_v44 = vsel %vm2015_vm7, %v2001_v33, %v8275_v27  ;;  %s6758_s20 = scalar_lea.sflag [#allocation10], %s473_s24 }
 0x154   : > { %v10008_v53 = vpop.permute.xlu1 %8283  ;;  %v2002_v34 = vsel %vm1982_vm6, %v1969_v1, %v8266_v19  ;;  %v8281_v47 = vunpack.i.h.bf16 %v8279_v3  ;;  %v8280_v17 = vunpack.i.l.bf16 %v8279_v3 }
 0x155   : > { %v8286_v41 = vunpack.i.h.bf16 %v10008_v53  ;;  %v8285_v43 = vunpack.i.l.bf16 %v10008_v53  ;;  %v2035_v6 = vsel %vm2015_vm7, %v2002_v34, %v8276_v26 }
 0x156   : > { %v2065_v4 = vsel %vm2048_vm8, %v2032_v48, %v8280_v17  ;;  %v2066_v8 = vsel %vm2048_vm8, %v2033_v50, %v8281_v47  ;;  %v657_v48 = vld [vmem:[#allocation2 + $0xf0] sm:$0xff]  ;;  %v658_v50 = vld [vmem:[#allocation2 + $0xf8] sm:$0xff] }
 0x157   : > { %v8289_v25 = vpop.permute.xlu0 %8288  ;;  %v2067_v61 = vsel %vm2048_vm8, %v2034_v44, %v8285_v43  ;;  %v2068_v45 = vsel %vm2048_vm8, %v2035_v6, %v8286_v41  ;;  %v659_v41 = vld [vmem:[#allocation2 + $0x108] sm:$0xff]  ;;  %v660_v43 = vld [vmem:[#allocation2 + $0x110] sm:$0xff] }
 0x158   : > { %v8294_v37 = vpop.permute.xlu1 %8293  ;;  %v8291_v52 = vunpack.i.h.bf16 %v8289_v25  ;;  %v8290_v54 = vunpack.i.l.bf16 %v8289_v25 }
 0x159   : > { %v8296_v51 = vunpack.i.h.bf16 %v8294_v37  ;;  %v8295_v21 = vunpack.i.l.bf16 %v8294_v37 }
 0x15a   : > { %v2098_v5 = vsel %vm2081_vm9, %v2065_v4, %v8290_v54  ;;  %v2099_v38 = vsel %vm2081_vm9, %v2066_v8, %v8291_v52 }
 0x15b   : > { %v8299_v36 = vpop.permute.xlu0 %8298  ;;  %v2100_v16 = vsel %vm2081_vm9, %v2067_v61, %v8295_v21  ;;  %v2101_v11 = vsel %vm2081_vm9, %v2068_v45, %v8296_v51 }
 0x15c   : > { %v8304_v35 = vpop.permute.xlu1 %8303  ;;  %v8301_v63 = vunpack.i.h.bf16 %v8299_v36  ;;  %v8300_v32 = vunpack.i.l.bf16 %v8299_v36 }
 0x15d   : > { %v8306_v55 = vunpack.i.h.bf16 %v8304_v35  ;;  %v8305_v58 = vunpack.i.l.bf16 %v8304_v35 }
 0x15e   : > { %v2131_v3 = vsel %vm2114_vm10, %v2098_v5, %v8300_v32  ;;  %v2132_v56 = vsel %vm2114_vm10, %v2099_v38, %v8301_v63 }
 0x15f   : > { %v8309_v14 = vpop.permute.xlu0 %8308  ;;  %v2133_v39 = vsel %vm2114_vm10, %v2100_v16, %v8305_v58  ;;  %v2134_v49 = vsel %vm2114_vm10, %v2101_v11, %v8306_v55 }
 0x160   : > { %v8314_v59 = vpop.permute.xlu1 %8313  ;;  %v8311_v12 = vunpack.i.h.bf16 %v8309_v14  ;;  %v8310_v13 = vunpack.i.l.bf16 %v8309_v14 }
 0x161   : > { %v8316_v9 = vunpack.i.h.bf16 %v8314_v59  ;;  %v8315_v10 = vunpack.i.l.bf16 %v8314_v59 }
 0x162   : > { %v2164_v37 = vsel %vm2147_vm11, %v2131_v3, %v8310_v13  ;;  %v2165_v22 = vsel %vm2147_vm11, %v2132_v56, %v8311_v12 }
 0x163   : > { %v8319_v15 = vpop.permute.xlu0 %8318  ;;  %v2166_v46 = vsel %vm2147_vm11, %v2133_v39, %v8315_v10  ;;  %v2167_v18 = vsel %vm2147_vm11, %v2134_v49, %v8316_v9 }
 0x164   : > { %v8324_v53 = vpop.permute.xlu1 %8323  ;;  %v8321_v19 = vunpack.i.h.bf16 %v8319_v15  ;;  %v8320_v20 = vunpack.i.l.bf16 %v8319_v15 }
 0x165   : > { %v8326_v57 = vunpack.i.h.bf16 %v8324_v53  ;;  %v8325_v42 = vunpack.i.l.bf16 %v8324_v53 }
 0x166   : > { %v2197_v25 = vsel %vm2180_vm12, %v2164_v37, %v8320_v20  ;;  %v2198_v26 = vsel %vm2180_vm12, %v2165_v22, %v8321_v19 }
 0x167   : > { %v2199_v23 = vsel %vm2180_vm12, %v2166_v46, %v8325_v42  ;;  %v2200_v24 = vsel %vm2180_vm12, %v2167_v18, %v8326_v57  ;;  %v2221_v1 = vpack.c.bf16 %v2198_v26, %v2197_v25  ;;  %v8329_v29 = vpop.permute.xlu0 %8328 }
 0x168   : > { %v2222_v2 = vpack.c.bf16 %v2200_v24, %v2199_v23  ;;  %v8334_v27 = vpop.permute.xlu1 %8333  ;;  %v8331_v36 = vunpack.i.h.bf16 %v8329_v29  ;;  %v8330_v44 = vunpack.i.l.bf16 %v8329_v29 }
 0x169   : > { %7678 = vmatmul.mubr.msk.bf16.vlgmr.msra.gmra.mrb[16].mxu0 %vm2244_vm13, %v2221_v1  ;;  %v8336_v62 = vunpack.i.h.bf16 %v8334_v27  ;;  %v8335_v40 = vunpack.i.l.bf16 %v8334_v27 }
 0x16a   : > { %7686 = vmatmul.mubr.msk.bf16.vlgmr.msra.gmra.mrb[16].mxu1 %vm2244_vm13, %v2222_v2  ;;  %7690 = vmatpush3.bf16.msra.mxu0 %v10103_v7  ;;  %v1971_v63 = vsel %vm481_vm0, %v658_v50, %v8331_v36  ;;  %v1970_v32 = vsel %vm481_vm0, %v657_v48, %v8330_v44 }
 0x16b   : > { %7698 = vmatpush3.bf16.msra.mxu1 %v10103_v7  ;;  %v8339_v31 = vpop.permute.xlu0 %8338  ;;  %7691 = vmatprep.subr.bf16.mxu0 %v9134_v0  ;;  %v1973_v58 = vsel %vm481_vm0, %v660_v43, %v8336_v62  ;;  %v1972_v59 = vsel %vm481_vm0, %v659_v41, %v8335_v40 }
 0x16c   : > { %v8344_v30 = vpop.permute.xlu1 %8343  ;;  %7699 = vmatprep.subr.bf16.mxu1 %v9134_v0  ;;  %7693 = vmatprep.mubr.msk.bf16.mxu0 %vm9142_vm5, %v9134_v0  ;;  %v8341_v51 = vunpack.i.h.bf16 %v8339_v31  ;;  %v8340_v21 = vunpack.i.l.bf16 %v8339_v31 }
 0x16d   : > { %7701 = vmatprep.mubr.msk.bf16.mxu1 %vm9142_vm5, %v9134_v0  ;;  %v8346_v6 = vunpack.i.h.bf16 %v8344_v30  ;;  %v8345_v47 = vunpack.i.l.bf16 %v8344_v30 }
 0x16e   : > { %7692 = vmatpush3.bf16.msra.mxu0 %v9471_v60  ;;  %v2003_v9 = vsel %vm1982_vm6, %v1970_v32, %v8340_v21  ;;  %v2004_v10 = vsel %vm1982_vm6, %v1971_v63, %v8341_v51 }
 0x16f   : > { %7700 = vmatpush3.bf16.msra.mxu1 %v9471_v60  ;;  %v8349_v33 = vpop.permute.xlu0 %8348  ;;  %7705 = vmatprep.subr.bf16.mxu0 %v9134_v0  ;;  %v2005_v14 = vsel %vm1982_vm6, %v1972_v59, %v8345_v47  ;;  %v2006_v4 = vsel %vm1982_vm6, %v1973_v58, %v8346_v6 }
 0x170   : > { %v8354_v28 = vpop.permute.xlu1 %8353  ;;  %7713 = vmatprep.subr.bf16.mxu1 %v9134_v0  ;;  %v8351_v61 = vunpack.i.h.bf16 %v8349_v33  ;;  %v8350_v45 = vunpack.i.l.bf16 %v8349_v33 }
 0x171   : > { %v8356_v54 = vunpack.i.h.bf16 %v8354_v28  ;;  %v8355_v55 = vunpack.i.l.bf16 %v8354_v28 }
 0x172   : > { %v2036_v49 = vsel %vm2015_vm7, %v2003_v9, %v8350_v45  ;;  %v2037_v53 = vsel %vm2015_vm7, %v2004_v10, %v8351_v61 }
 0x173   : > { %v8359_v35 = vpop.permute.xlu0 %8358  ;;  %v2038_v13 = vsel %vm2015_vm7, %v2005_v14, %v8355_v55  ;;  %v2039_v5 = vsel %vm2015_vm7, %v2006_v4, %v8356_v54 }
 0x174   : > { %v8364_v34 = vpop.permute.xlu1 %8363  ;;  %v8361_v38 = vunpack.i.h.bf16 %v8359_v35  ;;  %v8360_v39 = vunpack.i.l.bf16 %v8359_v35 }
 0x175   : > { %v8366_v16 = vunpack.i.h.bf16 %v8364_v34  ;;  %v8365_v11 = vunpack.i.l.bf16 %v8364_v34 }
 0x176   : > { %v2069_v24 = vsel %vm2048_vm8, %v2036_v49, %v8360_v39  ;;  %v2070_v2 = vsel %vm2048_vm8, %v2037_v53, %v8361_v38  ;;  %v661_v49 = vld [vmem:[#allocation2 + $0x120] sm:$0xff]  ;;  %v662_v53 = vld [vmem:[#allocation2 + $0x128] sm:$0xff] }
 0x177   : > { %v8369_v52 = vpop.permute.xlu0 %8368  ;;  %v2071_v19 = vsel %vm2048_vm8, %v2038_v13, %v8365_v11  ;;  %v2072_v20 = vsel %vm2048_vm8, %v2039_v5, %v8366_v16  ;;  %v663_v16 = vld [vmem:[#allocation2 + $0x138] sm:$0xff]  ;;  %v664_v11 = vld [vmem:[#allocation2 + $0x140] sm:$0xff] }
 0x178   : > { %v8374_v17 = vpop.permute.xlu1 %8373  ;;  %v8371_v57 = vunpack.i.h.bf16 %v8369_v52  ;;  %v8370_v42 = vunpack.i.l.bf16 %v8369_v52 }
 0x179   : > { %v8376_v3 = vunpack.i.h.bf16 %v8374_v17  ;;  %v8375_v56 = vunpack.i.l.bf16 %v8374_v17 }
 0x17a   : > { %v2102_v31 = vsel %vm2081_vm9, %v2069_v24, %v8370_v42  ;;  %v2103_v28 = vsel %vm2081_vm9, %v2070_v2, %v8371_v57 }
 0x17b   : > { %v8379_v12 = vpop.permute.xlu0 %8378  ;;  %v2104_v27 = vsel %vm2081_vm9, %v2071_v19, %v8375_v56  ;;  %v2105_v1 = vsel %vm2081_vm9, %v2072_v20, %v8376_v3 }
 0x17c   : > { %v8384_v8 = vpop.permute.xlu1 %8383  ;;  %v8381_v37 = vunpack.i.h.bf16 %v8379_v12  ;;  %v8380_v22 = vunpack.i.l.bf16 %v8379_v12 }
 0x17d   : > { %v8386_v15 = vunpack.i.h.bf16 %v8384_v8  ;;  %v8385_v46 = vunpack.i.l.bf16 %v8384_v8 }
 0x17e   : > { %v2135_v62 = vsel %vm2114_vm10, %v2102_v31, %v8380_v22  ;;  %v2136_v40 = vsel %vm2114_vm10, %v2103_v28, %v8381_v37 }
 0x17f   : > { %v8389_v23 = vpop.permute.xlu0 %8388  ;;  %v2137_v33 = vsel %vm2114_vm10, %v2104_v27, %v8385_v46  ;;  %v2138_v34 = vsel %vm2114_vm10, %v2105_v1, %v8386_v15 }
 0x180   : > { %v8394_v18 = vpop.permute.xlu1 %8393  ;;  %v8391_v29 = vunpack.i.h.bf16 %v8389_v23  ;;  %v8390_v30 = vunpack.i.l.bf16 %v8389_v23 }
 0x181   : > { %v8396_v25 = vunpack.i.h.bf16 %v8394_v18  ;;  %v8395_v26 = vunpack.i.l.bf16 %v8394_v18 }
 0x182   : > { %v2168_v48 = vsel %vm2147_vm11, %v2135_v62, %v8390_v30  ;;  %v2169_v50 = vsel %vm2147_vm11, %v2136_v40, %v8391_v29 }
 0x183   : > { %v8399_v36 = vpop.permute.xlu0 %8398  ;;  %v2170_v44 = vsel %vm2147_vm11, %v2137_v33, %v8395_v26  ;;  %v2171_v6 = vsel %vm2147_vm11, %v2138_v34, %v8396_v25 }
 0x184   : > { %v8404_v35 = vpop.permute.xlu1 %8403  ;;  %v8401_v47 = vunpack.i.h.bf16 %v8399_v36  ;;  %v8400_v17 = vunpack.i.l.bf16 %v8399_v36 }
 0x185   : > { %v8406_v41 = vunpack.i.h.bf16 %v8404_v35  ;;  %v8405_v43 = vunpack.i.l.bf16 %v8404_v35 }
 0x186   : > { %v2201_v54 = vsel %vm2180_vm12, %v2168_v48, %v8400_v17  ;;  %v2202_v55 = vsel %vm2180_vm12, %v2169_v50, %v8401_v47 }
 0x187   : > { %v2203_v51 = vsel %vm2180_vm12, %v2170_v44, %v8405_v43  ;;  %v2204_v21 = vsel %vm2180_vm12, %v2171_v6, %v8406_v41  ;;  %v2223_v59 = vpack.c.bf16 %v2202_v55, %v2201_v54  ;;  %v8409_v61 = vpop.permute.xlu0 %8408 }
 0x188   : > { %v2224_v52 = vpack.c.bf16 %v2204_v21, %v2203_v51  ;;  %v8414_v58 = vpop.permute.xlu1 %8413  ;;  %v8411_v12 = vunpack.i.h.bf16 %v8409_v61  ;;  %v8410_v13 = vunpack.i.l.bf16 %v8409_v61 }
 0x189   : > { %7694 = vmatmul.mubr.msk.bf16.vlgmr.msra.gmra.mrb[20].mxu0 %vm2244_vm13, %v2223_v59  ;;  %v8416_v9 = vunpack.i.h.bf16 %v8414_v58  ;;  %v8415_v10 = vunpack.i.l.bf16 %v8414_v58 }
 0x18a   : > { %7702 = vmatmul.mubr.msk.bf16.vlgmr.msra.gmra.mrb[20].mxu1 %vm2244_vm13, %v2224_v52  ;;  %7706 = vmatpush3.bf16.msra.mxu0 %v10103_v7  ;;  %v1975_v37 = vsel %vm481_vm0, %v662_v53, %v8411_v12  ;;  %v1974_v22 = vsel %vm481_vm0, %v661_v49, %v8410_v13 }
 0x18b   : > { %7714 = vmatpush3.bf16.msra.mxu1 %v10103_v7  ;;  %v8419_v63 = vpop.permute.xlu0 %8418  ;;  %7707 = vmatprep.subr.bf16.mxu0 %v9134_v0  ;;  %v1977_v46 = vsel %vm481_vm0, %v664_v11, %v8416_v9  ;;  %v1976_v18 = vsel %vm481_vm0, %v663_v16, %v8415_v10 }
 0x18c   : > { %v8424_v45 = vpop.permute.xlu1 %8423  ;;  %7715 = vmatprep.subr.bf16.mxu1 %v9134_v0  ;;  %7709 = vmatprep.mubr.msk.bf16.mxu0 %vm9142_vm5, %v9134_v0  ;;  %v8421_v3 = vunpack.i.h.bf16 %v8419_v63  ;;  %v8420_v56 = vunpack.i.l.bf16 %v8419_v63 }
 0x18d   : > { %7717 = vmatprep.mubr.msk.bf16.mxu1 %vm9142_vm5, %v9134_v0  ;;  %v8426_v5 = vunpack.i.h.bf16 %v8424_v45  ;;  %v8425_v38 = vunpack.i.l.bf16 %v8424_v45 }
 0x18e   : > { %7708 = vmatpush3.bf16.msra.mxu0 %v9471_v60  ;;  %v2007_v25 = vsel %vm1982_vm6, %v1974_v22, %v8420_v56  ;;  %v2008_v26 = vsel %vm1982_vm6, %v1975_v37, %v8421_v3 }
 0x18f   : > { %7716 = vmatpush3.bf16.msra.mxu1 %v9471_v60  ;;  %v8429_v14 = vpop.permute.xlu0 %8428  ;;  %7721 = vmatprep.subr.bf16.mxu0 %v9134_v0  ;;  %v2009_v23 = vsel %vm1982_vm6, %v1976_v18, %v8425_v38  ;;  %v2010_v24 = vsel %vm1982_vm6, %v1977_v46, %v8426_v5 }
 0x190   : > { %v8434_v32 = vpop.permute.xlu1 %8433  ;;  %7729 = vmatprep.subr.bf16.mxu1 %v9134_v0  ;;  %v8431_v19 = vunpack.i.h.bf16 %v8429_v14  ;;  %v8430_v20 = vunpack.i.l.bf16 %v8429_v14 }
 0x191   : > { %v8436_v42 = vunpack.i.h.bf16 %v8434_v32  ;;  %v8435_v15 = vunpack.i.l.bf16 %v8434_v32 }
 0x192   : > { %v2040_v34 = vsel %vm2015_vm7, %v2007_v25, %v8430_v20  ;;  %v2041_v35 = vsel %vm2015_vm7, %v2008_v26, %v8431_v19  ;;  %v666_v25 = vld [vmem:[#allocation2 + $0x158] sm:$0xff] }
 0x193   : > { %v8439_v8 = vpop.permute.xlu0 %8438  ;;  %v2042_v30 = vsel %vm2015_vm7, %v2009_v23, %v8435_v15  ;;  %v2043_v31 = vsel %vm2015_vm7, %v2010_v24, %v8436_v42 }
 0x194   : > { %v8444_v4 = vpop.permute.xlu1 %8443  ;;  %v8441_v28 = vunpack.i.h.bf16 %v8439_v8  ;;  %v8440_v33 = vunpack.i.l.bf16 %v8439_v8 }
 0x195   : > { %v8446_v27 = vunpack.i.h.bf16 %v8444_v4  ;;  %v8445_v1 = vunpack.i.l.bf16 %v8444_v4 }
 0x196   : > { %v2073_v21 = vsel %vm2048_vm8, %v2040_v34, %v8440_v33  ;;  %v2074_v52 = vsel %vm2048_vm8, %v2041_v35, %v8441_v28  ;;  %v9016_v33 = vld [vmem:[#allocation2 + $0x168] sm:$0xff] }
 0x197   : > { %v8449_v57 = vpop.permute.xlu0 %8448  ;;  %v2075_v47 = vsel %vm2048_vm8, %v2042_v30, %v8445_v1  ;;  %v2076_v17 = vsel %vm2048_vm8, %v2043_v31, %v8446_v27  ;;  %v665_v31 = vld [vmem:[#allocation2 + $0x150] sm:$0xff] }
 0x198   : > { %v8454_v39 = vpop.permute.xlu1 %8453  ;;  %v8451_v41 = vunpack.i.h.bf16 %v8449_v57  ;;  %v8450_v43 = vunpack.i.l.bf16 %v8449_v57 }
 0x199   : > { %v8456_v62 = vunpack.i.h.bf16 %v8454_v39  ;;  %v8455_v40 = vunpack.i.l.bf16 %v8454_v39 }
 0x19a   : > { %v2106_v63 = vsel %vm2081_vm9, %v2073_v21, %v8450_v43  ;;  %v2107_v32 = vsel %vm2081_vm9, %v2074_v52, %v8451_v41 }
 0x19b   : > { %v8459_v29 = vpop.permute.xlu0 %8458  ;;  %v2108_v58 = vsel %vm2081_vm9, %v2075_v47, %v8455_v40  ;;  %v2109_v59 = vsel %vm2081_vm9, %v2076_v17, %v8456_v62 }
 0x19c   : > { %v8464_v2 = vpop.permute.xlu1 %8463  ;;  %v8461_v48 = vunpack.i.h.bf16 %v8459_v29  ;;  %v8460_v50 = vunpack.i.l.bf16 %v8459_v29  ;;  %v9015_v29 = vld [vmem:[#allocation2 + $0x170] sm:$0xff] }
 0x19d   : > { %v8466_v36 = vunpack.i.h.bf16 %v8464_v2  ;;  %v8465_v44 = vunpack.i.l.bf16 %v8464_v2 }
 0x19e   : > { %v2139_v9 = vsel %vm2114_vm10, %v2106_v63, %v8460_v50  ;;  %v2140_v10 = vsel %vm2114_vm10, %v2107_v32, %v8461_v48 }
 0x19f   : > { %v8469_v51 = vpop.permute.xlu0 %8468  ;;  %v2141_v14 = vsel %vm2114_vm10, %v2108_v58, %v8465_v44  ;;  %v2142_v4 = vsel %vm2114_vm10, %v2109_v59, %v8466_v36 }
 0x1a0   : > { %v8474_v6 = vpop.permute.xlu1 %8473  ;;  %v8471_v61 = vunpack.i.h.bf16 %v8469_v51  ;;  %v8470_v45 = vunpack.i.l.bf16 %v8469_v51 }
 0x1a1   : > { %v8476_v54 = vunpack.i.h.bf16 %v8474_v6  ;;  %v8475_v55 = vunpack.i.l.bf16 %v8474_v6 }
 0x1a2   : > { %v2172_v49 = vsel %vm2147_vm11, %v2139_v9, %v8470_v45  ;;  %v2173_v53 = vsel %vm2147_vm11, %v2140_v10, %v8471_v61  ;;  %v10218_v45 = vld [vmem:[%s11470_s2] ss:$0 sm:$0xff] }
 0x1a3   : > { %v8479_v12 = vpop.permute.xlu0 %8478  ;;  %v2174_v13 = vsel %vm2147_vm11, %v2141_v14, %v8475_v55  ;;  %v2175_v5 = vsel %vm2147_vm11, %v2142_v4, %v8476_v54 }
 0x1a4   : > { %v8484_v8 = vpop.permute.xlu1 %8483  ;;  %v8481_v38 = vunpack.i.h.bf16 %v8479_v12  ;;  %v8480_v39 = vunpack.i.l.bf16 %v8479_v12 }
 0x1a5   : > { %v8486_v16 = vunpack.i.h.bf16 %v8484_v8  ;;  %v8485_v11 = vunpack.i.l.bf16 %v8484_v8 }
 0x1a6   : > { %v2205_v42 = vsel %vm2180_vm12, %v2172_v49, %v8480_v39  ;;  %v2206_v15 = vsel %vm2180_vm12, %v2173_v53, %v8481_v38 }
 0x1a7   : > { %v2207_v3 = vsel %vm2180_vm12, %v2174_v13, %v8485_v11  ;;  %v2208_v56 = vsel %vm2180_vm12, %v2175_v5, %v8486_v16  ;;  %v2225_v18 = vpack.c.bf16 %v2206_v15, %v2205_v42  ;;  %v8489_v19 = vpop.permute.xlu0 %8488  ;;  %v10230_v13 = vld [vmem:[%s11471_s3] ss:$0 sm:$0xff] }
 0x1a8   : > { %v2226_v57 = vpack.c.bf16 %v2208_v56, %v2207_v3  ;;  %v8494_v46 = vpop.permute.xlu1 %8493  ;;  %v8491_v2 = vunpack.i.h.bf16 %v8489_v19  ;;  %v8490_v27 = vunpack.i.l.bf16 %v8489_v19 }
 0x1a9   : > { %7710 = vmatmul.mubr.msk.bf16.vlgmr.msra.gmra.mrb[24].mxu0 %vm2244_vm13, %v2225_v18  ;;  %v8495_v24 = vunpack.i.l.bf16 %v8494_v46 }
 0x1aa   : > { %7718 = vmatmul.mubr.msk.bf16.vlgmr.msra.gmra.mrb[24].mxu1 %vm2244_vm13, %v2226_v57  ;;  %7722 = vmatpush3.bf16.msra.mxu0 %v10103_v7  ;;  %v1978_v6 = vsel %vm481_vm0, %v665_v31, %v8490_v27 }
 0x1ab   : > { %7730 = vmatpush3.bf16.msra.mxu1 %v10103_v7  ;;  %v8499_v37 = vpop.permute.xlu0 %8498  ;;  %7723 = vmatprep.subr.bf16.mxu0 %v9134_v0  ;;  %v8496_v7 = vunpack.i.h.bf16 %v8494_v46  ;;  %v1980_v34 = vsel %vm481_vm0, %v9016_v33, %v8495_v24 }
 0x1ac   : > { %v8504_v20 = vpop.permute.xlu1 %8503  ;;  %7731 = vmatprep.subr.bf16.mxu1 %v9134_v0  ;;  %7725 = vmatprep.mubr.msk.bf16.mxu0 %vm9142_vm5, %v9134_v0  ;;  %v8500_v62 = vunpack.i.l.bf16 %v8499_v37  ;;  %v8501_v40 = vunpack.i.h.bf16 %v8499_v37 }
 0x1ad   : > { %7733 = vmatprep.mubr.msk.bf16.mxu1 %vm9142_vm5, %v9134_v0  ;;  %v1981_v30 = vsel %vm481_vm0, %v9015_v29, %v8496_v7  ;;  %v8505_v28 = vunpack.i.l.bf16 %v8504_v20  ;;  %v8506_v35 = vunpack.i.h.bf16 %v8504_v20 }
 0x1ae   : > { %7724 = vmatpush3.bf16.msra.mxu0 %v9471_v60  ;;  %v2011_v58 = vsel %vm1982_vm6, %v1978_v6, %v8500_v62 }
 0x1af   : > { %7732 = vmatpush3.bf16.msra.mxu1 %v9471_v60  ;;  %v8509_v23 = vpop.permute.xlu0 %8508  ;;  %v1979_v60 = vsel %vm481_vm0, %v666_v25, %v8491_v2  ;;  %v2013_v51 = vsel %vm1982_vm6, %v1980_v34, %v8505_v28  ;;  %v2014_v55 = vsel %vm1982_vm6, %v1981_v30, %v8506_v35  ;;  %vm3467_vm0 = vcmask 523264  }
 0x1b0   : > { %v8514_v22 = vpop.permute.xlu1 %8513  ;;  %7737 = vmatprep.subr.bf16.mxu1 %v9134_v0  ;;  %v8510_v36 = vunpack.i.l.bf16 %v8509_v23  ;;  %v8511_v47 = vunpack.i.h.bf16 %v8509_v23  ;;  %v2012_v63 = vsel %vm1982_vm6, %v1979_v60, %v8501_v40  ;;  %vm4431_vm6 = vcmask 519168  }
 0x1b1   : > { %v8516_v41 = vunpack.i.h.bf16 %v8514_v22  ;;  %v8515_v43 = vunpack.i.l.bf16 %v8514_v22 }
 0x1b2   : > { %v2044_v4 = vsel %vm2015_vm7, %v2011_v58, %v8510_v36  ;;  %v2045_v9 = vsel %vm2015_vm7, %v2012_v63, %v8511_v47 }
 0x1b3   : > { %v8519_v1 = vpop.permute.xlu0 %8518  ;;  %v2046_v32 = vsel %vm2015_vm7, %v2013_v51, %v8515_v43  ;;  %v2047_v14 = vsel %vm2015_vm7, %v2014_v55, %v8516_v41 }
 0x1b4   : > { %v8524_v26 = vpop.permute.xlu1 %8523  ;;  %v8521_v21 = vunpack.i.h.bf16 %v8519_v1  ;;  %v8520_v52 = vunpack.i.l.bf16 %v8519_v1 }
 0x1b5   : > { %v8526_v17 = vunpack.i.h.bf16 %v8524_v26  ;;  %v8525_v48 = vunpack.i.l.bf16 %v8524_v26 }
 0x1b6   : > { %v2077_v38 = vsel %vm2048_vm8, %v2044_v4, %v8520_v52  ;;  %v2078_v39 = vsel %vm2048_vm8, %v2045_v9, %v8521_v21 }
 0x1b7   : > { %v8529_v50 = vpop.permute.xlu0 %8528  ;;  %v2079_v10 = vsel %vm2048_vm8, %v2046_v32, %v8525_v48  ;;  %v2080_v16 = vsel %vm2048_vm8, %v2047_v14, %v8526_v17  ;;  %v10263_v32 = vld [vmem:[%s11472_s4 + $0x80] sm:$0xff]  }
 0x1b8   : > { %v8534_v44 = vpop.permute.xlu1 %8533  ;;  %v8530_v61 = vunpack.i.l.bf16 %v8529_v50  ;;  %v8531_v11 = vunpack.i.h.bf16 %v8529_v50 }
 0x1b9   : > { %v8535_v54 = vunpack.i.l.bf16 %v8534_v44  ;;  %v8536_v59 = vunpack.i.h.bf16 %v8534_v44 }
 0x1ba   : > { %v2110_v42 = vsel %vm2081_vm9, %v2077_v38, %v8530_v61  ;;  %v2111_v2 = vsel %vm2081_vm9, %v2078_v39, %v8531_v11 }
 0x1bb   : > { %v8539_v12 = vpop.permute.xlu0 %8538  ;;  %v2112_v49 = vsel %vm2081_vm9, %v2079_v10, %v8535_v54  ;;  %v2113_v57 = vsel %vm2081_vm9, %v2080_v16, %v8536_v59  ;;  %v10273_v10 = vld [vmem:[%s11472_s4 + $0x88] sm:$0xff]  }
 0x1bc   : > { %v8544_v8 = vpop.permute.xlu1 %8543  ;;  %v2289_v53 = vpop.f32.mrb[0].mxu0  ;;  %v8540_v37 = vunpack.i.l.bf16 %v8539_v12  ;;  %v8541_v25 = vunpack.i.h.bf16 %v8539_v12 }
 0x1bd   : > { %v2333_v5 = vpop.f32.mrb[0].mxu1  ;;  %v8546_v15 = vunpack.i.h.bf16 %v8544_v8  ;;  %v2963_v46 = vmul.f32 %v10218_v45, %v2289_v53  ;;  %v7615_v18 = vpop.f32.mrb[1].mxu0  ;;  %v8545_v20 = vunpack.i.l.bf16 %v8544_v8  ;;  %v10283_v53 = vld [vmem:[%s11472_s4 + $0x40] sm:$0xff]  }
 0x1be   : > { %v2965_v3 = vmul.f32 %v10218_v45, %v2333_v5  ;;  %v7623_v56 = vpop.f32.mrb[1].mxu1  ;;  %v2292_v23 = vpop.f32.mrb[2].mxu0  ;;  %v2143_v36 = vsel %vm2114_vm10, %v2110_v42, %v8540_v37  ;;  %v2144_v47 = vsel %vm2114_vm10, %v2111_v2, %v8541_v25  ;;  %7169 = vmatprep.subr.bf16.mxu0 %v10283_v53  ;;  %v3202_v42 = vld [vmem:[#allocation4 + $0x1] sm:$0xff] }
 0x1bf   : > { %v2336_v19 = vpop.f32.mrb[2].mxu1  ;;  %v3002_v26 = vadd.f32 %v10230_v13, %v2963_v46  ;;  %v2964_v27 = vmul.f32 %v10218_v45, %v2292_v23  ;;  %v8549_v1 = vpop.permute.xlu0 %8548  ;;  %v2145_v41 = vsel %vm2114_vm10, %v2112_v49, %v8545_v20  ;;  %v2146_v43 = vsel %vm2114_vm10, %v2113_v57, %v8546_v15  ;;  %v10293_v56 = vld [vmem:[%s11472_s4 + $0x48] sm:$0xff]   ;;  %v10319_v2 = vld [vmem:[%s11472_s4 + $0x10] sm:$0xff]  }
 0x1c0   : > { %v3004_v22 = vadd.f32 %v10230_v13, %v2965_v3  ;;  %v2966_v7 = vmul.f32 %v10218_v45, %v2336_v19  ;;  %v8554_v24 = vpop.permute.xlu1 %8553  ;;  %v7616_v29 = vpop.f32.mrb[3].mxu0  ;;  %v8551_v62 = vunpack.i.h.bf16 %v8549_v1  ;;  %v8550_v40 = vunpack.i.l.bf16 %v8549_v1  ;;  %v10288_v3 = vld [vmem:[%s11472_s4] sm:$0xff]   ;;  %v10301_v57 = vld [vmem:[%s11472_s4 + $0x8] sm:$0xff]  }
 0x1c1   : > { %v8556_v28 = vunpack.i.h.bf16 %v8554_v24  ;;  %v8555_v33 = vunpack.i.l.bf16 %v8554_v24  ;;  %v7624_v34 = vpop.f32.mrb[3].mxu1  ;;  %v3034_v60 = vmax.f32 %v3002_v26, 0.0  ;;  %v3003_v35 = vadd.f32 %v10230_v13, %v2964_v27 }
 0x1c2   : > { %v3036_v30 = vmax.f32 %v3004_v22, 0.0  ;;  %v3005_v31 = vadd.f32 %v10230_v13, %v2966_v7  ;;  %v2176_v58 = vsel %vm2147_vm11, %v2143_v36, %v8550_v40  ;;  %v2177_v59 = vsel %vm2147_vm11, %v2144_v47, %v8551_v62  ;;  %v10313_v22 = vld [vmem:[%s11472_s4 + $0x50] sm:$0xff]   ;;  %v10331_v34 = vld [vmem:[%s11472_s4 + $0x58] sm:$0xff]   ;;  %v10353_v36 = vld [vmem:[%s11472_s4 + $0x20] sm:$0xff]  }
 0x1c3   : > { %3066 = vst.msk [vmem:[#allocation3] sm:$0xff] %vm527_vm14, %v3034_v60  ;;  %v3035_v17 = vmax.f32 %v3003_v35, 0.0  ;;  %v8559_v51 = vpop.permute.xlu0 %8558  ;;  %v2178_v21 = vsel %vm2147_vm11, %v2145_v41, %v8555_v33  ;;  %v2179_v52 = vsel %vm2147_vm11, %v2146_v43, %v8556_v28  ;;  %v10337_v62 = vld [vmem:[%s11472_s4 + $0x18] sm:$0xff]   ;;  %v10347_v43 = vld [vmem:[%s11472_s4 + $0x60] sm:$0xff]  }
 0x1c4   : > { %3068 = vst.msk [vmem:[#allocation3 + $0x10] sm:$0xff] %vm527_vm14, %v3036_v30  ;;  %v3037_v44 = vmax.f32 %v3005_v31, 0.0  ;;  %v8564_v6 = vpop.permute.xlu1 %8563  ;;  %v8561_v54 = vunpack.i.h.bf16 %v8559_v51  ;;  %v8560_v55 = vunpack.i.l.bf16 %v8559_v51 }
 0x1c5   : > { %v8566_v48 = vunpack.i.h.bf16 %v8564_v6  ;;  %v8565_v50 = vunpack.i.l.bf16 %v8564_v6  ;;  %3067 = vst.msk [vmem:[#allocation3 + $0x8] sm:$0xff] %vm527_vm14, %v3035_v17  ;;  %v10365_v6 = vld [vmem:[%s11472_s4 + $0x28] sm:$0xff]  }
 0x1c6   : > { %3069 = vst.msk [vmem:[#allocation3 + $0x18] sm:$0xff] %vm527_vm14, %v3037_v44  ;;  %v2209_v4 = vsel %vm2180_vm12, %v2176_v58, %v8560_v55  ;;  %v2210_v8 = vsel %vm2180_vm12, %v2177_v59, %v8561_v54  ;;  %v10360_v44 = vld [vmem:[%s11472_s4 + $0x68] sm:$0xff]   ;;  %v10377_v54 = vld [vmem:[%s11472_s4 + $0x30] sm:$0xff]   ;;  %v10384_v58 = vld [vmem:[%s11472_s4 + $0x78] sm:$0xff]  }
 0x1c7   : > { %v2211_v61 = vsel %vm2180_vm12, %v2178_v21, %v8565_v50  ;;  %v2212_v63 = vsel %vm2180_vm12, %v2179_v52, %v8566_v48  ;;  %v2227_v9 = vpack.c.bf16 %v2210_v8, %v2209_v4  ;;  %v10372_v21 = vld [vmem:[%s11472_s4 + $0x70] sm:$0xff]   ;;  %v10390_v59 = vld [vmem:[%s11472_s4 + $0x38] sm:$0xff]  }
 0x1c8   : > { %v2228_v14 = vpack.c.bf16 %v2212_v63, %v2211_v61  ;;  %v3210_v61 = vld [vmem:[#allocation4 + $0x2] sm:$0xff] }
 0x1c9   : > { %7726 = vmatmul.mubr.msk.bf16.vlgmr.msra.gmra.mrb[28].mxu0 %vm2244_vm13, %v2227_v9 }
 0x1ca   : > { %7734 = vmatmul.mubr.msk.bf16.vlgmr.msra.gmra.mrb[28].mxu1 %vm2244_vm13, %v2228_v14  ;;  %7170 = vmatpush3.bf16.msra.mxu0 %v10288_v3 }
 0x1cb   : > { %7738 = vmatpush3.bf16.msra.mxu1 %v10263_v32  ;;  %7741 = vmatprep.mubr.msk.bf16.mxu1 %vm9142_vm5, %v9134_v0 }
 0x1cc   : > { %7739 = vmatprep.subr.bf16.mxu1 %v9134_v0  ;;  %v3098_v12 = vld [vmem:[#allocation3] ss:$2 sm:$0xff]  ;;  %v3114_v5 = vld [vmem:[#allocation3 + $0x1] ss:$2 sm:$0xff]  ;;  %7171 = vmatprep.subr.bf16.mxu0 %v10293_v56 }
 0x1cd   : > { %v3130_v16 = vld [vmem:[#allocation3 + $0x10] ss:$2 sm:$0xff]  ;;  %v3146_v11 = vld [vmem:[#allocation3 + $0x11] ss:$2 sm:$0xff]  ;;  %v3161_v39 = vmax.f32 %v3098_v12, %v3114_v5 }
 0x1ce   : > { %v3169_v38 = vmax.f32 %v3130_v16, %v3146_v11  ;;  %7172 = vmatpush3.bf16.msra.mxu0 %v10301_v57 }
 0x1cf   : > { %7740 = vmatpush3.bf16.msra.mxu1 %v10273_v10  ;;  %7173 = vmatprep.subr.bf16.mxu0 %v10313_v22 }
 0x1d0   : > { %v3177_v49 = vmax.f32 %v3161_v39, %v3169_v38  ;;  %7194 = vmatprep.subr.bf16.mxu1 %v10283_v53 }
 0x1d2   : > { %3186 = vst.msk [vmem:[#allocation4 + $0x11] sm:$0xff] %vm527_vm14, %v3177_v49  ;;  %7174 = vmatpush3.bf16.msra.mxu0 %v10319_v2 }
 0x1d3   : > { %7175 = vmatprep.subr.bf16.mxu0 %v10331_v34 }
 0x1d6   : > { %7176 = vmatpush3.bf16.msra.mxu0 %v10337_v62 }
 0x1d7   : > { %7177 = vmatprep.subr.bf16.mxu0 %v10347_v43 }
 0x1d9   : > { %v10304_v15 = vld [vmem:[#allocation4 + $0x12] sm:$0xff] }
 0x1da   : > { %v8567_v46 = vpack.i.bf16 %v3202_v42, %v10304_v15  ;;  %7178 = vmatpush3.bf16.msra.mxu0 %v10353_v36  ;;  %v10395_v63 = vld [vmem:[#allocation4 + $0x10] sm:$0xff] }
 0x1db   : > { %7179 = vmatprep.subr.bf16.mxu0 %v10360_v44 }
 0x1dc   : > { %8568 = vrot.lane.b32.xlu0 %v8567_v46, %s9145_s19  ;;  %v2377_v19 = vpop.f32.mrb[4].mxu0 }
 0x1dd   : > { %v2421_v18 = vpop.f32.mrb[4].mxu1  ;;  %v2967_v23 = vmul.f32 %v10218_v45, %v2377_v19  ;;  %v7631_v7 = vpop.f32.mrb[5].mxu0 }
 0x1de   : > { %v2969_v20 = vmul.f32 %v10218_v45, %v2421_v18  ;;  %v7639_v37 = vpop.f32.mrb[5].mxu1  ;;  %v2380_v26 = vpop.f32.mrb[6].mxu0  ;;  %7180 = vmatpush3.bf16.msra.mxu0 %v10365_v6  ;;  %v10414_v18 = vld [vmem:[#allocation4 + $0x11] sm:$0xff] }
 0x1df   : > { %v2424_v24 = vpop.f32.mrb[6].mxu1  ;;  %v3006_v29 = vadd.f32 %v10230_v13, %v2967_v23  ;;  %v2968_v30 = vmul.f32 %v10218_v45, %v2380_v26  ;;  %v7632_v31 = vpop.f32.mrb[7].mxu0  ;;  %7181 = vmatprep.subr.bf16.mxu0 %v10372_v21 }
 0x1e0   : > { %v3008_v25 = vadd.f32 %v10230_v13, %v2969_v20  ;;  %v2970_v27 = vmul.f32 %v10218_v45, %v2424_v24  ;;  %v7640_v1 = vpop.f32.mrb[7].mxu1 }
 0x1e1   : > { %v3038_v60 = vmax.f32 %v3006_v29, 0.0  ;;  %v3007_v35 = vadd.f32 %v10230_v13, %v2968_v30 }
 0x1e2   : > { %v3040_v28 = vmax.f32 %v3008_v25, 0.0  ;;  %v3009_v33 = vadd.f32 %v10230_v13, %v2970_v27  ;;  %7182 = vmatpush3.bf16.msra.mxu0 %v10377_v54 }
 0x1e3   : > { %3070 = vst.msk [vmem:[#allocation3 + $0x20] sm:$0xff] %vm527_vm14, %v3038_v60  ;;  %v3039_v41 = vmax.f32 %v3007_v35, 0.0  ;;  %7183 = vmatprep.subr.bf16.mxu0 %v10384_v58 }
 0x1e4   : > { %3072 = vst.msk [vmem:[#allocation3 + $0x30] sm:$0xff] %vm527_vm14, %v3040_v28  ;;  %v3041_v40 = vmax.f32 %v3009_v33, 0.0 }
 0x1e5   : > { %3071 = vst.msk [vmem:[#allocation3 + $0x28] sm:$0xff] %vm527_vm14, %v3039_v41 }
 0x1e6   : > { %3073 = vst.msk [vmem:[#allocation3 + $0x38] sm:$0xff] %vm527_vm14, %v3041_v40  ;;  %7184 = vmatpush3.bf16.msra.mxu0 %v10390_v59 }
 0x1e7   : > { %7745 = vmatprep.subr.bf16.mxu0 %v9134_v0 }
 0x1ec   : > { %v3100_v48 = vld [vmem:[#allocation3 + $0x20] ss:$2 sm:$0xff]  ;;  %v3116_v50 = vld [vmem:[#allocation3 + $0x21] ss:$2 sm:$0xff] }
 0x1ed   : > { %v3132_v47 = vld [vmem:[#allocation3 + $0x30] ss:$2 sm:$0xff]  ;;  %v3148_v17 = vld [vmem:[#allocation3 + $0x31] ss:$2 sm:$0xff]  ;;  %v3162_v52 = vmax.f32 %v3100_v48, %v3116_v50 }
 0x1ee   : > { %v3170_v51 = vmax.f32 %v3132_v47, %v3148_v17 }
 0x1f0   : > { %v3178_v55 = vmax.f32 %v3162_v52, %v3170_v51 }
 0x1f2   : > { %3187 = vst.msk [vmem:[#allocation4 + $0x21] sm:$0xff] %vm527_vm14, %v3178_v55 }
 0x1f9   : > { %v10397_v14 = vld [vmem:[#allocation4 + $0x22] sm:$0xff] }
 0x1fa   : > { %v10399_v4 = vld [vmem:[#allocation4 + $0x21] sm:$0xff]  ;;  %v3511_v9 = vpack.c.bf16 %v10397_v14, %v10397_v14  ;;  %v8582_v7 = vpack.i.bf16 %v10414_v18, %v10397_v14 }
 0x1fb   : > { %v10401_v8 = vld [vmem:[#allocation4 + $0x20] sm:$0xff]  ;;  %v8577_v16 = vpack.i.bf16 %v10395_v63, %v10399_v4 }
 0x1fc   : > { %v8572_v11 = vpack.i.bf16 %v3210_v61, %v10401_v8  ;;  %7742 = vmatmul.mubr.msk.bf16.vlgmr.msra.gmra.mrb[32].mxu1 %vm527_vm14, %v3511_v9  ;;  %v2465_v5 = vpop.f32.mrb[8].mxu0 }
 0x1fd   : > { %8578 = vrot.lane.b32.xlu0 %v8577_v16, %s9146_s26  ;;  %v2509_v12 = vpop.f32.mrb[8].mxu1  ;;  %7195 = vmatpush3.bf16.msra.mxu1 %v10288_v3  ;;  %v2971_v49 = vmul.f32 %v10218_v45, %v2465_v5  ;;  %v7647_v42 = vpop.f32.mrb[9].mxu0 }
 0x1fe   : > { %8573 = vrot.lane.b32.xlu1 %v8572_v11, %s9147_s15  ;;  %v2973_v38 = vmul.f32 %v10218_v45, %v2509_v12  ;;  %v7655_v39 = vpop.f32.mrb[9].mxu1  ;;  %7196 = vmatprep.subr.bf16.mxu1 %v10293_v56  ;;  %v2468_v20 = vpop.f32.mrb[10].mxu0 }
 0x1ff   : > { %v2512_v46 = vpop.f32.mrb[10].mxu1  ;;  %v3010_v24 = vadd.f32 %v10230_v13, %v2971_v49  ;;  %v2972_v25 = vmul.f32 %v10218_v45, %v2468_v20  ;;  %v7648_v26 = vpop.f32.mrb[11].mxu0 }
 0x200   : > { %v3012_v19 = vadd.f32 %v10230_v13, %v2973_v38  ;;  %v2974_v37 = vmul.f32 %v10218_v45, %v2512_v46  ;;  %v7656_v23 = vpop.f32.mrb[11].mxu1 }
 0x201   : > { %7197 = vmatpush3.bf16.msra.mxu1 %v10301_v57  ;;  %v3042_v29 = vmax.f32 %v3010_v24, 0.0  ;;  %v3011_v30 = vadd.f32 %v10230_v13, %v2972_v25 }
 0x202   : > { %v3044_v27 = vmax.f32 %v3012_v19, 0.0  ;;  %v3013_v1 = vadd.f32 %v10230_v13, %v2974_v37  ;;  %8583 = vrot.lane.b32.xlu1 %v8582_v7, %s9145_s19  ;;  %7198 = vmatprep.subr.bf16.mxu1 %v10313_v22 }
 0x203   : > { %3074 = vst.msk [vmem:[#allocation3 + $0x40] sm:$0xff] %vm527_vm14, %v3042_v29  ;;  %v3043_v28 = vmax.f32 %v3011_v30, 0.0 }
 0x204   : > { %3076 = vst.msk [vmem:[#allocation3 + $0x50] sm:$0xff] %vm527_vm14, %v3044_v27  ;;  %v3045_v31 = vmax.f32 %v3013_v1, 0.0 }
 0x205   : > { %7199 = vmatpush3.bf16.msra.mxu1 %v10319_v2  ;;  %3075 = vst.msk [vmem:[#allocation3 + $0x48] sm:$0xff] %vm527_vm14, %v3043_v28 }
 0x206   : > { %3077 = vst.msk [vmem:[#allocation3 + $0x58] sm:$0xff] %vm527_vm14, %v3045_v31  ;;  %7200 = vmatprep.subr.bf16.mxu1 %v10331_v34 }
 0x209   : > { %7201 = vmatpush3.bf16.msra.mxu1 %v10337_v62 }
 0x20a   : > { %7202 = vmatprep.subr.bf16.mxu1 %v10347_v43 }
 0x20c   : > { %v3102_v35 = vld [vmem:[#allocation3 + $0x40] ss:$2 sm:$0xff]  ;;  %v3118_v40 = vld [vmem:[#allocation3 + $0x41] ss:$2 sm:$0xff] }
 0x20d   : > { %v3134_v33 = vld [vmem:[#allocation3 + $0x50] ss:$2 sm:$0xff]  ;;  %v3150_v60 = vld [vmem:[#allocation3 + $0x51] ss:$2 sm:$0xff]  ;;  %7203 = vmatpush3.bf16.msra.mxu1 %v10353_v36  ;;  %v3163_v47 = vmax.f32 %v3102_v35, %v3118_v40 }
 0x20e   : > { %v3171_v41 = vmax.f32 %v3134_v33, %v3150_v60  ;;  %7204 = vmatprep.subr.bf16.mxu1 %v10360_v44 }
 0x210   : > { %v3179_v17 = vmax.f32 %v3163_v47, %v3171_v41 }
 0x211   : > { %7205 = vmatpush3.bf16.msra.mxu1 %v10365_v6 }
 0x212   : > { %3188 = vst.msk [vmem:[#allocation4 + $0x31] sm:$0xff] %vm527_vm14, %v3179_v17  ;;  %7206 = vmatprep.subr.bf16.mxu1 %v10372_v21 }
 0x215   : > { %7207 = vmatpush3.bf16.msra.mxu1 %v10377_v54 }
 0x216   : > { %7208 = vmatprep.subr.bf16.mxu1 %v10384_v58 }
 0x219   : > { %v10443_v48 = vld [vmem:[#allocation4 + $0x31] sm:$0xff]  ;;  %7209 = vmatpush3.bf16.msra.mxu1 %v10390_v59 }
 0x21a   : > { %v10445_v50 = vld [vmem:[#allocation4 + $0x30] sm:$0xff]  ;;  %v8592_v51 = vpack.i.bf16 %v10401_v8, %v10443_v48  ;;  %7753 = vmatprep.subr.bf16.mxu1 %v9134_v0 }
 0x21b   : > { %v8587_v52 = vpack.i.bf16 %v10304_v15, %v10445_v50  ;;  %v10453_v55 = vld [vmem:[#allocation4 + $0x32] sm:$0xff] }
 0x21c   : > { %8593 = vrot.lane.b32.xlu1 %v8592_v51, %s9146_s26  ;;  %v2553_v9 = vpop.f32.mrb[12].mxu0  ;;  %v8597_v15 = vpack.i.bf16 %v10399_v4, %v10453_v55 }
 0x21d   : > { %8588 = vrot.lane.b32.xlu0 %v8587_v52, %s9147_s15  ;;  %v2597_v61 = vpop.f32.mrb[12].mxu1  ;;  %v2975_v12 = vmul.f32 %v10218_v45, %v2553_v9  ;;  %v7663_v5 = vpop.f32.mrb[13].mxu0 }
 0x21e   : > { %v2977_v16 = vmul.f32 %v10218_v45, %v2597_v61  ;;  %v7671_v11 = vpop.f32.mrb[13].mxu1  ;;  %v2556_v49 = vpop.f32.mrb[14].mxu0 }
 0x21f   : > { %v2600_v38 = vpop.f32.mrb[14].mxu1  ;;  %v3014_v19 = vadd.f32 %v10230_v13, %v2975_v12  ;;  %v2976_v20 = vmul.f32 %v10218_v45, %v2556_v49  ;;  %v7664_v37 = vpop.f32.mrb[15].mxu0 }
 0x220   : > { %v3016_v39 = vadd.f32 %v10230_v13, %v2977_v16  ;;  %v2978_v42 = vmul.f32 %v10218_v45, %v2600_v38  ;;  %v7672_v46 = vpop.f32.mrb[15].mxu1 }
 0x221   : > { %8598 = vrot.lane.b32.xlu0 %v8597_v15, %s9145_s19  ;;  %v3046_v24 = vmax.f32 %v3014_v19, 0.0  ;;  %v3015_v25 = vadd.f32 %v10230_v13, %v2976_v20 }
 0x222   : > { %v3048_v23 = vmax.f32 %v3016_v39, 0.0  ;;  %v3017_v7 = vadd.f32 %v10230_v13, %v2978_v42 }
 0x223   : > { %3078 = vst.msk [vmem:[#allocation3 + $0x60] sm:$0xff] %vm527_vm14, %v3046_v24  ;;  %v3047_v27 = vmax.f32 %v3015_v25, 0.0 }
 0x224   : > { %3080 = vst.msk [vmem:[#allocation3 + $0x70] sm:$0xff] %vm527_vm14, %v3048_v23  ;;  %v3049_v26 = vmax.f32 %v3017_v7, 0.0 }
 0x225   : > { %3079 = vst.msk [vmem:[#allocation3 + $0x68] sm:$0xff] %vm527_vm14, %v3047_v27 }
 0x226   : > { %3081 = vst.msk [vmem:[#allocation3 + $0x78] sm:$0xff] %vm527_vm14, %v3049_v26 }
 0x22c   : > { %v3104_v30 = vld [vmem:[#allocation3 + $0x60] ss:$2 sm:$0xff]  ;;  %v3120_v31 = vld [vmem:[#allocation3 + $0x61] ss:$2 sm:$0xff] }
 0x22d   : > { %v3136_v1 = vld [vmem:[#allocation3 + $0x70] ss:$2 sm:$0xff]  ;;  %v3152_v29 = vld [vmem:[#allocation3 + $0x71] ss:$2 sm:$0xff]  ;;  %v3164_v33 = vmax.f32 %v3104_v30, %v3120_v31 }
 0x22e   : > { %v3172_v28 = vmax.f32 %v3136_v1, %v3152_v29 }
 0x230   : > { %v3180_v60 = vmax.f32 %v3164_v33, %v3172_v28 }
 0x232   : > { %3189 = vst.msk [vmem:[#allocation4 + $0x41] sm:$0xff] %vm527_vm14, %v3180_v60 }
 0x239   : > { %v10473_v35 = vld [vmem:[#allocation4 + $0x41] sm:$0xff] }
 0x23a   : > { %v10475_v40 = vld [vmem:[#allocation4 + $0x40] sm:$0xff]  ;;  %v8607_v41 = vpack.i.bf16 %v10445_v50, %v10473_v35 }
 0x23b   : > { %v8602_v47 = vpack.i.bf16 %v10397_v14, %v10475_v40  ;;  %v10481_v17 = vld [vmem:[#allocation4 + $0x42] sm:$0xff] }
 0x23c   : > { %8608 = vrot.lane.b32.xlu0 %v8607_v41, %s9146_s26  ;;  %v2641_v52 = vpop.f32.mrb[16].mxu0  ;;  %v8612_v5 = vpack.i.bf16 %v10443_v48, %v10481_v17 }
 0x23d   : > { %8603 = vrot.lane.b32.xlu1 %v8602_v47, %s9147_s15  ;;  %v2685_v51 = vpop.f32.mrb[16].mxu1  ;;  %v2979_v16 = vmul.f32 %v10218_v45, %v2641_v52  ;;  %v7679_v11 = vpop.f32.mrb[17].mxu0 }
 0x23e   : > { %v2981_v61 = vmul.f32 %v10218_v45, %v2685_v51  ;;  %v7687_v9 = vpop.f32.mrb[17].mxu1  ;;  %v2644_v38 = vpop.f32.mrb[18].mxu0 }
 0x23f   : > { %v2688_v12 = vpop.f32.mrb[18].mxu1  ;;  %v3018_v49 = vadd.f32 %v10230_v13, %v2979_v16  ;;  %v2980_v42 = vmul.f32 %v10218_v45, %v2644_v38  ;;  %v7680_v46 = vpop.f32.mrb[19].mxu0 }
 0x240   : > { %v3020_v14 = vadd.f32 %v10230_v13, %v2981_v61  ;;  %v2982_v15 = vmul.f32 %v10218_v45, %v2688_v12  ;;  %v7688_v39 = vpop.f32.mrb[19].mxu1 }
 0x241   : > { %8613 = vrot.lane.b32.xlu1 %v8612_v5, %s9145_s19  ;;  %v3050_v37 = vmax.f32 %v3018_v49, 0.0  ;;  %v3019_v23 = vadd.f32 %v10230_v13, %v2980_v42 }
 0x242   : > { %v3052_v19 = vmax.f32 %v3020_v14, 0.0  ;;  %v3021_v20 = vadd.f32 %v10230_v13, %v2982_v15 }
 0x243   : > { %3082 = vst.msk [vmem:[#allocation3 + $0x80] sm:$0xff] %vm527_vm14, %v3050_v37  ;;  %v3051_v24 = vmax.f32 %v3019_v23, 0.0 }
 0x244   : > { %3084 = vst.msk [vmem:[#allocation3 + $0x90] sm:$0xff] %vm527_vm14, %v3052_v19  ;;  %v3053_v7 = vmax.f32 %v3021_v20, 0.0 }
 0x245   : > { %3083 = vst.msk [vmem:[#allocation3 + $0x88] sm:$0xff] %vm527_vm14, %v3051_v24 }
 0x246   : > { %3085 = vst.msk [vmem:[#allocation3 + $0x98] sm:$0xff] %vm527_vm14, %v3053_v7 }
 0x24c   : > { %v3106_v27 = vld [vmem:[#allocation3 + $0x80] ss:$2 sm:$0xff]  ;;  %v3122_v1 = vld [vmem:[#allocation3 + $0x81] ss:$2 sm:$0xff] }
 0x24d   : > { %v3138_v25 = vld [vmem:[#allocation3 + $0x90] ss:$2 sm:$0xff]  ;;  %v3154_v26 = vld [vmem:[#allocation3 + $0x91] ss:$2 sm:$0xff]  ;;  %v3165_v30 = vmax.f32 %v3106_v27, %v3122_v1 }
 0x24e   : > { %v3173_v29 = vmax.f32 %v3138_v25, %v3154_v26  ;;  %v8569_v25 = vpop.permute.xlu0 %8568 }
 0x24f   : > { %v8571_v1 = vunpack.i.h.bf16 %v8569_v25 }
 0x250   : > { %v3181_v31 = vmax.f32 %v3165_v30, %v3173_v29  ;;  %v8570_v29 = vunpack.i.l.bf16 %v8569_v25 }
 0x252   : > { %3190 = vst.msk [vmem:[#allocation4 + $0x51] sm:$0xff] %vm527_vm14, %v3181_v31 }
 0x259   : > { %v10501_v28 = vld [vmem:[#allocation4 + $0x51] sm:$0xff] }
 0x25a   : > { %v10503_v33 = vld [vmem:[#allocation4 + $0x50] sm:$0xff]  ;;  %v8622_v60 = vpack.i.bf16 %v10475_v40, %v10501_v28 }
 0x25b   : > { %v8617_v41 = vpack.i.bf16 %v10453_v55, %v10503_v33  ;;  %v10509_v47 = vld [vmem:[#allocation4 + $0x52] sm:$0xff] }
 0x25c   : > { %8623 = vrot.lane.b32.xlu1 %v8622_v60, %s9146_s26  ;;  %v2729_v52 = vpop.f32.mrb[20].mxu0  ;;  %v8627_v5 = vpack.i.bf16 %v10473_v35, %v10509_v47 }
 0x25d   : > { %8618 = vrot.lane.b32.xlu0 %v8617_v41, %s9147_s15  ;;  %v2773_v51 = vpop.f32.mrb[20].mxu1  ;;  %v2983_v16 = vmul.f32 %v10218_v45, %v2729_v52  ;;  %v7695_v11 = vpop.f32.mrb[21].mxu0  ;;  %v3194_v41 = vld [vmem:[#allocation4] sm:$0xff] }
 0x25e   : > { %v2985_v61 = vmul.f32 %v10218_v45, %v2773_v51  ;;  %v7703_v9 = vpop.f32.mrb[21].mxu1  ;;  %v2732_v38 = vpop.f32.mrb[22].mxu0 }
 0x25f   : > { %v2776_v12 = vpop.f32.mrb[22].mxu1  ;;  %v3022_v49 = vadd.f32 %v10230_v13, %v2983_v16  ;;  %v2984_v42 = vmul.f32 %v10218_v45, %v2732_v38  ;;  %v7696_v46 = vpop.f32.mrb[23].mxu0  ;;  %v3485_v38 = vsel %vm527_vm14, %v10414_v18, %v8570_v29 }
 0x260   : > { %v3024_v14 = vadd.f32 %v10230_v13, %v2985_v61  ;;  %v2986_v15 = vmul.f32 %v10218_v45, %v2776_v12  ;;  %v7704_v39 = vpop.f32.mrb[23].mxu1 }
 0x261   : > { %8628 = vrot.lane.b32.xlu0 %v8627_v5, %s9145_s19  ;;  %v3054_v37 = vmax.f32 %v3022_v49, 0.0  ;;  %v3023_v23 = vadd.f32 %v10230_v13, %v2984_v42 }
 0x262   : > { %v3056_v19 = vmax.f32 %v3024_v14, 0.0  ;;  %v3025_v20 = vadd.f32 %v10230_v13, %v2986_v15  ;;  %v3459_v14 = vsel %vm527_vm14, %v3194_v41, %v8571_v1  ;;  %v3514_v1 = vpack.c.bf16 %v10453_v55, %v10453_v55 }
 0x263   : > { %3086 = vst.msk [vmem:[#allocation3 + $0xa0] sm:$0xff] %vm527_vm14, %v3054_v37  ;;  %v3055_v24 = vmax.f32 %v3023_v23, 0.0 }
 0x264   : > { %3088 = vst.msk [vmem:[#allocation3 + $0xb0] sm:$0xff] %vm527_vm14, %v3056_v19  ;;  %v3057_v7 = vmax.f32 %v3025_v20, 0.0 }
 0x265   : > { %3087 = vst.msk [vmem:[#allocation3 + $0xa8] sm:$0xff] %vm527_vm14, %v3055_v24 }
 0x266   : > { %3089 = vst.msk [vmem:[#allocation3 + $0xb8] sm:$0xff] %vm527_vm14, %v3057_v7 }
 0x26c   : > { %v3108_v30 = vld [vmem:[#allocation3 + $0xa0] ss:$2 sm:$0xff]  ;;  %v3124_v31 = vld [vmem:[#allocation3 + $0xa1] ss:$2 sm:$0xff] }
 0x26d   : > { %v3140_v26 = vld [vmem:[#allocation3 + $0xb0] ss:$2 sm:$0xff]  ;;  %v3156_v27 = vld [vmem:[#allocation3 + $0xb1] ss:$2 sm:$0xff]  ;;  %v3166_v51 = vmax.f32 %v3108_v30, %v3124_v31 }
 0x26e   : > { %v3174_v60 = vmax.f32 %v3140_v26, %v3156_v27 }
 0x26f   : > { %v8579_v52 = vpop.permute.xlu0 %8578 }
 0x270   : > { %v8581_v61 = vunpack.i.h.bf16 %v8579_v52  ;;  %v8580_v9 = vunpack.i.l.bf16 %v8579_v52  ;;  %v8574_v16 = vpop.permute.xlu1 %8573  ;;  %v3182_v11 = vmax.f32 %v3166_v51, %v3174_v60 }
 0x271   : > { %v8576_v12 = vunpack.i.h.bf16 %v8574_v16  ;;  %v8575_v5 = vunpack.i.l.bf16 %v8574_v16 }
 0x272   : > { %3191 = vst.msk [vmem:[#allocation4 + $0x61] sm:$0xff] %vm527_vm14, %v3182_v11 }
 0x273   : > { %v3468_v15 = vsel %vm3467_vm0, %v3459_v14, %v8576_v12  ;;  %v3493_v39 = vsel %vm3467_vm0, %v3485_v38, %v8575_v5 }
 0x274   : > { %v3501_v49 = vsel %vm3476_vm2, %v3493_v39, %v8580_v9  ;;  %v3477_v42 = vsel %vm3476_vm2, %v3468_v15, %v8581_v61  ;;  %v8584_v39 = vpop.permute.xlu1 %8583 }
 0x275   : > { %v3510_v46 = vpack.c.bf16 %v3501_v49, %v3501_v49  ;;  %v3509_v19 = vpack.c.bf16 %v3477_v42, %v3477_v42  ;;  %v8586_v49 = vunpack.i.h.bf16 %v8584_v39  ;;  %v8585_v42 = vunpack.i.l.bf16 %v8584_v39 }
 0x277   : > { %3712 = vmatprep.mubr.bf16.mxu0 %v3510_v46 }
 0x278   : > { %3713 = vmatmul.mubr.bf16.vlgmr.msra.gmra.mrb[32].mxu0 %v3509_v19 }
 0x279   : > { %7746 = vmatpush3.bf16.msra.mxu0 %v10263_v32  ;;  %7749 = vmatprep.mubr.msk.bf16.mxu0 %vm9142_vm5, %v9134_v0  ;;  %v10540_v18 = vld [vmem:[#allocation4 + $0x61] sm:$0xff] }
 0x27a   : > { %7747 = vmatprep.subr.bf16.mxu0 %v9134_v0  ;;  %v10542_v20 = vld [vmem:[#allocation4 + $0x60] sm:$0xff]  ;;  %v8637_v37 = vpack.i.bf16 %v10503_v33, %v10540_v18 }
 0x27b   : > { %v8632_v23 = vpack.i.bf16 %v10481_v17, %v10542_v20  ;;  %v10550_v24 = vld [vmem:[#allocation4 + $0x62] sm:$0xff] }
 0x27c   : > { %8638 = vrot.lane.b32.xlu0 %v8637_v37, %s9146_s26  ;;  %v2817_v25 = vpop.f32.mrb[24].mxu0  ;;  %v8642_v61 = vpack.i.bf16 %v10501_v28, %v10550_v24 }
 0x27d   : > { %7748 = vmatpush3.bf16.msra.mxu0 %v10273_v10  ;;  %v2861_v7 = vpop.f32.mrb[24].mxu1  ;;  %8633 = vrot.lane.b32.xlu1 %v8632_v23, %s9147_s15  ;;  %v2987_v29 = vmul.f32 %v10218_v45, %v2817_v25  ;;  %v7711_v30 = vpop.f32.mrb[25].mxu0 }
 0x27e   : > { %v2989_v26 = vmul.f32 %v10218_v45, %v2861_v7  ;;  %v7719_v27 = vpop.f32.mrb[25].mxu1  ;;  %7219 = vmatprep.subr.bf16.mxu0 %v10283_v53  ;;  %v2820_v41 = vpop.f32.mrb[26].mxu0 }
 0x27f   : > { %v2864_v31 = vpop.f32.mrb[26].mxu1  ;;  %v3026_v9 = vadd.f32 %v10230_v13, %v2987_v29  ;;  %v2988_v55 = vmul.f32 %v10218_v45, %v2820_v41  ;;  %v7712_v16 = vpop.f32.mrb[27].mxu0  ;;  %v3486_v41 = vsel %vm527_vm14, %v10399_v4, %v8585_v42 }
 0x280   : > { %v3028_v60 = vadd.f32 %v10230_v13, %v2989_v26  ;;  %7750 = vmatmul.mubr.msk.bf16.vlgmr.msra.gmra.mrb[36].mxu0 %vm527_vm14, %v3514_v1  ;;  %v2990_v51 = vmul.f32 %v10218_v45, %v2864_v31  ;;  %v7720_v52 = vpop.f32.mrb[27].mxu1 }
 0x281   : > { %7220 = vmatpush3.bf16.msra.mxu0 %v10288_v3  ;;  %8643 = vrot.lane.b32.xlu1 %v8642_v61, %s9145_s19  ;;  %v3058_v5 = vmax.f32 %v3026_v9, 0.0  ;;  %v3027_v14 = vadd.f32 %v10230_v13, %v2988_v55 }
 0x282   : > { %v3060_v11 = vmax.f32 %v3028_v60, 0.0  ;;  %v3029_v12 = vadd.f32 %v10230_v13, %v2990_v51  ;;  %7221 = vmatprep.subr.bf16.mxu0 %v10293_v56  ;;  %v3460_v60 = vsel %vm527_vm14, %v10395_v63, %v8586_v49 }
 0x283   : > { %3090 = vst.msk [vmem:[#allocation3 + $0xc0] sm:$0xff] %vm527_vm14, %v3058_v5  ;;  %v3059_v15 = vmax.f32 %v3027_v14, 0.0 }
 0x284   : > { %3092 = vst.msk [vmem:[#allocation3 + $0xd0] sm:$0xff] %vm527_vm14, %v3060_v11  ;;  %v3061_v38 = vmax.f32 %v3029_v12, 0.0 }
 0x285   : > { %7222 = vmatpush3.bf16.msra.mxu0 %v10301_v57  ;;  %3091 = vst.msk [vmem:[#allocation3 + $0xc8] sm:$0xff] %vm527_vm14, %v3059_v15  ;;  %v3517_v15 = vpack.c.bf16 %v10481_v17, %v10481_v17 }
 0x286   : > { %3093 = vst.msk [vmem:[#allocation3 + $0xd8] sm:$0xff] %vm527_vm14, %v3061_v38  ;;  %7223 = vmatprep.subr.bf16.mxu0 %v10313_v22 }
 0x289   : > { %7224 = vmatpush3.bf16.msra.mxu0 %v10319_v2 }
 0x28a   : > { %7225 = vmatprep.subr.bf16.mxu0 %v10331_v34 }
 0x28c   : > { %v3110_v37 = vld [vmem:[#allocation3 + $0xc0] ss:$2 sm:$0xff]  ;;  %v3126_v23 = vld [vmem:[#allocation3 + $0xc1] ss:$2 sm:$0xff] }
 0x28d   : > { %v3142_v46 = vld [vmem:[#allocation3 + $0xd0] ss:$2 sm:$0xff]  ;;  %v3158_v19 = vld [vmem:[#allocation3 + $0xd1] ss:$2 sm:$0xff]  ;;  %7226 = vmatpush3.bf16.msra.mxu0 %v10337_v62  ;;  %v3167_v25 = vmax.f32 %v3110_v37, %v3126_v23 }
 0x28e   : > { %v3175_v7 = vmax.f32 %v3142_v46, %v3158_v19  ;;  %7227 = vmatprep.subr.bf16.mxu0 %v10347_v43  ;;  %v8594_v26 = vpop.permute.xlu1 %8593 }
 0x28f   : > { %v8589_v27 = vpop.permute.xlu0 %8588  ;;  %v8596_v1 = vunpack.i.h.bf16 %v8594_v26  ;;  %v8595_v29 = vunpack.i.l.bf16 %v8594_v26 }
 0x290   : > { %v8591_v30 = vunpack.i.h.bf16 %v8589_v27  ;;  %v8590_v31 = vunpack.i.l.bf16 %v8589_v27  ;;  %v3183_v51 = vmax.f32 %v3167_v25, %v3175_v7 }
 0x291   : > { %7228 = vmatpush3.bf16.msra.mxu0 %v10353_v36 }
 0x292   : > { %v3469_v52 = vsel %vm3467_vm0, %v3460_v60, %v8591_v30  ;;  %v3494_v61 = vsel %vm3467_vm0, %v3486_v41, %v8590_v31  ;;  %7229 = vmatprep.subr.bf16.mxu0 %v10360_v44  ;;  %3192 = vst.msk [vmem:[#allocation4 + $0x71] sm:$0xff] %vm527_vm14, %v3183_v51 }
 0x293   : > { %v3502_v9 = vsel %vm3476_vm2, %v3494_v61, %v8595_v29  ;;  %v3478_v55 = vsel %vm3476_vm2, %v3469_v52, %v8596_v1 }
 0x294   : > { %v3513_v16 = vpack.c.bf16 %v3502_v9, %v3502_v9  ;;  %v3512_v63 = vpack.c.bf16 %v3478_v55, %v3478_v55 }
 0x295   : > { %7230 = vmatpush3.bf16.msra.mxu0 %v10365_v6 }
 0x296   : > { %3795 = vmatprep.mubr.bf16.mxu1 %v3513_v16  ;;  %7231 = vmatprep.subr.bf16.mxu0 %v10372_v21 }
 0x297   : > { %3796 = vmatmul.mubr.bf16.vlgmr.msra.gmra.mrb[36].mxu1 %v3512_v63 }
 0x298   : > { %7754 = vmatpush3.bf16.msra.mxu1 %v10263_v32  ;;  %7757 = vmatprep.mubr.msk.bf16.mxu1 %vm9142_vm5, %v9134_v0 }
 0x299   : > { %7755 = vmatprep.subr.bf16.mxu1 %v9134_v0  ;;  %7232 = vmatpush3.bf16.msra.mxu0 %v10377_v54  ;;  %v10598_v4 = vld [vmem:[#allocation4 + $0x71] sm:$0xff] }
 0x29a   : > { %v10600_v11 = vld [vmem:[#allocation4 + $0x70] sm:$0xff]  ;;  %7233 = vmatprep.subr.bf16.mxu0 %v10384_v58  ;;  %v8652_v12 = vpack.i.bf16 %v10542_v20, %v10598_v4 }
 0x29b   : > { %v8647_v5 = vpack.i.bf16 %v10509_v47, %v10600_v11  ;;  %v10608_v14 = vld [vmem:[#allocation4 + $0x72] sm:$0xff] }
 0x29c   : > { %7756 = vmatpush3.bf16.msra.mxu1 %v10273_v10  ;;  %8653 = vrot.lane.b32.xlu1 %v8652_v12, %s9146_s26  ;;  %v2905_v39 = vpop.f32.mrb[28].mxu0  ;;  %v8657_v23 = vpack.i.bf16 %v10540_v18, %v10608_v14 }
 0x29d   : > { %8648 = vrot.lane.b32.xlu0 %v8647_v5, %s9147_s15  ;;  %v2949_v38 = vpop.f32.mrb[28].mxu1  ;;  %7234 = vmatpush3.bf16.msra.mxu0 %v10390_v59  ;;  %v2991_v46 = vmul.f32 %v10218_v45, %v2905_v39  ;;  %v7727_v19 = vpop.f32.mrb[29].mxu0 }
 0x29e   : > { %v2993_v49 = vmul.f32 %v10218_v45, %v2949_v38  ;;  %v7735_v42 = vpop.f32.mrb[29].mxu1  ;;  %7244 = vmatprep.subr.bf16.mxu1 %v10283_v53  ;;  %7761 = vmatprep.subr.bf16.mxu0 %v9134_v0  ;;  %v2908_v7 = vpop.f32.mrb[30].mxu0 }
 0x29f   : > { %7758 = vmatmul.mubr.msk.bf16.vlgmr.msra.gmra.mrb[40].mxu1 %vm527_vm14, %v3517_v15  ;;  %v2952_v37 = vpop.f32.mrb[30].mxu1  ;;  %v3030_v27 = vadd.f32 %v10230_v13, %v2991_v46  ;;  %v2992_v1 = vmul.f32 %v10218_v45, %v2908_v7  ;;  %v7728_v29 = vpop.f32.mrb[31].mxu0 }
 0x2a0   : > { %v3032_v17 = vadd.f32 %v10230_v13, %v2993_v49  ;;  %v2994_v25 = vmul.f32 %v10218_v45, %v2952_v37  ;;  %v7736_v26 = vpop.f32.mrb[31].mxu1  ;;  %7245 = vmatpush3.bf16.msra.mxu1 %v10288_v3  ;;  %v8599_v45 = vpop.permute.xlu0 %8598 }
 0x2a1   : > { %8658 = vrot.lane.b32.xlu0 %v8657_v23, %s9145_s19  ;;  %7246 = vmatprep.subr.bf16.mxu1 %v10293_v56  ;;  %v3062_v60 = vmax.f32 %v3030_v27, 0.0  ;;  %v3031_v41 = vadd.f32 %v10230_v13, %v2992_v1  ;;  %v8600_v61 = vunpack.i.l.bf16 %v8599_v45 }
 0x2a2   : > { %v3064_v30 = vmax.f32 %v3032_v17, 0.0  ;;  %v3033_v31 = vadd.f32 %v10230_v13, %v2994_v25  ;;  %v8601_v13 = vunpack.i.h.bf16 %v8599_v45 }
 0x2a3   : > { %3094 = vst.msk [vmem:[#allocation3 + $0xe0] sm:$0xff] %vm527_vm14, %v3062_v60  ;;  %v3063_v52 = vmax.f32 %v3031_v41, 0.0  ;;  %v3487_v37 = vsel %vm527_vm14, %v10443_v48, %v8600_v61  ;;  %v3520_v60 = vpack.c.bf16 %v10509_v47, %v10509_v47 }
 0x2a4   : > { %3096 = vst.msk [vmem:[#allocation3 + $0xf0] sm:$0xff] %vm527_vm14, %v3064_v30  ;;  %v3065_v51 = vmax.f32 %v3033_v31, 0.0  ;;  %7247 = vmatpush3.bf16.msra.mxu1 %v10301_v57  ;;  %v3461_v19 = vsel %vm527_vm14, %v10401_v8, %v8601_v13 }
 0x2a5   : > { %7248 = vmatprep.subr.bf16.mxu1 %v10313_v22  ;;  %3095 = vst.msk [vmem:[#allocation3 + $0xe8] sm:$0xff] %vm527_vm14, %v3063_v52 }
 0x2a6   : > { %3097 = vst.msk [vmem:[#allocation3 + $0xf8] sm:$0xff] %vm527_vm14, %v3065_v51  ;;  %v3258_v51 = vld [vmem:[#allocation4 + $0x91] sm:$0xff] }
 0x2a8   : > { %7249 = vmatpush3.bf16.msra.mxu1 %v10319_v2 }
 0x2a9   : > { %7250 = vmatprep.subr.bf16.mxu1 %v10331_v34 }
 0x2ac   : > { %7251 = vmatpush3.bf16.msra.mxu1 %v10337_v62  ;;  %v3112_v16 = vld [vmem:[#allocation3 + $0xe0] ss:$2 sm:$0xff]  ;;  %v3128_v63 = vld [vmem:[#allocation3 + $0xe1] ss:$2 sm:$0xff] }
 0x2ad   : > { %v3144_v9 = vld [vmem:[#allocation3 + $0xf0] ss:$2 sm:$0xff]  ;;  %v3160_v55 = vld [vmem:[#allocation3 + $0xf1] ss:$2 sm:$0xff]  ;;  %7252 = vmatprep.subr.bf16.mxu1 %v10347_v43  ;;  %v3168_v5 = vmax.f32 %v3112_v16, %v3128_v63 }
 0x2ae   : > { %v3176_v12 = vmax.f32 %v3144_v9, %v3160_v55  ;;  %v8609_v38 = vpop.permute.xlu0 %8608 }
 0x2af   : > { %v8604_v15 = vpop.permute.xlu1 %8603  ;;  %v8611_v39 = vunpack.i.h.bf16 %v8609_v38  ;;  %v8610_v49 = vunpack.i.l.bf16 %v8609_v38 }
 0x2b0   : > { %v8606_v42 = vunpack.i.h.bf16 %v8604_v15  ;;  %v8605_v46 = vunpack.i.l.bf16 %v8604_v15  ;;  %7253 = vmatpush3.bf16.msra.mxu1 %v10353_v36  ;;  %v3184_v23 = vmax.f32 %v3168_v5, %v3176_v12 }
 0x2b1   : > { %7254 = vmatprep.subr.bf16.mxu1 %v10360_v44 }
 0x2b2   : > { %v3470_v17 = vsel %vm3467_vm0, %v3461_v19, %v8606_v42  ;;  %v3495_v7 = vsel %vm3467_vm0, %v3487_v37, %v8605_v46  ;;  %3193 = vst.msk [vmem:[#allocation4 + $0x81] sm:$0xff] %vm527_vm14, %v3184_v23 }
 0x2b3   : > { %v3503_v25 = vsel %vm3476_vm2, %v3495_v7, %v8610_v49  ;;  %v3479_v26 = vsel %vm3476_vm2, %v3470_v17, %v8611_v39  ;;  %v8614_v52 = vpop.permute.xlu1 %8613  ;;  %v3523_v17 = vpack.c.bf16 %v10550_v24, %v10550_v24  ;;  %v10730_v7 = vld [vmem:[%s11472_s4] sm:$0xff]  }
 0x2b4   : > { %v3516_v27 = vpack.c.bf16 %v3503_v25, %v3503_v25  ;;  %v3515_v1 = vpack.c.bf16 %v3479_v26, %v3479_v26  ;;  %7255 = vmatpush3.bf16.msra.mxu1 %v10365_v6  ;;  %v8615_v45 = vunpack.i.l.bf16 %v8614_v52  ;;  %v10736_v25 = vld [vmem:[%s11472_s4 + $0x48] sm:$0xff]  }
 0x2b5   : > { %7256 = vmatprep.subr.bf16.mxu1 %v10372_v21 }
 0x2b6   : > { %3878 = vmatprep.mubr.bf16.mxu0 %v3516_v27  ;;  %v3488_v5 = vsel %vm527_vm14, %v10473_v35, %v8615_v45  ;;  %v10718_v35 = vld [vmem:[%s11472_s4 + $0x88] sm:$0xff]  }
 0x2b7   : > { %3879 = vmatmul.mubr.bf16.vlgmr.msra.gmra.mrb[40].mxu0 %v3515_v1 }
 0x2b8   : > { %7762 = vmatpush3.bf16.msra.mxu0 %v10263_v32  ;;  %7765 = vmatprep.mubr.msk.bf16.mxu0 %vm9142_vm5, %v9134_v0  ;;  %v3250_v32 = vld [vmem:[#allocation4 + $0x90] sm:$0xff] }
 0x2b9   : > { %7763 = vmatprep.subr.bf16.mxu0 %v9134_v0  ;;  %7257 = vmatpush3.bf16.msra.mxu1 %v10377_v54  ;;  %v10659_v8 = vld [vmem:[#allocation4 + $0x81] sm:$0xff]  ;;  %v8672_v41 = vpack.i.bf16 %v10608_v14, %v3250_v32 }
 0x2ba   : > { %v3249_v48 = vld [vmem:[#allocation4 + $0x80] sm:$0xff]  ;;  %7258 = vmatprep.subr.bf16.mxu1 %v10384_v58  ;;  %v8667_v29 = vpack.i.bf16 %v10600_v11, %v10659_v8 }
 0x2bb   : > { %v8662_v30 = vpack.i.bf16 %v10550_v24, %v3249_v48  ;;  %v10666_v31 = vld [vmem:[#allocation4 + $0x82] sm:$0xff]  ;;  %v8682_v47 = vpack.i.bf16 %v3249_v48, %v3258_v51 }
 0x2bc   : > { %7764 = vmatpush3.bf16.msra.mxu0 %v10273_v10  ;;  %8668 = vrot.lane.b32.xlu0 %v8667_v29, %s9146_s26  ;;  %v8677_v10 = vpack.i.bf16 %v10598_v4, %v10666_v31 }
 0x2bd   : > { %8663 = vrot.lane.b32.xlu1 %v8662_v30, %s9147_s15  ;;  %7259 = vmatpush3.bf16.msra.mxu1 %v10390_v59 }
 0x2be   : > { %7269 = vmatprep.subr.bf16.mxu0 %v10283_v53  ;;  %7769 = vmatprep.subr.bf16.mxu1 %v9134_v0 }
 0x2bf   : > { %7766 = vmatmul.mubr.msk.bf16.vlgmr.msra.gmra.mrb[44].mxu0 %vm527_vm14, %v3520_v60 }
 0x2c0   : > { %7270 = vmatpush3.bf16.msra.mxu0 %v10288_v3  ;;  %8673 = vrot.lane.b32.xlu0 %v8672_v41, %s9147_s15  ;;  %v8616_v3 = vunpack.i.h.bf16 %v8614_v52  ;;  %v9026_v41 = vld [vmem:[%s11472_s4 + $0x18] sm:$0xff]  }
 0x2c1   : > { %8678 = vrot.lane.b32.xlu1 %v8677_v10, %s9145_s19  ;;  %7271 = vmatprep.subr.bf16.mxu0 %v10293_v56  ;;  %v9027_v10 = vld [vmem:[%s11472_s4 + $0x60] sm:$0xff]  }
 0x2c2   : > { %v3462_v12 = vsel %vm527_vm14, %v10445_v50, %v8616_v3  ;;  %v10707_v50 = vld [vmem:[%s11472_s4 + $0x80] sm:$0xff]  }
 0x2c4   : > { %7272 = vmatpush3.bf16.msra.mxu0 %v10301_v57 }
 0x2c5   : > { %8683 = vrot.lane.b32.xlu1 %v8682_v47, %s9146_s26  ;;  %7273 = vmatprep.subr.bf16.mxu0 %v10313_v22  ;;  %s474_s26 = scalar_lea.vmem [#allocation11], %s473_s24 }
 0x2c6   : > { %s6770_s19 = sshll.u32 %s474_s26, 4  ;;  %s11428_s19 = int_to_ptr.vmem [resolvable:$true] %s6770_s19 }
 0x2c7   : > { %s9063_s27 = scalar_lea.vmem %s11428_s19, 16  ;;  %p9070_p2 = scmp.lt.s32.totalorder %s11428_s19, %s9068_s28 }
 0x2c8   : > { %7274 = vmatpush3.bf16.msra.mxu0 %v10319_v2  ;;  %p9064_p6 = scmp.ne.s32.totalorder %s11428_s19, %s9063_s27  ;;  %p9071_p3 = scmp.lt.s32.totalorder %s9069_s25, %s9063_s27 }
 0x2c9   : > { %7275 = vmatprep.subr.bf16.mxu0 %v10331_v34 }
 0x2ca   : > { %p9065_p10 = pnand %p9064_p6, %p11501_p9  ;;  %p9072_p4 = por %p9071_p3, %p9070_p2 }
 0x2cc   : > { %7276 = vmatpush3.bf16.msra.mxu0 %v10337_v62  ;;  %p9066_p12 = pneg %p9065_p10 }
 0x2cd   : > { %7277 = vmatprep.subr.bf16.mxu0 %v10347_v43 }
 0x2ce   : > { %v8624_v13 = vpop.permute.xlu1 %8623  ;;  %p9073_p7 = pnand %p9072_p4, %p9066_p12 }
 0x2cf   : > { %v8619_v56 = vpop.permute.xlu0 %8618  ;;  %v8626_v61 = vunpack.i.h.bf16 %v8624_v13  ;;  %v8625_v9 = vunpack.i.l.bf16 %v8624_v13  ;;  %v10690_v63 = vpop.f32.mrb[32].mxu1 }
 0x2d0   : > { %v8621_v55 = vunpack.i.h.bf16 %v8619_v56  ;;  %v8620_v16 = vunpack.i.l.bf16 %v8619_v56  ;;  %7278 = vmatpush3.bf16.msra.mxu0 %v10353_v36  ;;  %v7743_v38 = vpop.f32.mrb[33].mxu1 }
 0x2d1   : > { %7279 = vmatprep.subr.bf16.mxu0 %v10360_v44  ;;  %v3757_v49 = vpop.f32.mrb[34].mxu1 }
 0x2d2   : > { %v3471_v15 = vsel %vm3467_vm0, %v3462_v12, %v8621_v55  ;;  %v3496_v39 = vsel %vm3467_vm0, %v3488_v5, %v8620_v16  ;;  %v7744_v42 = vpop.f32.mrb[35].mxu1  ;;  %v9029_v12 = vld [vmem:[%s11472_s4 + $0x68] sm:$0xff]   ;;  %v9032_v49 = vld [vmem:[%s11472_s4 + $0x30] sm:$0xff]  }
 0x2d3   : > { %v3504_v46 = vsel %vm3476_vm2, %v3496_v39, %v8625_v9  ;;  %v3480_v19 = vsel %vm3476_vm2, %v3471_v15, %v8626_v61  ;;  %v9028_v9 = vld [vmem:[%s11472_s4 + $0x20] sm:$0xff]   ;;  %v9030_v15 = vld [vmem:[%s11472_s4 + $0x28] sm:$0xff]   ;;  %v9031_v39 = vld [vmem:[%s11472_s4 + $0x70] sm:$0xff]  }
 0x2d4   : > { %v3519_v37 = vpack.c.bf16 %v3504_v46, %v3504_v46  ;;  %v3518_v23 = vpack.c.bf16 %v3480_v19, %v3480_v19  ;;  %7280 = vmatpush3.bf16.msra.mxu0 %v10365_v6  ;;  %v9033_v42 = vld [vmem:[%s11472_s4 + $0x78] sm:$0xff]   ;;  %v3529_v46 = vpack.c.bf16 %v10666_v31, %v10666_v31 }
 0x2d5   : > { %7281 = vmatprep.subr.bf16.mxu0 %v10372_v21  ;;  %v9034_v19 = vld [vmem:[%s11472_s4 + $0x38] sm:$0xff]  }
 0x2d6   : > { %3961 = vmatprep.mubr.bf16.mxu1 %v3519_v37 }
 0x2d7   : > { %3962 = vmatmul.mubr.bf16.vlgmr.msra.gmra.mrb[44].mxu1 %v3518_v23 }
 0x2d8   : > { %7770 = vmatpush3.bf16.msra.mxu1 %v10707_v50  ;;  %7773 = vmatprep.mubr.msk.bf16.mxu1 %vm9142_vm5, %v9134_v0 }
 0x2d9   : > { %7771 = vmatprep.subr.bf16.mxu1 %v9134_v0  ;;  %7282 = vmatpush3.bf16.msra.mxu0 %v10377_v54 }
 0x2da   : > { %7283 = vmatprep.subr.bf16.mxu0 %v10384_v58 }
 0x2dc   : > { %7772 = vmatpush3.bf16.msra.mxu1 %v10718_v35 }
 0x2dd   : > { %7284 = vmatpush3.bf16.msra.mxu0 %v10390_v59  ;;  %7294 = vmatprep.subr.bf16.mxu1 %v10283_v53  ;;  %v8629_v53 = vpop.permute.xlu0 %8628 }
 0x2de   : > { %7777 = vmatprep.subr.bf16.mxu0 %v9134_v0  ;;  %v8631_v24 = vunpack.i.h.bf16 %v8629_v53  ;;  %v8630_v26 = vunpack.i.l.bf16 %v8629_v53 }
 0x2df   : > { %7774 = vmatmul.mubr.msk.bf16.vlgmr.msra.gmra.mrb[48].mxu1 %vm527_vm14, %v3523_v17 }
 0x2e0   : > { %7295 = vmatpush3.bf16.msra.mxu1 %v10730_v7 }
 0x2e1   : > { %7296 = vmatprep.subr.bf16.mxu1 %v10736_v25 }
 0x2e4   : > { %7297 = vmatpush3.bf16.msra.mxu1 %v10301_v57 }
 0x2e5   : > { %7298 = vmatprep.subr.bf16.mxu1 %v10313_v22  ;;  %v3463_v22 = vsel %vm527_vm14, %v10475_v40, %v8631_v24  ;;  %v9025_v40 = vld [vmem:[%s11472_s4 + $0x58] sm:$0xff]  }
 0x2e8   : > { %7299 = vmatpush3.bf16.msra.mxu1 %v10319_v2  ;;  %v3489_v2 = vsel %vm527_vm14, %v10501_v28, %v8630_v26 }
 0x2e9   : > { %7300 = vmatprep.subr.bf16.mxu1 %v10331_v34 }
 0x2ec   : > { %7301 = vmatpush3.bf16.msra.mxu1 %v10337_v62 }
 0x2ed   : > { %7302 = vmatprep.subr.bf16.mxu1 %v10347_v43 }
 0x2ee   : > { %v8639_v27 = vpop.permute.xlu0 %8638 }
 0x2ef   : > { %v8641_v1 = vunpack.i.h.bf16 %v8639_v27  ;;  %v8640_v48 = vunpack.i.l.bf16 %v8639_v27  ;;  %v8634_v29 = vpop.permute.xlu1 %8633 }
 0x2f0   : > { %7303 = vmatpush3.bf16.msra.mxu1 %v10353_v36  ;;  %v8636_v57 = vunpack.i.h.bf16 %v8634_v29  ;;  %v8635_v30 = vunpack.i.l.bf16 %v8634_v29 }
 0x2f1   : > { %7304 = vmatprep.subr.bf16.mxu1 %v10360_v44  ;;  %v3526_v44 = vpack.c.bf16 %v10608_v14, %v10608_v14 }
 0x2f2   : > { %v3472_v34 = vsel %vm3467_vm0, %v3463_v22, %v8636_v57  ;;  %v3497_v62 = vsel %vm3467_vm0, %v3489_v2, %v8635_v30 }
 0x2f3   : > { %v3505_v43 = vsel %vm3476_vm2, %v3497_v62, %v8640_v48  ;;  %v3481_v32 = vsel %vm3476_vm2, %v3472_v34, %v8641_v1 }
 0x2f4   : > { %7305 = vmatpush3.bf16.msra.mxu1 %v10365_v6  ;;  %v3522_v36 = vpack.c.bf16 %v3505_v43, %v3505_v43  ;;  %v3521_v60 = vpack.c.bf16 %v3481_v32, %v3481_v32  ;;  %v10771_v6 = vld [vmem:[%s11472_s4 + $0x40] sm:$0xff]  }
 0x2f5   : > { %7306 = vmatprep.subr.bf16.mxu1 %v10372_v21  ;;  %v9022_v21 = vld [vmem:[%s11472_s4 + $0x8] sm:$0xff]  }
 0x2f6   : > { %4044 = vmatprep.mubr.bf16.mxu0 %v3522_v36 }
 0x2f7   : > { %4045 = vmatmul.mubr.bf16.vlgmr.msra.gmra.mrb[48].mxu0 %v3521_v60 }
 0x2f8   : > { %7307 = vmatpush3.bf16.msra.mxu1 %v10377_v54  ;;  %7778 = vmatpush3.bf16.msra.mxu0 %v10707_v50  ;;  %v9023_v54 = vld [vmem:[%s11472_s4 + $0x50] sm:$0xff]  }
 0x2f9   : > { %7781 = vmatprep.mubr.msk.bf16.mxu0 %vm9142_vm5, %v9134_v0  ;;  %7779 = vmatprep.subr.bf16.mxu0 %v9134_v0 }
 0x2fa   : > { %7308 = vmatprep.subr.bf16.mxu1 %v10384_v58  ;;  %v9024_v58 = vld [vmem:[%s11472_s4 + $0x10] sm:$0xff]  }
 0x2fc   : > { %7309 = vmatpush3.bf16.msra.mxu1 %v10390_v59  ;;  %7780 = vmatpush3.bf16.msra.mxu0 %v10718_v35  ;;  %v8644_v59 = vpop.permute.xlu1 %8643 }
 0x2fd   : > { %7785 = vmatprep.subr.bf16.mxu1 %v9134_v0  ;;  %7319 = vmatprep.subr.bf16.mxu0 %v10771_v6  ;;  %v8646_v28 = vunpack.i.h.bf16 %v8644_v59  ;;  %v8645_v14 = vunpack.i.l.bf16 %v8644_v59  ;;  %v3266_v59 = vld [vmem:[#allocation4 + $0x92] sm:$0xff] }
 0x2ff   : > { %7782 = vmatmul.mubr.msk.bf16.vlgmr.msra.gmra.mrb[52].mxu0 %vm527_vm14, %v3526_v44  ;;  %v3464_v56 = vsel %vm527_vm14, %v10503_v33, %v8646_v28  ;;  %v3490_v61 = vsel %vm527_vm14, %v10540_v18, %v8645_v14  ;;  %v3532_v14 = vpack.c.bf16 %v3266_v59, %v3266_v59 }
 0x300   : > { %7320 = vmatpush3.bf16.msra.mxu0 %v10730_v7 }
 0x301   : > { %7321 = vmatprep.subr.bf16.mxu0 %v10736_v25 }
 0x304   : > { %7322 = vmatpush3.bf16.msra.mxu0 %v9022_v21 }
 0x305   : > { %7323 = vmatprep.subr.bf16.mxu0 %v9023_v54 }
 0x308   : > { %7324 = vmatpush3.bf16.msra.mxu0 %v9024_v58 }
 0x309   : > { %7325 = vmatprep.subr.bf16.mxu0 %v9025_v40 }
 0x30c   : > { %7326 = vmatpush3.bf16.msra.mxu0 %v9026_v41 }
 0x30d   : > { %7327 = vmatprep.subr.bf16.mxu0 %v9027_v10 }
 0x30e   : > { %v8654_v51 = vpop.permute.xlu1 %8653 }
 0x30f   : > { %v8649_v47 = vpop.permute.xlu0 %8648  ;;  %v8656_v52 = vunpack.i.h.bf16 %v8654_v51  ;;  %v8655_v3 = vunpack.i.l.bf16 %v8654_v51 }
 0x310   : > { %v8651_v45 = vunpack.i.h.bf16 %v8649_v47  ;;  %v8650_v13 = vunpack.i.l.bf16 %v8649_v47  ;;  %7328 = vmatpush3.bf16.msra.mxu0 %v9028_v9  ;;  %v10875_v47 = vld [vmem:[%s11473_s5] ss:$0 sm:$0xff] }
 0x311   : > { %7329 = vmatprep.subr.bf16.mxu0 %v9029_v12 }
 0x312   : > { %v3473_v55 = vsel %vm3467_vm0, %v3464_v56, %v8651_v45  ;;  %v3498_v16 = vsel %vm3467_vm0, %v3490_v61, %v8650_v13 }
 0x313   : > { %v3506_v5 = vsel %vm3476_vm2, %v3498_v16, %v8655_v3  ;;  %v3482_v33 = vsel %vm3476_vm2, %v3473_v55, %v8656_v52  ;;  %v8659_v37 = vpop.permute.xlu0 %8658 }
 0x314   : > { %v3525_v38 = vpack.c.bf16 %v3506_v5, %v3506_v5  ;;  %v3524_v18 = vpack.c.bf16 %v3482_v33, %v3482_v33  ;;  %7330 = vmatpush3.bf16.msra.mxu0 %v9030_v15  ;;  %v8661_v31 = vunpack.i.h.bf16 %v8659_v37  ;;  %v8660_v23 = vunpack.i.l.bf16 %v8659_v37  ;;  %v10899_v5 = vld [vmem:[%s11475_s7 + $0x48] sm:$0xff]   ;;  %v10925_v37 = vld [vmem:[%s11475_s7 + $0x58] sm:$0xff]  }
 0x315   : > { %7331 = vmatprep.subr.bf16.mxu0 %v9031_v39  ;;  %v10906_v33 = vld [vmem:[%s11475_s7 + $0x8] sm:$0xff]  }
 0x316   : > { %4127 = vmatprep.mubr.bf16.mxu1 %v3525_v38 }
 0x317   : > { %4128 = vmatmul.mubr.bf16.vlgmr.msra.gmra.mrb[52].mxu1 %v3524_v18 }
 0x318   : > { %7786 = vmatpush3.bf16.msra.mxu1 %v10707_v50  ;;  %7789 = vmatprep.mubr.msk.bf16.mxu1 %vm9142_vm5, %v9134_v0 }
 0x319   : > { %7787 = vmatprep.subr.bf16.mxu1 %v9134_v0  ;;  %7332 = vmatpush3.bf16.msra.mxu0 %v9032_v49 }
 0x31a   : > { %7333 = vmatprep.subr.bf16.mxu0 %v9033_v42 }
 0x31c   : > { %7788 = vmatpush3.bf16.msra.mxu1 %v10718_v35 }
 0x31d   : > { %7344 = vmatprep.subr.bf16.mxu1 %v10771_v6  ;;  %7334 = vmatpush3.bf16.msra.mxu0 %v9034_v19 }
 0x31e   : > { %7793 = vmatprep.subr.bf16.mxu0 %v9134_v0 }
 0x31f   : > { %7790 = vmatmul.mubr.msk.bf16.vlgmr.msra.gmra.mrb[56].mxu1 %vm527_vm14, %v3529_v46 }
 0x320   : > { %7345 = vmatpush3.bf16.msra.mxu1 %v10730_v7  ;;  %v3465_v7 = vsel %vm527_vm14, %v10542_v20, %v8661_v31 }
 0x321   : > { %7346 = vmatprep.subr.bf16.mxu1 %v10736_v25  ;;  %v3491_v25 = vsel %vm527_vm14, %v10598_v4, %v8660_v23  ;;  %v10931_v23 = vld [vmem:[%s11475_s7 + $0x18] sm:$0xff]  }
 0x324   : > { %7347 = vmatpush3.bf16.msra.mxu1 %v9022_v21 }
 0x325   : > { %7348 = vmatprep.subr.bf16.mxu1 %v9023_v54 }
 0x328   : > { %7349 = vmatpush3.bf16.msra.mxu1 %v9024_v58 }
 0x329   : > { %7350 = vmatprep.subr.bf16.mxu1 %v9025_v40 }
 0x32c   : > { %7351 = vmatpush3.bf16.msra.mxu1 %v9026_v41 }
 0x32d   : > { %7352 = vmatprep.subr.bf16.mxu1 %v9027_v10 }
 0x32e   : > { %v8669_v17 = vpop.permute.xlu0 %8668 }
 0x32f   : > { %v8664_v53 = vpop.permute.xlu1 %8663  ;;  %v8671_v24 = vunpack.i.h.bf16 %v8669_v17  ;;  %v8670_v26 = vunpack.i.l.bf16 %v8669_v17 }
 0x330   : > { %7353 = vmatpush3.bf16.msra.mxu1 %v9028_v9  ;;  %v8666_v27 = vunpack.i.h.bf16 %v8664_v53  ;;  %v8665_v1 = vunpack.i.l.bf16 %v8664_v53 }
 0x331   : > { %7354 = vmatprep.subr.bf16.mxu1 %v9029_v12  ;;  %v10894_v12 = vld [vmem:[%s11475_s7] sm:$0xff]  }
 0x332   : > { %v3474_v48 = vsel %vm3467_vm0, %v3465_v7, %v8666_v27  ;;  %v3499_v29 = vsel %vm3467_vm0, %v3491_v25, %v8665_v1  ;;  %v8674_v57 = vpop.permute.xlu0 %8673  ;;  %v10944_v7 = vld [vmem:[%s11475_s7 + $0x20] sm:$0xff]  }
 0x333   : > { %v8679_v30 = vpop.permute.xlu1 %8678  ;;  %v3507_v22 = vsel %vm3476_vm2, %v3499_v29, %v8670_v26  ;;  %v3483_v2 = vsel %vm3476_vm2, %v3474_v48, %v8671_v24  ;;  %v8676_v43 = vunpack.i.h.bf16 %v8674_v57  ;;  %v8675_v32 = vunpack.i.l.bf16 %v8674_v57  ;;  %v10939_v26 = vld [vmem:[%s11475_s7 + $0x60] sm:$0xff]   ;;  %v10952_v48 = vld [vmem:[%s11475_s7 + $0x68] sm:$0xff]  }
 0x334   : > { %7355 = vmatpush3.bf16.msra.mxu1 %v9030_v15  ;;  %v8681_v34 = vunpack.i.h.bf16 %v8679_v30  ;;  %v8680_v62 = vunpack.i.l.bf16 %v8679_v30  ;;  %v3528_v20 = vpack.c.bf16 %v3507_v22, %v3507_v22  ;;  %v3527_v36 = vpack.c.bf16 %v3483_v2, %v3483_v2  ;;  %v10913_v15 = vld [vmem:[%s11475_s7 + $0x50] sm:$0xff]   ;;  %v10957_v29 = vld [vmem:[%s11475_s7 + $0x28] sm:$0xff]  }
 0x335   : > { %7356 = vmatprep.subr.bf16.mxu1 %v9031_v39  ;;  %v10964_v22 = vld [vmem:[%s11475_s7 + $0x70] sm:$0xff]  }
 0x336   : > { %v3466_v4 = vsel %vm527_vm14, %v10600_v11, %v8681_v34  ;;  %v3492_v60 = vsel %vm527_vm14, %v10659_v8, %v8680_v62  ;;  %4210 = vmatprep.mubr.bf16.mxu0 %v3528_v20  ;;  %v10969_v2 = vld [vmem:[%s11475_s7 + $0x30] sm:$0xff]   ;;  %v10976_v20 = vld [vmem:[%s11475_s7 + $0x78] sm:$0xff]  }
 0x337   : > { %v8684_v44 = vpop.permute.xlu1 %8683  ;;  %4211 = vmatmul.mubr.bf16.vlgmr.msra.gmra.mrb[56].mxu0 %v3527_v36  ;;  %v3475_v54 = vsel %vm3467_vm0, %v3466_v4, %v8676_v43  ;;  %v3500_v58 = vsel %vm3467_vm0, %v3492_v60, %v8675_v32  ;;  %v10981_v4 = vld [vmem:[%s11475_s7 + $0x38] sm:$0xff]   ;;  %v4440_v60 = vld [vmem:[#allocation6 + $0x1] sm:$0xf] }
 0x338   : > { %7357 = vmatpush3.bf16.msra.mxu1 %v9032_v49  ;;  %v8686_v6 = vunpack.i.h.bf16 %v8684_v44  ;;  %v8685_v21 = vunpack.i.l.bf16 %v8684_v44  ;;  %7794 = vmatpush3.bf16.msra.mxu0 %v10707_v50 }
 0x339   : > { %7358 = vmatprep.subr.bf16.mxu1 %v9033_v42  ;;  %7795 = vmatprep.subr.bf16.mxu0 %v9134_v0  ;;  %v10918_v42 = vld [vmem:[%s11475_s7 + $0x10] sm:$0xff]  }
 0x33a   : > { %v3484_v40 = vsel %vm3476_vm2, %v3475_v54, %v8686_v6  ;;  %v3508_v11 = vsel %vm3476_vm2, %v3500_v58, %v8685_v21  ;;  %7797 = vmatprep.mubr.msk.bf16.mxu0 %vm9142_vm5, %v9134_v0 }
 0x33b   : > { %v3530_v8 = vpack.c.bf16 %v3484_v40, %v3484_v40  ;;  %v3531_v28 = vpack.c.bf16 %v3508_v11, %v3508_v11 }
 0x33c   : > { %7359 = vmatpush3.bf16.msra.mxu1 %v9034_v19  ;;  %7796 = vmatpush3.bf16.msra.mxu0 %v10718_v35  ;;  %v10881_v35 = vld [vmem:[%s11474_s6] ss:$0 sm:$0xff] }
 0x33d   : > { %4293 = vmatprep.mubr.bf16.mxu1 %v3531_v28 }
 0x33f   : > { %4294 = vmatmul.mubr.bf16.vlgmr.msra.gmra.mrb[60].mxu1 %v3530_v8  ;;  %7798 = vmatmul.mubr.msk.bf16.vlgmr.msra.gmra.mrb[60].mxu0 %vm527_vm14, %v3532_v14 }
 0x34b   : > { %v7185_v50 = vpop.f32.mrb[32].mxu0 }
 0x34c   : > { %v7186_v41 = vpop.f32.mrb[33].mxu0 }
 0x34d   : > { %v7187_v10 = vadd.f32 %v7186_v41, %v7185_v50  ;;  %v7188_v51 = vpop.f32.mrb[34].mxu0 }
 0x34e   : > { %v7189_v52 = vpop.f32.mrb[35].mxu0 }
 0x34f   : > { %v3755_v3 = vadd.f32 %v7187_v10, %v10690_v63  ;;  %v10889_v63 = vld [vmem:[%s11475_s7 + $0x40] sm:$0xff]  }
 0x350   : > { %7369 = vmatprep.subr.bf16.mxu0 %v10889_v63  ;;  %v10994_v52 = vld [vmem:[%s11475_s7 + $0xc0] sm:$0xff]  }
 0x351   : > { %v4348_v45 = vmul.f32 %v10875_v47, %v3755_v3  ;;  %7370 = vmatpush3.bf16.msra.mxu0 %v10894_v12  ;;  %v10999_v3 = vld [vmem:[%s11475_s7 + $0x80] sm:$0xff]   ;;  %7391 = vmatprep.subr.bf16.mxu1 %v10994_v52 }
 0x352   : > { %7371 = vmatprep.subr.bf16.mxu0 %v10899_v5  ;;  %7392 = vmatpush3.bf16.msra.mxu1 %v10999_v3 }
 0x353   : > { %v4363_v13 = vadd.f32 %v10881_v35, %v4348_v45  ;;  %v3837_v56 = vpop.f32.mrb[36].mxu0  ;;  %v11006_v45 = vld [vmem:[%s11475_s7 + $0xc8] sm:$0xff]  }
 0x354   : > { %v7751_v61 = vpop.f32.mrb[37].mxu0  ;;  %7393 = vmatprep.subr.bf16.mxu1 %v11006_v45 }
 0x355   : > { %v4371_v9 = vmax.f32 %v4363_v13, 0.0  ;;  %v3840_v55 = vpop.f32.mrb[38].mxu0  ;;  %7372 = vmatpush3.bf16.msra.mxu0 %v10906_v33  ;;  %v11011_v13 = vld [vmem:[%s11475_s7 + $0x88] sm:$0xff]   ;;  %v11018_v61 = vld [vmem:[%s11475_s7 + $0xd0] sm:$0xff]  }
 0x356   : > { %v7752_v16 = vpop.f32.mrb[39].mxu0  ;;  %7373 = vmatprep.subr.bf16.mxu0 %v10913_v15  ;;  %7394 = vmatpush3.bf16.msra.mxu1 %v11011_v13 }
 0x357   : > { %4379 = vst.msk [vmem:[#allocation5] sm:$0xff] %vm3467_vm0, %v4371_v9  ;;  %v11023_v9 = vld [vmem:[%s11475_s7 + $0x90] sm:$0xff]   ;;  %v11028_v16 = vld [vmem:[%s11475_s7 + $0xd8] sm:$0xff]   ;;  %7395 = vmatprep.subr.bf16.mxu1 %v11018_v61 }
 0x359   : > { %7374 = vmatpush3.bf16.msra.mxu0 %v10918_v42 }
 0x35a   : > { %7375 = vmatprep.subr.bf16.mxu0 %v10925_v37  ;;  %7396 = vmatpush3.bf16.msra.mxu1 %v11023_v9 }
 0x35b   : > { %7397 = vmatprep.subr.bf16.mxu1 %v11028_v16 }
 0x35d   : > { %7376 = vmatpush3.bf16.msra.mxu0 %v10931_v23 }
 0x35e   : > { %7377 = vmatprep.subr.bf16.mxu0 %v10939_v26  ;;  %v4387_v57 = vld [vmem:[#allocation5] ss:$2 sm:$0xf]  ;;  %v4395_v30 = vld [vmem:[#allocation5 + $0x1] ss:$2 sm:$0xf] }
 0x35f   : > { %v4418_v43 = vmax.f32 %v4387_v57, %v4395_v30  ;;  %v11057_v30 = vld [vmem:[%s11475_s7 + $0xe8] sm:$0xff]  }
 0x361   : > { %7378 = vmatpush3.bf16.msra.mxu0 %v10944_v7 }
 0x362   : > { %7379 = vmatprep.subr.bf16.mxu0 %v10952_v48 }
 0x365   : > { %7380 = vmatpush3.bf16.msra.mxu0 %v10957_v29 }
 0x366   : > { %7381 = vmatprep.subr.bf16.mxu0 %v10964_v22 }
 0x369   : > { %7382 = vmatpush3.bf16.msra.mxu0 %v10969_v2 }
 0x36a   : > { %v7210_v38 = vpop.f32.mrb[36].mxu1  ;;  %7383 = vmatprep.subr.bf16.mxu0 %v10976_v20 }
 0x36b   : > { %v7211_v18 = vpop.f32.mrb[37].mxu1 }
 0x36c   : > { %v7212_v39 = vadd.f32 %v7211_v18, %v7210_v38  ;;  %v7213_v49 = vpop.f32.mrb[38].mxu1 }
 0x36d   : > { %v7214_v46 = vpop.f32.mrb[39].mxu1  ;;  %7384 = vmatpush3.bf16.msra.mxu0 %v10981_v4 }
 0x36e   : > { %v3838_v19 = vadd.f32 %v7212_v39, %v3837_v56  ;;  %7801 = vmatprep.subr.bf16.mxu0 %v9134_v0  ;;  %v11035_v46 = vld [vmem:[%s11475_s7 + $0x98] sm:$0xff]  }
 0x36f   : > { %7398 = vmatpush3.bf16.msra.mxu1 %v11035_v46 }
 0x370   : > { %v4349_v31 = vmul.f32 %v10875_v47, %v3838_v19 }
 0x372   : > { %v4364_v17 = vadd.f32 %v10881_v35, %v4349_v31  ;;  %v3920_v53 = vpop.f32.mrb[40].mxu1 }
 0x373   : > { %v7759_v24 = vpop.f32.mrb[41].mxu1 }
 0x374   : > { %v4372_v27 = vmax.f32 %v4364_v17, 0.0  ;;  %v3923_v1 = vpop.f32.mrb[42].mxu1  ;;  %v11044_v24 = vld [vmem:[%s11475_s7 + $0xe0] sm:$0xff]  }
 0x375   : > { %v7760_v25 = vpop.f32.mrb[43].mxu1  ;;  %7399 = vmatprep.subr.bf16.mxu1 %v11044_v24 }
 0x376   : > { %4380 = vst.msk [vmem:[#allocation5 + $0x8] sm:$0xff] %vm3467_vm0, %v4372_v27  ;;  %v11049_v25 = vld [vmem:[%s11475_s7 + $0xa0] sm:$0xff]  }
 0x377   : > { %7400 = vmatpush3.bf16.msra.mxu1 %v11049_v25 }
 0x378   : > { %7401 = vmatprep.subr.bf16.mxu1 %v11057_v30 }
 0x37d   : > { %v4403_v34 = vld [vmem:[#allocation5 + $0x8] ss:$2 sm:$0xf]  ;;  %v4411_v62 = vld [vmem:[#allocation5 + $0x9] ss:$2 sm:$0xf] }
 0x37e   : > { %v4422_v32 = vmax.f32 %v4403_v34, %v4411_v62  ;;  %v11062_v34 = vld [vmem:[%s11475_s7 + $0xa8] sm:$0xff]   ;;  %v11067_v62 = vld [vmem:[%s11475_s7 + $0xf0] sm:$0xff]  }
 0x37f   : > { %7402 = vmatpush3.bf16.msra.mxu1 %v11062_v34 }
 0x380   : > { %v4426_v36 = vmax.f32 %v4418_v43, %v4422_v32  ;;  %v11074_v43 = vld [vmem:[%s11475_s7 + $0xb0] sm:$0xff]   ;;  %7403 = vmatprep.subr.bf16.mxu1 %v11067_v62 }
 0x382   : > { %4432 = vst.msk [vmem:[#allocation6 + $0x9] sm:$0xf] %vm4431_vm6, %v4426_v36 }
 0x383   : > { %7404 = vmatpush3.bf16.msra.mxu1 %v11074_v43 }
 0x389   : > { %v4448_v44 = vld [vmem:[#allocation6 + $0x8] sm:$0xf] }
 0x38a   : > { %v7235_v6 = vpop.f32.mrb[40].mxu0  ;;  %v8687_v21 = vpack.i.bf16 %v4440_v60, %v4448_v44 }
 0x38b   : > { %v7236_v54 = vpop.f32.mrb[41].mxu0 }
 0x38c   : > { %v7237_v58 = vadd.f32 %v7236_v54, %v7235_v6  ;;  %v7238_v59 = vpop.f32.mrb[42].mxu0  ;;  %8688 = vrot.lane.b32.xlu0 %v8687_v21, %s9147_s15  ;;  %v11081_v54 = vld [vmem:[%s11475_s7 + $0xf8] sm:$0xff]  }
 0x38d   : > { %v7239_v40 = vpop.f32.mrb[43].mxu0  ;;  %v11086_v59 = vld [vmem:[%s11475_s7 + $0xb8] sm:$0xff]   ;;  %7405 = vmatprep.subr.bf16.mxu1 %v11081_v54 }
 0x38e   : > { %v3921_v11 = vadd.f32 %v7237_v58, %v3920_v53  ;;  %7406 = vmatpush3.bf16.msra.mxu1 %v11086_v59  ;;  %v4456_v40 = vld [vmem:[#allocation6 + $0xa] sm:$0xf] }
 0x38f   : > { %7418 = vmatprep.subr.bf16.mxu1 %v10889_v63 }
 0x390   : > { %v4350_v8 = vmul.f32 %v10875_v47, %v3921_v11 }
 0x392   : > { %v4365_v28 = vadd.f32 %v10881_v35, %v4350_v8  ;;  %v4003_v14 = vpop.f32.mrb[44].mxu0  ;;  %v4441_v8 = vld [vmem:[#allocation6 + $0x9] sm:$0xf] }
 0x393   : > { %v7767_v50 = vpop.f32.mrb[45].mxu0 }
 0x394   : > { %v4373_v41 = vmax.f32 %v4365_v28, 0.0  ;;  %v4006_v10 = vpop.f32.mrb[46].mxu0 }
 0x395   : > { %v7768_v51 = vpop.f32.mrb[47].mxu0 }
 0x396   : > { %4381 = vst.msk [vmem:[#allocation5 + $0x10] sm:$0xff] %vm3467_vm0, %v4373_v41 }
 0x39d   : > { %v4389_v32 = vld [vmem:[#allocation5 + $0x10] ss:$2 sm:$0xf]  ;;  %v4397_v36 = vld [vmem:[#allocation5 + $0x11] ss:$2 sm:$0xf] }
 0x39e   : > { %v4419_v6 = vmax.f32 %v4389_v32, %v4397_v36 }
 0x3aa   : > { %v7260_v56 = vpop.f32.mrb[44].mxu1 }
 0x3ab   : > { %v7261_v55 = vpop.f32.mrb[45].mxu1 }
 0x3ac   : > { %v7262_v38 = vadd.f32 %v7261_v55, %v7260_v56  ;;  %v7263_v18 = vpop.f32.mrb[46].mxu1 }
 0x3ad   : > { %v7264_v39 = vpop.f32.mrb[47].mxu1 }
 0x3ae   : > { %v4004_v49 = vadd.f32 %v7262_v38, %v4003_v14 }
 0x3b0   : > { %v4351_v19 = vmul.f32 %v10875_v47, %v4004_v49 }
 0x3b2   : > { %v4366_v31 = vadd.f32 %v10881_v35, %v4351_v19  ;;  %v4086_v17 = vpop.f32.mrb[48].mxu1 }
 0x3b3   : > { %v7775_v53 = vpop.f32.mrb[49].mxu1 }
 0x3b4   : > { %v4374_v27 = vmax.f32 %v4366_v31, 0.0  ;;  %v4089_v1 = vpop.f32.mrb[50].mxu1 }
 0x3b5   : > { %v7776_v57 = vpop.f32.mrb[51].mxu1 }
 0x3b6   : > { %4382 = vst.msk [vmem:[#allocation5 + $0x18] sm:$0xff] %vm3467_vm0, %v4374_v27 }
 0x3bd   : > { %v4405_v60 = vld [vmem:[#allocation5 + $0x18] ss:$2 sm:$0xf]  ;;  %v4413_v44 = vld [vmem:[#allocation5 + $0x19] ss:$2 sm:$0xf] }
 0x3be   : > { %v4423_v21 = vmax.f32 %v4405_v60, %v4413_v44 }
 0x3c0   : > { %v4427_v58 = vmax.f32 %v4419_v6, %v4423_v21 }
 0x3c2   : > { %4433 = vst.msk [vmem:[#allocation6 + $0x11] sm:$0xf] %vm4431_vm6, %v4427_v58 }
 0x3c9   : > { %v4465_v11 = vld [vmem:[#allocation6 + $0x11] sm:$0xf] }
 0x3ca   : > { %v4449_v28 = vld [vmem:[#allocation6 + $0x10] sm:$0xf]  ;;  %v8692_v14 = vpack.i.bf16 %v4456_v40, %v4465_v11  ;;  %v7285_v41 = vpop.f32.mrb[48].mxu0 }
 0x3cb   : > { %v8697_v50 = vpack.i.bf16 %v4441_v8, %v4449_v28  ;;  %v7286_v10 = vpop.f32.mrb[49].mxu0 }
 0x3cc   : > { %8693 = vrot.lane.b32.xlu1 %v8692_v14, %s9147_s15  ;;  %v7287_v51 = vadd.f32 %v7286_v10, %v7285_v41  ;;  %v7288_v56 = vpop.f32.mrb[50].mxu0 }
 0x3cd   : > { %8698 = vrot.lane.b32.xlu0 %v8697_v50, %s9147_s15  ;;  %v7289_v55 = vpop.f32.mrb[51].mxu0  ;;  %v4436_v56 = vld [vmem:[#allocation6] sm:$0xf] }
 0x3ce   : > { %v4087_v38 = vadd.f32 %v7287_v51, %v4086_v17 }
 0x3d0   : > { %v4352_v18 = vmul.f32 %v10875_v47, %v4087_v38  ;;  %v4444_v38 = vld [vmem:[#allocation6 + $0x2] sm:$0xf] }
 0x3d2   : > { %v4367_v39 = vadd.f32 %v10881_v35, %v4352_v18  ;;  %v4169_v49 = vpop.f32.mrb[52].mxu0 }
 0x3d3   : > { %v7783_v19 = vpop.f32.mrb[53].mxu0 }
 0x3d4   : > { %v4375_v31 = vmax.f32 %v4367_v39, 0.0  ;;  %v4172_v53 = vpop.f32.mrb[54].mxu0 }
 0x3d5   : > { %v7784_v27 = vpop.f32.mrb[55].mxu0 }
 0x3d6   : > { %4383 = vst.msk [vmem:[#allocation5 + $0x20] sm:$0xff] %vm3467_vm0, %v4375_v31 }
 0x3dd   : > { %v4391_v28 = vld [vmem:[#allocation5 + $0x20] ss:$2 sm:$0xf]  ;;  %v4399_v14 = vld [vmem:[#allocation5 + $0x21] ss:$2 sm:$0xf] }
 0x3de   : > { %v4420_v10 = vmax.f32 %v4391_v28, %v4399_v14 }
 0x3ea   : > { %v7310_v1 = vpop.f32.mrb[52].mxu1 }
 0x3eb   : > { %v7311_v57 = vpop.f32.mrb[53].mxu1 }
 0x3ec   : > { %v7312_v32 = vadd.f32 %v7311_v57, %v7310_v1  ;;  %v7313_v36 = vpop.f32.mrb[54].mxu1  ;;  %v11105_v1 = vld [vmem:[%s11475_s7 + $0x100] sm:$0xff]   ;;  %v11112_v57 = vld [vmem:[%s11475_s7 + $0x108] sm:$0xff]  }
 0x3ed   : > { %v7314_v60 = vpop.f32.mrb[55].mxu1 }
 0x3ee   : > { %v4170_v44 = vadd.f32 %v7312_v32, %v4169_v49  ;;  %v4457_v32 = vld [vmem:[#allocation6 + $0x12] sm:$0xf] }
 0x3ef   : > { %v4442_v60 = vld [vmem:[#allocation6 + $0x11] sm:$0xf] }
 0x3f0   : > { %v4353_v6 = vmul.f32 %v10875_v47, %v4170_v44 }
 0x3f2   : > { %v4368_v17 = vadd.f32 %v10881_v35, %v4353_v6  ;;  %v4252_v21 = vpop.f32.mrb[56].mxu1 }
 0x3f3   : > { %v7791_v58 = vpop.f32.mrb[57].mxu1 }
 0x3f4   : > { %v4376_v40 = vmax.f32 %v4368_v17, 0.0  ;;  %v4255_v11 = vpop.f32.mrb[58].mxu1  ;;  %v11121_v58 = vld [vmem:[%s11475_s7 + $0x110] sm:$0xff]  }
 0x3f5   : > { %v7792_v8 = vpop.f32.mrb[59].mxu1 }
 0x3f6   : > { %4384 = vst.msk [vmem:[#allocation5 + $0x28] sm:$0xff] %vm3467_vm0, %v4376_v40 }
 0x3fd   : > { %v4407_v50 = vld [vmem:[#allocation5 + $0x28] ss:$2 sm:$0xf]  ;;  %v4415_v41 = vld [vmem:[#allocation5 + $0x29] ss:$2 sm:$0xf] }
 0x3fe   : > { %v4424_v51 = vmax.f32 %v4407_v50, %v4415_v41  ;;  %v8689_v55 = vpop.permute.xlu0 %8688  ;;  %v11130_v50 = vld [vmem:[%s11475_s7 + $0x118] sm:$0xff]  }
 0x3ff   : > { %v8691_v18 = vunpack.i.h.bf16 %v8689_v55  ;;  %v8690_v39 = vunpack.i.l.bf16 %v8689_v55 }
 0x400   : > { %v4428_v49 = vmax.f32 %v4420_v10, %v4424_v51  ;;  %v4469_v10 = vld [vmem:[#allocation6 + $0x12] sm:$0xf] }
 0x401   : > { %v4537_v19 = vsel %vm3467_vm0, %v4436_v56, %v8691_v18  ;;  %v4541_v31 = vsel %vm3467_vm0, %v4444_v38, %v8690_v39  ;;  %v4557_v39 = vpack.c.bf16 %v4469_v10, %v4469_v10 }
 0x402   : > { %v4553_v53 = vpack.c.bf16 %v4537_v19, %v4537_v19  ;;  %v4554_v27 = vpack.c.bf16 %v4541_v31, %v4541_v31  ;;  %4434 = vst.msk [vmem:[#allocation6 + $0x19] sm:$0xf] %vm4431_vm6, %v4428_v49 }
 0x404   : > { %4896 = vmatprep.mubr.bf16.mxu0 %v4554_v27 }
 0x405   : > { %4897 = vmatmul.mubr.bf16.vlgmr.msra.gmra.mrb[64].mxu0 %v4553_v53 }
 0x406   : > { %7802 = vmatpush3.bf16.msra.mxu0 %v11105_v1  ;;  %7809 = vmatprep.mubr.msk.bf16.mxu0 %vm9142_vm5, %v9134_v0 }
 0x407   : > { %7803 = vmatprep.subr.bf16.mxu0 %v9134_v0 }
 0x409   : > { %v4466_v36 = vld [vmem:[#allocation6 + $0x19] sm:$0xf] }
 0x40a   : > { %v4450_v44 = vld [vmem:[#allocation6 + $0x18] sm:$0xf]  ;;  %7804 = vmatpush3.bf16.msra.mxu0 %v11112_v57  ;;  %v8702_v6 = vpack.i.bf16 %v4457_v32, %v4466_v36  ;;  %v7335_v40 = vpop.f32.mrb[56].mxu0 }
 0x40b   : > { %v8707_v17 = vpack.i.bf16 %v4442_v60, %v4450_v44  ;;  %7805 = vmatprep.subr.bf16.mxu0 %v9134_v0  ;;  %v7336_v11 = vpop.f32.mrb[57].mxu0  ;;  %v4443_v10 = vld [vmem:[#allocation6 + $0x19] sm:$0xf] }
 0x40c   : > { %8703 = vrot.lane.b32.xlu1 %v8702_v6, %s9147_s15  ;;  %v7337_v8 = vadd.f32 %v7336_v11, %v7335_v40  ;;  %v7338_v28 = vpop.f32.mrb[58].mxu0 }
 0x40d   : > { %8708 = vrot.lane.b32.xlu0 %v8707_v17, %s9147_s15  ;;  %v7339_v14 = vpop.f32.mrb[59].mxu0 }
 0x40e   : > { %7806 = vmatpush3.bf16.msra.mxu0 %v11121_v58  ;;  %v4253_v41 = vadd.f32 %v7337_v8, %v4252_v21  ;;  %v4458_v14 = vld [vmem:[#allocation6 + $0x1a] sm:$0xf] }
 0x40f   : > { %7807 = vmatprep.subr.bf16.mxu0 %v9134_v0 }
 0x410   : > { %v4354_v51 = vmul.f32 %v10875_v47, %v4253_v41 }
 0x412   : > { %v7360_v56 = vpop.f32.mrb[60].mxu1  ;;  %7808 = vmatpush3.bf16.msra.mxu0 %v11130_v50  ;;  %v4369_v55 = vadd.f32 %v10881_v35, %v4354_v51  ;;  %v4335_v18 = vpop.f32.mrb[60].mxu0 }
 0x413   : > { %v7361_v38 = vpop.f32.mrb[61].mxu1  ;;  %7440 = vmatprep.subr.bf16.mxu0 %v10994_v52  ;;  %v7799_v31 = vpop.f32.mrb[61].mxu0 }
 0x414   : > { %v7362_v49 = vadd.f32 %v7361_v38, %v7360_v56  ;;  %v7363_v19 = vpop.f32.mrb[62].mxu1  ;;  %v4377_v53 = vmax.f32 %v4369_v55, 0.0  ;;  %v4338_v27 = vpop.f32.mrb[62].mxu0 }
 0x415   : > { %v7364_v21 = vpop.f32.mrb[63].mxu1  ;;  %7810 = vmatmul.mubr.msk.bf16.vlgmr.msra.gmra.mrb[68].mxu0 %vm3467_vm0, %v4557_v39  ;;  %v7800_v36 = vpop.f32.mrb[63].mxu0  ;;  %v4452_v27 = vld [vmem:[#allocation6 + $0x9] sm:$0xf] }
 0x416   : > { %v4336_v32 = vadd.f32 %v7362_v49, %v4335_v18  ;;  %7441 = vmatpush3.bf16.msra.mxu0 %v10999_v3  ;;  %4385 = vst.msk [vmem:[#allocation5 + $0x30] sm:$0xff] %vm3467_vm0, %v4377_v53  ;;  %v4468_v18 = vld [vmem:[#allocation6 + $0x29] sm:$0xf] }
 0x417   : > { %7442 = vmatprep.subr.bf16.mxu0 %v11006_v45  ;;  %v4445_v36 = vld [vmem:[#allocation6 + $0xa] sm:$0xf] }
 0x418   : > { %v4355_v60 = vmul.f32 %v10875_v47, %v4336_v32  ;;  %v4461_v32 = vld [vmem:[#allocation6 + $0x10] sm:$0xf] }
 0x41a   : > { %v4370_v44 = vadd.f32 %v10881_v35, %v4355_v60  ;;  %7443 = vmatpush3.bf16.msra.mxu0 %v11011_v13 }
 0x41b   : > { %7444 = vmatprep.subr.bf16.mxu0 %v11018_v61 }
 0x41c   : > { %v4378_v6 = vmax.f32 %v4370_v44, 0.0 }
 0x41d   : > { %v4393_v17 = vld [vmem:[#allocation5 + $0x30] ss:$2 sm:$0xf]  ;;  %v4401_v40 = vld [vmem:[#allocation5 + $0x31] ss:$2 sm:$0xf] }
 0x41e   : > { %4386 = vst.msk [vmem:[#allocation5 + $0x38] sm:$0xff] %vm3467_vm0, %v4378_v6  ;;  %7445 = vmatpush3.bf16.msra.mxu0 %v11023_v9  ;;  %v4421_v35 = vmax.f32 %v4393_v17, %v4401_v40 }
 0x41f   : > { %7446 = vmatprep.subr.bf16.mxu0 %v11028_v16 }
 0x422   : > { %7447 = vmatpush3.bf16.msra.mxu0 %v11035_v46 }
 0x423   : > { %7448 = vmatprep.subr.bf16.mxu0 %v11044_v24 }
 0x425   : > { %v4409_v47 = vld [vmem:[#allocation5 + $0x38] ss:$2 sm:$0xf]  ;;  %v4417_v11 = vld [vmem:[#allocation5 + $0x39] ss:$2 sm:$0xf] }
 0x426   : > { %v4425_v8 = vmax.f32 %v4409_v47, %v4417_v11  ;;  %7449 = vmatpush3.bf16.msra.mxu0 %v11049_v25 }
 0x427   : > { %7450 = vmatprep.subr.bf16.mxu0 %v11057_v30 }
 0x428   : > { %v4429_v28 = vmax.f32 %v4421_v35, %v4425_v8  ;;  %v4437_v35 = vld [vmem:[#allocation6 + $0x8] sm:$0xf] }
 0x42a   : > { %4435 = vst.msk [vmem:[#allocation6 + $0x21] sm:$0xf] %vm4431_vm6, %v4429_v28  ;;  %7451 = vmatpush3.bf16.msra.mxu0 %v11062_v34 }
 0x42b   : > { %7452 = vmatprep.subr.bf16.mxu0 %v11067_v62 }
 0x42e   : > { %7453 = vmatpush3.bf16.msra.mxu0 %v11074_v43 }
 0x42f   : > { %7454 = vmatprep.subr.bf16.mxu0 %v11081_v54 }
 0x431   : > { %v4467_v41 = vld [vmem:[#allocation6 + $0x21] sm:$0xf] }
 0x432   : > { %v4451_v51 = vld [vmem:[#allocation6 + $0x20] sm:$0xf]  ;;  %v8712_v56 = vpack.i.bf16 %v4458_v14, %v4467_v41  ;;  %7455 = vmatpush3.bf16.msra.mxu0 %v11086_v59  ;;  %v4470_v14 = vld [vmem:[#allocation6 + $0x1a] sm:$0xf] }
 0x433   : > { %v8717_v55 = vpack.i.bf16 %v4443_v10, %v4451_v51  ;;  %v4459_v38 = vld [vmem:[#allocation6 + $0x22] sm:$0xf]  ;;  %7467 = vmatprep.subr.bf16.mxu0 %v10889_v63  ;;  %v4562_v41 = vpack.c.bf16 %v4470_v14, %v4470_v14 }
 0x434   : > { %8713 = vrot.lane.b32.xlu1 %v8712_v56, %s9147_s15  ;;  %v8722_v39 = vpack.i.bf16 %v4459_v38, %v4468_v18  ;;  %v4453_v18 = vld [vmem:[#allocation6 + $0x11] sm:$0xf] }
 0x435   : > { %8718 = vrot.lane.b32.xlu0 %v8717_v55, %s9147_s15 }
 0x438   : > { %8723 = vrot.lane.b32.xlu1 %v8722_v39, %s9147_s15  ;;  %v4462_v39 = vld [vmem:[#allocation6 + $0x18] sm:$0xf] }
 0x43e   : > { %v8694_v49 = vpop.permute.xlu1 %8693 }
 0x43f   : > { %v8699_v19 = vpop.permute.xlu0 %8698  ;;  %v8696_v31 = vunpack.i.h.bf16 %v8694_v49  ;;  %v8695_v53 = vunpack.i.l.bf16 %v8694_v49  ;;  %v4446_v49 = vld [vmem:[#allocation6 + $0x12] sm:$0xf] }
 0x440   : > { %v8700_v21 = vunpack.i.l.bf16 %v8699_v19  ;;  %v8701_v11 = vunpack.i.h.bf16 %v8699_v19 }
 0x441   : > { %v4545_v60 = vsel %vm3467_vm0, %v4452_v27, %v8696_v31  ;;  %v4549_v44 = vsel %vm3467_vm0, %v4461_v32, %v8695_v53 }
 0x442   : > { %v4542_v6 = vsel %vm3467_vm0, %v4445_v36, %v8700_v21  ;;  %v4555_v17 = vpack.c.bf16 %v4545_v60, %v4545_v60  ;;  %v4556_v40 = vpack.c.bf16 %v4549_v44, %v4549_v44  ;;  %v4538_v8 = vsel %vm3467_vm0, %v4437_v35, %v8701_v11  ;;  %v4438_v60 = vld [vmem:[#allocation6 + $0x10] sm:$0xf]  ;;  %v4454_v35 = vld [vmem:[#allocation6 + $0x19] sm:$0xf] }
 0x443   : > { %v4559_v47 = vpack.c.bf16 %v4542_v6, %v4542_v6  ;;  %v4558_v28 = vpack.c.bf16 %v4538_v8, %v4538_v8  ;;  %v4463_v8 = vld [vmem:[#allocation6 + $0x20] sm:$0xf] }
 0x444   : > { %4936 = vmatprep.mubr.bf16.mxu1 %v4556_v40 }
 0x445   : > { %4937 = vmatmul.mubr.bf16.vlgmr.msra.gmra.mrb[64].mxu1 %v4555_v17 }
 0x446   : > { %7419 = vmatpush3.bf16.msra.mxu1 %v10894_v12  ;;  %5019 = vmatprep.mubr.bf16.mxu1 %v4559_v47 }
 0x447   : > { %7420 = vmatprep.subr.bf16.mxu1 %v10899_v5 }
 0x44a   : > { %7421 = vmatpush3.bf16.msra.mxu1 %v10906_v33 }
 0x44b   : > { %7422 = vmatprep.subr.bf16.mxu1 %v10913_v15 }
 0x44e   : > { %7423 = vmatpush3.bf16.msra.mxu1 %v10918_v42 }
 0x44f   : > { %7424 = vmatprep.subr.bf16.mxu1 %v10925_v37 }
 0x452   : > { %7425 = vmatpush3.bf16.msra.mxu1 %v10931_v23 }
 0x453   : > { %7426 = vmatprep.subr.bf16.mxu1 %v10939_v26 }
 0x456   : > { %7427 = vmatpush3.bf16.msra.mxu1 %v10944_v7 }
 0x457   : > { %7428 = vmatprep.subr.bf16.mxu1 %v10952_v48 }
 0x45a   : > { %7429 = vmatpush3.bf16.msra.mxu1 %v10957_v29 }
 0x45b   : > { %7430 = vmatprep.subr.bf16.mxu1 %v10964_v22 }
 0x45e   : > { %7431 = vmatpush3.bf16.msra.mxu1 %v10969_v2 }
 0x45f   : > { %7432 = vmatprep.subr.bf16.mxu1 %v10976_v20 }
 0x462   : > { %7433 = vmatpush3.bf16.msra.mxu1 %v10981_v4 }
 0x463   : > { %7813 = vmatprep.subr.bf16.mxu1 %v9134_v0 }
 0x465   : > { %5020 = vmatmul.mubr.bf16.vlgmr.msra.gmra.mrb[68].mxu1 %v4558_v28 }
 0x466   : > { %7814 = vmatpush3.bf16.msra.mxu1 %v11105_v1  ;;  %7821 = vmatprep.mubr.msk.bf16.mxu1 %vm9142_vm5, %v9134_v0 }
 0x467   : > { %7815 = vmatprep.subr.bf16.mxu1 %v9134_v0 }
 0x46a   : > { %7816 = vmatpush3.bf16.msra.mxu1 %v11112_v57 }
 0x46b   : > { %7817 = vmatprep.subr.bf16.mxu1 %v9134_v0 }
 0x46e   : > { %7818 = vmatpush3.bf16.msra.mxu1 %v11121_v58 }
 0x46f   : > { %7819 = vmatprep.subr.bf16.mxu1 %v9134_v0 }
 0x472   : > { %7820 = vmatpush3.bf16.msra.mxu1 %v11130_v50 }
 0x473   : > { %7489 = vmatprep.subr.bf16.mxu1 %v10994_v52 }
 0x475   : > { %7822 = vmatmul.mubr.msk.bf16.vlgmr.msra.gmra.mrb[72].mxu1 %vm3467_vm0, %v4562_v41  ;;  %v4447_v41 = vld [vmem:[#allocation6 + $0x1a] sm:$0xf] }
 0x476   : > { %7490 = vmatpush3.bf16.msra.mxu1 %v10999_v3 }
 0x477   : > { %7491 = vmatprep.subr.bf16.mxu1 %v11006_v45 }
 0x47a   : > { %7492 = vmatpush3.bf16.msra.mxu1 %v11011_v13 }
 0x47b   : > { %7493 = vmatprep.subr.bf16.mxu1 %v11018_v61 }
 0x47e   : > { %v8704_v10 = vpop.permute.xlu1 %8703  ;;  %7494 = vmatpush3.bf16.msra.mxu1 %v11023_v9 }
 0x47f   : > { %v8709_v51 = vpop.permute.xlu0 %8708  ;;  %v8706_v56 = vunpack.i.h.bf16 %v8704_v10  ;;  %v8705_v55 = vunpack.i.l.bf16 %v8704_v10  ;;  %7495 = vmatprep.subr.bf16.mxu1 %v11028_v16 }
 0x480   : > { %v8710_v38 = vunpack.i.l.bf16 %v8709_v51  ;;  %v8711_v36 = vunpack.i.h.bf16 %v8709_v51 }
 0x481   : > { %v4546_v19 = vsel %vm3467_vm0, %v4453_v18, %v8706_v56  ;;  %v4550_v31 = vsel %vm3467_vm0, %v4462_v39, %v8705_v55  ;;  %v4464_v39 = vld [vmem:[#allocation6 + $0x28] sm:$0xf] }
 0x482   : > { %v4543_v53 = vsel %vm3467_vm0, %v4446_v49, %v8710_v38  ;;  %v4560_v21 = vpack.c.bf16 %v4546_v19, %v4546_v19  ;;  %v4561_v27 = vpack.c.bf16 %v4550_v31, %v4550_v31  ;;  %7496 = vmatpush3.bf16.msra.mxu1 %v11035_v46  ;;  %v4539_v44 = vsel %vm3467_vm0, %v4438_v60, %v8711_v36  ;;  %v4471_v49 = vld [vmem:[#allocation6 + $0x22] sm:$0xf]  ;;  %v8810_v60 = vld [vmem:[#allocation8 + $0x88] ss:$16 sps:$4 sm:$0xff]  }
 0x483   : > { %7497 = vmatprep.subr.bf16.mxu1 %v11044_v24  ;;  %v4564_v32 = vpack.c.bf16 %v4543_v53, %v4543_v53  ;;  %v4563_v6 = vpack.c.bf16 %v4539_v44, %v4539_v44  ;;  %v4567_v31 = vpack.c.bf16 %v4471_v49, %v4471_v49  ;;  %v8812_v53 = vld [vmem:[#allocation8 + $0x8c] ss:$16 sps:$4 sm:$0xff]   ;;  %v8819_v44 = vld [vmem:[#allocation8 + $0xc0] ss:$16 sps:$4 sm:$0xff]   ;;  %v8851_v49 = vld [vmem:[#allocation8 + $0x164] ss:$16 sps:$4 sm:$0xff]  }
 0x484   : > { %5059 = vmatprep.mubr.bf16.mxu0 %v4561_v27 }
 0x485   : > { %5060 = vmatmul.mubr.bf16.vlgmr.msra.gmra.mrb[72].mxu0 %v4560_v21  ;;  %v8821_v21 = vld [vmem:[#allocation8 + $0xc4] ss:$16 sps:$4 sm:$0xff]  }
 0x486   : > { %7468 = vmatpush3.bf16.msra.mxu0 %v10894_v12  ;;  %5142 = vmatprep.mubr.bf16.mxu0 %v4564_v32 }
 0x487   : > { %7469 = vmatprep.subr.bf16.mxu0 %v10899_v5  ;;  %7498 = vmatpush3.bf16.msra.mxu1 %v11049_v25 }
 0x488   : > { %7499 = vmatprep.subr.bf16.mxu1 %v11057_v30 }
 0x48a   : > { %7470 = vmatpush3.bf16.msra.mxu0 %v10906_v33 }
 0x48b   : > { %7471 = vmatprep.subr.bf16.mxu0 %v10913_v15  ;;  %7500 = vmatpush3.bf16.msra.mxu1 %v11062_v34 }
 0x48c   : > { %7501 = vmatprep.subr.bf16.mxu1 %v11067_v62 }
 0x48e   : > { %7472 = vmatpush3.bf16.msra.mxu0 %v10918_v42 }
 0x48f   : > { %7473 = vmatprep.subr.bf16.mxu0 %v10925_v37  ;;  %7502 = vmatpush3.bf16.msra.mxu1 %v11074_v43 }
 0x490   : > { %7503 = vmatprep.subr.bf16.mxu1 %v11081_v54 }
 0x492   : > { %7474 = vmatpush3.bf16.msra.mxu0 %v10931_v23 }
 0x493   : > { %7475 = vmatprep.subr.bf16.mxu0 %v10939_v26  ;;  %7504 = vmatpush3.bf16.msra.mxu1 %v11086_v59 }
 0x494   : > { %7516 = vmatprep.subr.bf16.mxu1 %v10889_v63 }
 0x496   : > { %7476 = vmatpush3.bf16.msra.mxu0 %v10944_v7 }
 0x497   : > { %7477 = vmatprep.subr.bf16.mxu0 %v10952_v48 }
 0x49a   : > { %7478 = vmatpush3.bf16.msra.mxu0 %v10957_v29 }
 0x49b   : > { %7479 = vmatprep.subr.bf16.mxu0 %v10964_v22 }
 0x49e   : > { %7480 = vmatpush3.bf16.msra.mxu0 %v10969_v2 }
 0x49f   : > { %7481 = vmatprep.subr.bf16.mxu0 %v10976_v20 }
 0x4a2   : > { %7482 = vmatpush3.bf16.msra.mxu0 %v10981_v4 }
 0x4a3   : > { %7825 = vmatprep.subr.bf16.mxu0 %v9134_v0 }
 0x4a5   : > { %5143 = vmatmul.mubr.bf16.vlgmr.msra.gmra.mrb[76].mxu0 %v4563_v6 }
 0x4a6   : > { %v8714_v63 = vpop.permute.xlu1 %8713  ;;  %7826 = vmatpush3.bf16.msra.mxu0 %v11105_v1  ;;  %7833 = vmatprep.mubr.msk.bf16.mxu0 %vm9142_vm5, %v9134_v0 }
 0x4a7   : > { %v8719_v17 = vpop.permute.xlu0 %8718  ;;  %v8716_v40 = vunpack.i.h.bf16 %v8714_v63  ;;  %v8715_v47 = vunpack.i.l.bf16 %v8714_v63  ;;  %7827 = vmatprep.subr.bf16.mxu0 %v9134_v0  ;;  %v8818_v63 = vld [vmem:[#allocation8 + $0xac] ss:$16 sps:$4 sm:$0xff]  }
 0x4a8   : > { %v8720_v11 = vunpack.i.l.bf16 %v8719_v17 }
 0x4a9   : > { %v4547_v28 = vsel %vm3467_vm0, %v4454_v35, %v8716_v40  ;;  %v4551_v14 = vsel %vm3467_vm0, %v4463_v8, %v8715_v47  ;;  %v8816_v40 = vld [vmem:[#allocation8 + $0xa8] ss:$16 sps:$4 sm:$0xff]   ;;  %v8825_v47 = vld [vmem:[#allocation8 + $0xe0] ss:$16 sps:$4 sm:$0xff]   ;;  %v8833_v35 = vld [vmem:[#allocation8 + $0x104] ss:$16 sps:$4 sm:$0xff]  }
 0x4aa   : > { %v4565_v10 = vpack.c.bf16 %v4547_v28, %v4547_v28  ;;  %7828 = vmatpush3.bf16.msra.mxu0 %v11112_v57  ;;  %v4566_v51 = vpack.c.bf16 %v4551_v14, %v4551_v14  ;;  %v4544_v56 = vsel %vm3467_vm0, %v4447_v41, %v8720_v11  ;;  %v8724_v55 = vpop.permute.xlu1 %8723  ;;  %v8824_v11 = vld [vmem:[#allocation8 + $0xcc] ss:$16 sps:$4 sm:$0xff]   ;;  %v8822_v8 = vld [vmem:[#allocation8 + $0xc8] ss:$16 sps:$4 sm:$0xff]   ;;  %v8831_v28 = vld [vmem:[#allocation8 + $0x100] ss:$16 sps:$4 sm:$0xff]  }
 0x4ab   : > { %7829 = vmatprep.subr.bf16.mxu0 %v9134_v0  ;;  %v4569_v38 = vpack.c.bf16 %v4544_v56, %v4544_v56  ;;  %v8725_v18 = vunpack.i.l.bf16 %v8724_v55  ;;  %v8830_v14 = vld [vmem:[#allocation8 + $0xec] ss:$16 sps:$4 sm:$0xff]   ;;  %v8839_v41 = vld [vmem:[#allocation8 + $0x124] ss:$16 sps:$4 sm:$0xff]  }
 0x4ac   : > { %5182 = vmatprep.mubr.bf16.mxu1 %v4566_v51  ;;  %v8837_v51 = vld [vmem:[#allocation8 + $0x120] ss:$16 sps:$4 sm:$0xff]   ;;  %v8836_v56 = vld [vmem:[#allocation8 + $0x10c] ss:$16 sps:$4 sm:$0xff]  }
 0x4ad   : > { %5183 = vmatmul.mubr.bf16.vlgmr.msra.gmra.mrb[76].mxu1 %v4565_v10  ;;  %v4552_v19 = vsel %vm3467_vm0, %v4464_v39, %v8725_v18  ;;  %v8828_v10 = vld [vmem:[#allocation8 + $0xe8] ss:$16 sps:$4 sm:$0xff]   ;;  %v8843_v18 = vld [vmem:[#allocation8 + $0x140] ss:$16 sps:$4 sm:$0xff]   ;;  %v8842_v39 = vld [vmem:[#allocation8 + $0x12c] ss:$16 sps:$4 sm:$0xff]  }
 0x4ae   : > { %7517 = vmatpush3.bf16.msra.mxu1 %v10894_v12  ;;  %7830 = vmatpush3.bf16.msra.mxu0 %v11121_v58  ;;  %v4571_v12 = vpack.c.bf16 %v4552_v19, %v4552_v19  ;;  %v8840_v19 = vld [vmem:[#allocation8 + $0x128] ss:$16 sps:$4 sm:$0xff]  }
 0x4af   : > { %5265 = vmatprep.mubr.bf16.mxu1 %v4569_v38  ;;  %7518 = vmatprep.subr.bf16.mxu1 %v10899_v5  ;;  %v8721_v5 = vunpack.i.h.bf16 %v8719_v17  ;;  %v8827_v17 = vld [vmem:[#allocation8 + $0xe4] ss:$16 sps:$4 sm:$0xff]   ;;  %v8834_v38 = vld [vmem:[#allocation8 + $0x108] ss:$16 sps:$4 sm:$0xff]  }
 0x4b0   : > { %7831 = vmatprep.subr.bf16.mxu0 %v9134_v0 }
 0x4b2   : > { %7519 = vmatpush3.bf16.msra.mxu1 %v10906_v33  ;;  %7832 = vmatpush3.bf16.msra.mxu0 %v11130_v50  ;;  %v4439_v33 = vld [vmem:[#allocation6 + $0x18] sm:$0xf] }
 0x4b3   : > { %7520 = vmatprep.subr.bf16.mxu1 %v10913_v15  ;;  %7538 = vmatprep.subr.bf16.mxu0 %v10994_v52  ;;  %v4540_v15 = vsel %vm3467_vm0, %v4439_v33, %v8721_v5  ;;  %v8797_v52 = vld [vmem:[#allocation8 + $0x44] ss:$16 sps:$4 sm:$0xff]   ;;  %v8846_v33 = vld [vmem:[#allocation8 + $0x148] ss:$16 sps:$4 sm:$0xff]  }
 0x4b4   : > { %v8857_v5 = vld [vmem:[#allocation8 + $0x184] ss:$16 sps:$4 sm:$0xff]  }
 0x4b5   : > { %7834 = vmatmul.mubr.msk.bf16.vlgmr.msra.gmra.mrb[80].mxu0 %vm3467_vm0, %v4567_v31  ;;  %v8849_v31 = vld [vmem:[#allocation8 + $0x160] ss:$16 sps:$4 sm:$0xff]  }
 0x4b6   : > { %7521 = vmatpush3.bf16.msra.mxu1 %v10918_v42  ;;  %7539 = vmatpush3.bf16.msra.mxu0 %v10999_v3  ;;  %v4568_v42 = vpack.c.bf16 %v4540_v15, %v4540_v15  ;;  %v8855_v15 = vld [vmem:[#allocation8 + $0x180] ss:$16 sps:$4 sm:$0xff]  }
 0x4b7   : > { %5305 = vmatprep.mubr.bf16.mxu0 %v4571_v12  ;;  %7522 = vmatprep.subr.bf16.mxu1 %v10925_v37  ;;  %v8726_v37 = vunpack.i.h.bf16 %v8724_v55  ;;  %v8845_v55 = vld [vmem:[#allocation8 + $0x144] ss:$16 sps:$4 sm:$0xff]   ;;  %v8848_v12 = vld [vmem:[#allocation8 + $0x14c] ss:$16 sps:$4 sm:$0xff]  }
 0x4b8   : > { %7540 = vmatprep.subr.bf16.mxu0 %v11006_v45 }
 0x4ba   : > { %7523 = vmatpush3.bf16.msra.mxu1 %v10931_v23  ;;  %7541 = vmatpush3.bf16.msra.mxu0 %v11011_v13  ;;  %v4455_v23 = vld [vmem:[#allocation6 + $0x21] sm:$0xf] }
 0x4bb   : > { %7524 = vmatprep.subr.bf16.mxu1 %v10939_v26  ;;  %7542 = vmatprep.subr.bf16.mxu0 %v11018_v61  ;;  %v8785_v26 = vld [vmem:[#allocation8 + $0x4] ss:$16 sps:$4 sm:$0xff]  }
 0x4be   : > { %7525 = vmatpush3.bf16.msra.mxu1 %v10944_v7  ;;  %7543 = vmatpush3.bf16.msra.mxu0 %v11023_v9  ;;  %v4548_v7 = vsel %vm3467_vm0, %v4455_v23, %v8726_v37  ;;  %v8863_v37 = vld [vmem:[#allocation8 + $0x1a4] ss:$16 sps:$4 sm:$0xff]   ;;  %v8852_v23 = vld [vmem:[#allocation8 + $0x168] ss:$16 sps:$4 sm:$0xff]  }
 0x4bf   : > { %7526 = vmatprep.subr.bf16.mxu1 %v10952_v48  ;;  %7544 = vmatprep.subr.bf16.mxu0 %v11028_v16  ;;  %v8783_v48 = vld [vmem:[#allocation8] ss:$16 sps:$4 sm:$0xff]   ;;  %v8786_v16 = vld [vmem:[#allocation8 + $0x8] ss:$16 sps:$4 sm:$0xff]  }
 0x4c2   : > { %7527 = vmatpush3.bf16.msra.mxu1 %v10957_v29  ;;  %7545 = vmatpush3.bf16.msra.mxu0 %v11035_v46  ;;  %v4570_v29 = vpack.c.bf16 %v4548_v7, %v4548_v7  ;;  %v8795_v46 = vld [vmem:[#allocation8 + $0x40] ss:$16 sps:$4 sm:$0xff]   ;;  %v8860_v7 = vld [vmem:[#allocation8 + $0x18c] ss:$16 sps:$4 sm:$0xff]  }
 0x4c3   : > { %7528 = vmatprep.subr.bf16.mxu1 %v10964_v22  ;;  %7546 = vmatprep.subr.bf16.mxu0 %v11044_v24  ;;  %v8791_v22 = vld [vmem:[#allocation8 + $0x24] ss:$16 sps:$4 sm:$0xff]  }
 0x4c6   : > { %7529 = vmatpush3.bf16.msra.mxu1 %v10969_v2  ;;  %7547 = vmatpush3.bf16.msra.mxu0 %v11049_v25  ;;  %v4472_v2 = vld [vmem:[#allocation6 + $0x2a] sm:$0xf] }
 0x4c7   : > { %7530 = vmatprep.subr.bf16.mxu1 %v10976_v20  ;;  %7548 = vmatprep.subr.bf16.mxu0 %v11057_v30  ;;  %v8789_v20 = vld [vmem:[#allocation8 + $0x20] ss:$16 sps:$4 sm:$0xff]   ;;  %v4572_v13 = vpack.c.bf16 %v4472_v2, %v4472_v2  ;;  %v8794_v25 = vld [vmem:[#allocation8 + $0x2c] ss:$16 sps:$4 sm:$0xff]   ;;  %v8803_v30 = vld [vmem:[#allocation8 + $0x64] ss:$16 sps:$4 sm:$0xff]  }
 0x4c8   : > { %v8866_v2 = vld [vmem:[#allocation8 + $0x1ac] ss:$16 sps:$4 sm:$0xff]  }
 0x4ca   : > { %7531 = vmatpush3.bf16.msra.mxu1 %v10981_v4  ;;  %7549 = vmatpush3.bf16.msra.mxu0 %v11062_v34  ;;  %v8788_v4 = vld [vmem:[#allocation8 + $0xc] ss:$16 sps:$4 sm:$0xff]   ;;  %v8801_v34 = vld [vmem:[#allocation8 + $0x60] ss:$16 sps:$4 sm:$0xff]  }
 0x4cb   : > { %7837 = vmatprep.subr.bf16.mxu1 %v9134_v0  ;;  %7550 = vmatprep.subr.bf16.mxu0 %v11067_v62  ;;  %v8800_v62 = vld [vmem:[#allocation8 + $0x4c] ss:$16 sps:$4 sm:$0xff]  }
 0x4cd   : > { %5266 = vmatmul.mubr.bf16.vlgmr.msra.gmra.mrb[80].mxu1 %v4568_v42  ;;  %v8854_v42 = vld [vmem:[#allocation8 + $0x16c] ss:$16 sps:$4 sm:$0xff]  }
 0x4ce   : > { %7838 = vmatpush3.bf16.msra.mxu1 %v11105_v1  ;;  %7551 = vmatpush3.bf16.msra.mxu0 %v11074_v43  ;;  %v8809_v43 = vld [vmem:[#allocation8 + $0x84] ss:$16 sps:$4 sm:$0xff]   ;;  %v8806_v1 = vld [vmem:[#allocation8 + $0x6c] ss:$16 sps:$4 sm:$0xff]  }
 0x4cf   : > { %7839 = vmatprep.subr.bf16.mxu1 %v9134_v0  ;;  %7552 = vmatprep.subr.bf16.mxu0 %v11081_v54  ;;  %v8798_v54 = vld [vmem:[#allocation8 + $0x48] ss:$16 sps:$4 sm:$0xff]  }
 0x4d0   : > { %7845 = vmatprep.mubr.msk.bf16.mxu1 %vm9142_vm5, %v9134_v0  ;;  %vm5385_vm5 = vcmask 1041408  }
 0x4d2   : > { %7840 = vmatpush3.bf16.msra.mxu1 %v11112_v57  ;;  %7553 = vmatpush3.bf16.msra.mxu0 %v11086_v59  ;;  %v8807_v59 = vld [vmem:[#allocation8 + $0x80] ss:$16 sps:$4 sm:$0xff]   ;;  %v8815_v57 = vld [vmem:[#allocation8 + $0xa4] ss:$16 sps:$4 sm:$0xff]  }
 0x4d3   : > { %7841 = vmatprep.subr.bf16.mxu1 %v9134_v0  ;;  %6247 = vmatprep.subr.bf16.mxu0 %v8785_v26  ;;  %v8861_v26 = vld [vmem:[#allocation8 + $0x1a0] ss:$16 sps:$4 sm:$0xff]  }
 0x4d5   : > { %5306 = vmatmul.mubr.bf16.vlgmr.msra.gmra.mrb[84].mxu0 %v4570_v29  ;;  %v8858_v29 = vld [vmem:[#allocation8 + $0x188] ss:$16 sps:$4 sm:$0xff]  }
 0x4d6   : > { %7842 = vmatpush3.bf16.msra.mxu1 %v11121_v58  ;;  %6248 = vmatpush1.bf16.msra.mxu0 %v8783_v48  ;;  %v8804_v58 = vld [vmem:[#allocation8 + $0x68] ss:$16 sps:$4 sm:$0xff]   ;;  %v8869_v48 = vld [vmem:[#allocation8 + $0x1c4] ss:$16 sps:$4 sm:$0xff]  }
 0x4d7   : > { %7843 = vmatprep.subr.bf16.mxu1 %v9134_v0  ;;  %6249 = vmatprep.subr.bf16.mxu0 %v8791_v22  ;;  %v8792_v0 = vld [vmem:[#allocation8 + $0x28] ss:$16 sps:$4 sm:$0xff]   ;;  %v8867_v22 = vld [vmem:[#allocation8 + $0x1c0] ss:$16 sps:$4 sm:$0xff]  }
 0x4d8   : > { %v7385_v3 = vpop.f32.mrb[64].mxu0 }
 0x4d9   : > { %v7386_v45 = vpop.f32.mrb[65].mxu0 }
 0x4da   : > { %7844 = vmatpush3.bf16.msra.mxu1 %v11130_v50  ;;  %v11286_v61 = vadd.f32 %v7386_v45, %v7385_v3  ;;  %v7388_v9 = vpop.f32.mrb[66].mxu0  ;;  %6250 = vmatpush1.bf16.msra.mxu0 %v8789_v20  ;;  %v8813_v50 = vld [vmem:[#allocation8 + $0xa0] ss:$16 sps:$4 sm:$0xff]   ;;  %v8875_v20 = vld [vmem:[#allocation8 + $0x1e4] ss:$16 sps:$4 sm:$0xff]  }
 0x4db   : > { %v7389_v24 = vpop.f32.mrb[67].mxu0  ;;  %6329 = vmatprep.subr.bf16.mxu1 %v8788_v4  ;;  %6251 = vmatprep.subr.bf16.mxu0 %v8797_v52  ;;  %v8864_v4 = vld [vmem:[#allocation8 + $0x1a8] ss:$16 sps:$4 sm:$0xff]   ;;  %v8873_v52 = vld [vmem:[#allocation8 + $0x1e0] ss:$16 sps:$4 sm:$0xff]  }
 0x4dc   : > { %v8872_v3 = vld [vmem:[#allocation8 + $0x1cc] ss:$16 sps:$4 sm:$0xff]   ;;  %v8881_v45 = vld [vmem:[#allocation8 + $0x204] ss:$16 sps:$4 sm:$0xff]  }
 0x4dd   : > { %7846 = vmatmul.mubr.msk.bf16.vlgmr.msra.gmra.mrb[84].mxu1 %vm3467_vm0, %v4572_v13  ;;  %v8870_v13 = vld [vmem:[#allocation8 + $0x1c8] ss:$16 sps:$4 sm:$0xff]   ;;  %v8878_v9 = vld [vmem:[#allocation8 + $0x1ec] ss:$16 sps:$4 sm:$0xff]  }
 0x4de   : > { %6330 = vmatpush1.bf16.msra.mxu1 %v8786_v16  ;;  %6252 = vmatpush1.bf16.msra.mxu0 %v8795_v46  ;;  %v8876_v16 = vld [vmem:[#allocation8 + $0x1e8] ss:$16 sps:$4 sm:$0xff]   ;;  %v8884_v46 = vld [vmem:[#allocation8 + $0x20c] ss:$16 sps:$4 sm:$0xff]  }
 0x4df   : > { %6331 = vmatprep.subr.bf16.mxu1 %v8794_v25  ;;  %6253 = vmatprep.subr.bf16.mxu0 %v8803_v30 }
 0x4e2   : > { %6332 = vmatpush1.bf16.msra.mxu1 %v8792_v0  ;;  %6254 = vmatpush1.bf16.msra.mxu0 %v8801_v34 }
 0x4e3   : > { %6333 = vmatprep.subr.bf16.mxu1 %v8800_v62  ;;  %6255 = vmatprep.subr.bf16.mxu0 %v8809_v43  ;;  %v11295_v43 = vld [vmem:[%s11476_s8] ss:$0 sm:$0xff] }
 0x4e6   : > { %6334 = vmatpush1.bf16.msra.mxu1 %v8798_v54  ;;  %6256 = vmatpush1.bf16.msra.mxu0 %v8807_v59  ;;  %v11301_v59 = vld [vmem:[%s11477_s9] ss:$0 sm:$0xff] }
 0x4e7   : > { %6335 = vmatprep.subr.bf16.mxu1 %v8806_v1  ;;  %6257 = vmatprep.subr.bf16.mxu0 %v8815_v57 }
 0x4e8   : > { %v11289_v27 = vpop.f32.mrb[68].mxu0 }
 0x4e9   : > { %v7811_v32 = vpop.f32.mrb[69].mxu0 }
 0x4ea   : > { %v4981_v36 = vpop.f32.mrb[70].mxu0  ;;  %6336 = vmatpush1.bf16.msra.mxu1 %v8804_v58  ;;  %6258 = vmatpush1.bf16.msra.mxu0 %v8813_v50 }
 0x4eb   : > { %v7812_v6 = vpop.f32.mrb[71].mxu0  ;;  %6337 = vmatprep.subr.bf16.mxu1 %v8812_v53  ;;  %6259 = vmatprep.subr.bf16.mxu0 %v8821_v21 }
 0x4ee   : > { %6338 = vmatpush1.bf16.msra.mxu1 %v8810_v60  ;;  %6260 = vmatpush1.bf16.msra.mxu0 %v8819_v44 }
 0x4ef   : > { %6339 = vmatprep.subr.bf16.mxu1 %v8818_v63  ;;  %6261 = vmatprep.subr.bf16.mxu0 %v8827_v17 }
 0x4f2   : > { %6340 = vmatpush1.bf16.msra.mxu1 %v8816_v40  ;;  %6262 = vmatpush1.bf16.msra.mxu0 %v8825_v47 }
 0x4f3   : > { %6341 = vmatprep.subr.bf16.mxu1 %v8824_v11  ;;  %6263 = vmatprep.subr.bf16.mxu0 %v8833_v35 }
 0x4f6   : > { %6342 = vmatpush1.bf16.msra.mxu1 %v8822_v8  ;;  %6264 = vmatpush1.bf16.msra.mxu0 %v8831_v28 }
 0x4f7   : > { %6343 = vmatprep.subr.bf16.mxu1 %v8830_v14  ;;  %6265 = vmatprep.subr.bf16.mxu0 %v8839_v41 }
 0x4fa   : > { %6344 = vmatpush1.bf16.msra.mxu1 %v8828_v10  ;;  %6266 = vmatpush1.bf16.msra.mxu0 %v8837_v51 }
 0x4fb   : > { %6345 = vmatprep.subr.bf16.mxu1 %v8836_v56  ;;  %6267 = vmatprep.subr.bf16.mxu0 %v8845_v55 }
 0x4fe   : > { %6346 = vmatpush1.bf16.msra.mxu1 %v8834_v38  ;;  %6268 = vmatpush1.bf16.msra.mxu0 %v8843_v18 }
 0x4ff   : > { %6347 = vmatprep.subr.bf16.mxu1 %v8842_v39  ;;  %6269 = vmatprep.subr.bf16.mxu0 %v8851_v49 }
 0x502   : > { %6348 = vmatpush1.bf16.msra.mxu1 %v8840_v19  ;;  %6270 = vmatpush1.bf16.msra.mxu0 %v8849_v31 }
 0x503   : > { %6349 = vmatprep.subr.bf16.mxu1 %v8848_v12  ;;  %6271 = vmatprep.subr.bf16.mxu0 %v8857_v5 }
 0x506   : > { %6350 = vmatpush1.bf16.msra.mxu1 %v8846_v33  ;;  %6272 = vmatpush1.bf16.msra.mxu0 %v8855_v15 }
 0x507   : > { %6351 = vmatprep.subr.bf16.mxu1 %v8854_v42  ;;  %6273 = vmatprep.subr.bf16.mxu0 %v8863_v37 }
 0x50a   : > { %6352 = vmatpush1.bf16.msra.mxu1 %v8852_v23  ;;  %6274 = vmatpush1.bf16.msra.mxu0 %v8861_v26 }
 0x50b   : > { %6353 = vmatprep.subr.bf16.mxu1 %v8860_v7  ;;  %6275 = vmatprep.subr.bf16.mxu0 %v8869_v48 }
 0x50e   : > { %6354 = vmatpush1.bf16.msra.mxu1 %v8858_v29  ;;  %6276 = vmatpush1.bf16.msra.mxu0 %v8867_v22 }
 0x50f   : > { %6355 = vmatprep.subr.bf16.mxu1 %v8866_v2  ;;  %6277 = vmatprep.subr.bf16.mxu0 %v8875_v20 }
 0x512   : > { %6356 = vmatpush1.bf16.msra.mxu1 %v8864_v4  ;;  %6278 = vmatpush1.bf16.msra.mxu0 %v8873_v52 }
 0x513   : > { %6357 = vmatprep.subr.bf16.mxu1 %v8872_v3  ;;  %6288 = vmatprep.subr.bf16.mxu0 %v8881_v45 }
 0x516   : > { %6358 = vmatpush1.bf16.msra.mxu1 %v8870_v13 }
 0x517   : > { %6359 = vmatprep.subr.bf16.mxu1 %v8878_v9 }
 0x518   : > { %v7407_v24 = vpop.f32.mrb[64].mxu1 }
 0x519   : > { %v7408_v25 = vpop.f32.mrb[65].mxu1 }
 0x51a   : > { %v7409_v30 = vadd.f32 %v7408_v25, %v7407_v24  ;;  %v7410_v0 = vpop.f32.mrb[66].mxu1  ;;  %6360 = vmatpush1.bf16.msra.mxu1 %v8876_v16 }
 0x51b   : > { %v7411_v34 = vpop.f32.mrb[67].mxu1  ;;  %6370 = vmatprep.subr.bf16.mxu1 %v8884_v46 }
 0x51c   : > { %v4939_v62 = vadd.f32 %v7409_v30, %v11286_v61 }
 0x51e   : > { %v4979_v54 = vadd.f32 %v11289_v27, %v4939_v62 }
 0x520   : > { %v5360_v1 = vmul.f32 %v11295_v43, %v4979_v54 }
 0x522   : > { %v5371_v57 = vadd.f32 %v11301_v59, %v5360_v1 }
 0x524   : > { %v5375_v58 = vmax.f32 %v5371_v57, 0.0  ;;  %v8879_v57 = vld [vmem:[#allocation8 + $0x200] ss:$16 sps:$4 sm:$0xff]  }
 0x526   : > { %5379 = vst [vmem:[#allocation7] sm:$0xf] %v5375_v58  ;;  %v8882_v58 = vld [vmem:[#allocation8 + $0x208] ss:$16 sps:$4 sm:$0xff]  }
 0x52d   : > { %v5401_v8 = vld [vmem:[#allocation7 + $0x2] sm:$0x3]  ;;  %v5383_v28 = vld [vmem:[#allocation7] sm:$0x3] }
 0x52e   : > { %v5403_v10 = vsel %vm5385_vm5, %v5401_v8, -inf  ;;  %v5386_v51 = vsel %vm5385_vm5, %v5383_v28, -inf }
 0x52f   : > { %v5404_v55 = vrot.slane %v5403_v10, 4  ;;  %v5387_v38 = vrot.slane %v5386_v51, 4 }
 0x531   : > { %v5405_v18 = vmax.f32 %v5403_v10, %v5404_v55  ;;  %v5388_v39 = vmax.f32 %v5386_v51, %v5387_v38  ;;  %v8900_v10 = vld [vmem:[#allocation8 + $0x268] ss:$16 sps:$4 sm:$0xff]   ;;  %v8908_v55 = vld [vmem:[#allocation8 + $0x28c] ss:$16 sps:$4 sm:$0xff]  }
 0x533   : > { %v5406_v19 = vrot.slane %v5405_v18, 2  ;;  %v5389_v12 = vrot.slane %v5388_v39, 2 }
 0x535   : > { %v5407_v37 = vmax.f32 %v5405_v18, %v5406_v19  ;;  %v5390_v26 = vmax.f32 %v5388_v39, %v5389_v12  ;;  %v8906_v19 = vld [vmem:[#allocation8 + $0x288] ss:$16 sps:$4 sm:$0xff]   ;;  %v8914_v12 = vld [vmem:[#allocation8 + $0x2ac] ss:$16 sps:$4 sm:$0xff]  }
 0x537   : > { %v5408_v22 = vrot.slane %v5407_v37, 1  ;;  %v5391_v20 = vrot.slane %v5390_v26, 1 }
 0x538   : > { %v7434_v50 = vpop.f32.mrb[68].mxu1 }
 0x539   : > { %v7435_v61 = vpop.f32.mrb[69].mxu1  ;;  %v5409_v9 = vmax.f32 %v5407_v37, %v5408_v22  ;;  %v5392_v46 = vmax.f32 %v5390_v26, %v5391_v20  ;;  %v8920_v37 = vld [vmem:[#allocation8 + $0x2cc] ss:$16 sps:$4 sm:$0xff]   ;;  %v8918_v26 = vld [vmem:[#allocation8 + $0x2c8] ss:$16 sps:$4 sm:$0xff]  }
 0x53a   : > { %v7436_v53 = vadd.f32 %v7435_v61, %v7434_v50  ;;  %v7437_v21 = vpop.f32.mrb[70].mxu1  ;;  %v8887_v50 = vld [vmem:[#allocation8 + $0x224] ss:$16 sps:$4 sm:$0xff]   ;;  %v8890_v61 = vld [vmem:[#allocation8 + $0x22c] ss:$16 sps:$4 sm:$0xff]  }
 0x53b   : > { %v7438_v32 = vpop.f32.mrb[71].mxu1  ;;  %v8924_v22 = vld [vmem:[#allocation8 + $0x2e8] ss:$16 sps:$4 sm:$0xff]   ;;  %v8932_v20 = vld [vmem:[#allocation8 + $0x30c] ss:$16 sps:$4 sm:$0xff]  }
 0x53c   : > { %v8885_v32 = vld [vmem:[#allocation8 + $0x220] ss:$16 sps:$4 sm:$0xff]  }
 0x548   : > { %v5101_v36 = vpop.f32.mrb[72].mxu1 }
 0x549   : > { %v7823_v60 = vpop.f32.mrb[73].mxu1 }
 0x54a   : > { %v5104_v44 = vpop.f32.mrb[74].mxu1 }
 0x54b   : > { %v7824_v27 = vpop.f32.mrb[75].mxu1 }
 0x54c   : > { %v8893_v27 = vld [vmem:[#allocation8 + $0x244] ss:$16 sps:$4 sm:$0xff]  }
 0x558   : > { %v7456_v6 = vpop.f32.mrb[72].mxu0 }
 0x559   : > { %v7457_v63 = vpop.f32.mrb[73].mxu0 }
 0x55a   : > { %v7458_v17 = vadd.f32 %v7457_v63, %v7456_v6  ;;  %v7459_v40 = vpop.f32.mrb[74].mxu0  ;;  %v8896_v6 = vld [vmem:[#allocation8 + $0x24c] ss:$16 sps:$4 sm:$0xff]  }
 0x55b   : > { %v7460_v47 = vpop.f32.mrb[75].mxu0  ;;  %v8891_v40 = vld [vmem:[#allocation8 + $0x240] ss:$16 sps:$4 sm:$0xff]  }
 0x55c   : > { %v5062_v11 = vadd.f32 %v7458_v17, %v7436_v53  ;;  %v8894_v47 = vld [vmem:[#allocation8 + $0x248] ss:$16 sps:$4 sm:$0xff]  }
 0x55e   : > { %v5102_v35 = vadd.f32 %v5101_v36, %v5062_v11  ;;  %v8888_v36 = vld [vmem:[#allocation8 + $0x228] ss:$16 sps:$4 sm:$0xff]   ;;  %v8899_v11 = vld [vmem:[#allocation8 + $0x264] ss:$16 sps:$4 sm:$0xff]  }
 0x560   : > { %v5361_v14 = vmul.f32 %v11295_v43, %v5102_v35  ;;  %v8902_v35 = vld [vmem:[#allocation8 + $0x26c] ss:$16 sps:$4 sm:$0xff]  }
 0x562   : > { %v5372_v41 = vadd.f32 %v11301_v59, %v5361_v14 }
 0x564   : > { %v5376_v56 = vmax.f32 %v5372_v41, 0.0  ;;  %v8897_v41 = vld [vmem:[#allocation8 + $0x260] ss:$16 sps:$4 sm:$0xff]  }
 0x566   : > { %5380 = vst [vmem:[#allocation7 + $0x4] sm:$0xf] %v5376_v56  ;;  %v8905_v56 = vld [vmem:[#allocation8 + $0x284] ss:$16 sps:$4 sm:$0xff]  }
 0x56d   : > { %v5402_v49 = vld [vmem:[#allocation7 + $0x6] sm:$0x3]  ;;  %v5384_v31 = vld [vmem:[#allocation7 + $0x4] sm:$0x3] }
 0x56e   : > { %v5410_v5 = vsel %vm5385_vm5, %v5402_v49, -inf  ;;  %v5393_v33 = vsel %vm5385_vm5, %v5384_v31, -inf  ;;  %v8903_v49 = vld [vmem:[#allocation8 + $0x280] ss:$16 sps:$4 sm:$0xff]   ;;  %v8911_v31 = vld [vmem:[#allocation8 + $0x2a4] ss:$16 sps:$4 sm:$0xff]  }
 0x56f   : > { %v5411_v15 = vrot.slane %v5410_v5, 4  ;;  %v5394_v42 = vrot.slane %v5393_v33, 4 }
 0x571   : > { %v5412_v23 = vmax.f32 %v5410_v5, %v5411_v15  ;;  %v5395_v7 = vmax.f32 %v5393_v33, %v5394_v42  ;;  %v8909_v33 = vld [vmem:[#allocation8 + $0x2a0] ss:$16 sps:$4 sm:$0xff]   ;;  %v8912_v15 = vld [vmem:[#allocation8 + $0x2a8] ss:$16 sps:$4 sm:$0xff]   ;;  %v8917_v42 = vld [vmem:[#allocation8 + $0x2c4] ss:$16 sps:$4 sm:$0xff]  }
 0x573   : > { %v5413_v48 = vrot.slane %v5412_v23, 2  ;;  %v5396_v29 = vrot.slane %v5395_v7, 2 }
 0x575   : > { %v5414_v2 = vmax.f32 %v5412_v23, %v5413_v48  ;;  %v5397_v4 = vmax.f32 %v5395_v7, %v5396_v29  ;;  %v8915_v23 = vld [vmem:[#allocation8 + $0x2c0] ss:$16 sps:$4 sm:$0xff]   ;;  %v8923_v7 = vld [vmem:[#allocation8 + $0x2e4] ss:$16 sps:$4 sm:$0xff]   ;;  %v8926_v48 = vld [vmem:[#allocation8 + $0x2ec] ss:$16 sps:$4 sm:$0xff]  }
 0x576   : > { %v8921_v29 = vld [vmem:[#allocation8 + $0x2e0] ss:$16 sps:$4 sm:$0xff]  }
 0x577   : > { %v5415_v52 = vrot.slane %v5414_v2, 1  ;;  %v5398_v3 = vrot.slane %v5397_v4, 1 }
 0x578   : > { %v7483_v45 = vpop.f32.mrb[76].mxu0 }
 0x579   : > { %v7484_v13 = vpop.f32.mrb[77].mxu0  ;;  %v5416_v16 = vmax.f32 %v5414_v2, %v5415_v52  ;;  %v5399_v24 = vmax.f32 %v5397_v4, %v5398_v3  ;;  %v8929_v2 = vld [vmem:[#allocation8 + $0x304] ss:$16 sps:$4 sm:$0xff]   ;;  %v8927_v4 = vld [vmem:[#allocation8 + $0x300] ss:$16 sps:$4 sm:$0xff]  }
 0x57a   : > { %v7485_v25 = vadd.f32 %v7484_v13, %v7483_v45  ;;  %v7486_v30 = vpop.f32.mrb[78].mxu0  ;;  %v8930_v52 = vld [vmem:[#allocation8 + $0x308] ss:$16 sps:$4 sm:$0xff]   ;;  %v8935_v3 = vld [vmem:[#allocation8 + $0x324] ss:$16 sps:$4 sm:$0xff]  }
 0x57b   : > { %v7487_v0 = vpop.f32.mrb[79].mxu0  ;;  %v5417_v34 = vmax.f32 %v5409_v9, %v5416_v16  ;;  %v5400_v62 = vmax.f32 %v5392_v46, %v5399_v24  ;;  %v8938_v45 = vld [vmem:[#allocation8 + $0x32c] ss:$16 sps:$4 sm:$0xff]   ;;  %v8933_v16 = vld [vmem:[#allocation8 + $0x320] ss:$16 sps:$4 sm:$0xff]  }
 0x57c   : > { %v8936_v46 = vld [vmem:[#allocation8 + $0x328] ss:$16 sps:$4 sm:$0xff]   ;;  %v8941_v30 = vld [vmem:[#allocation8 + $0x344] ss:$16 sps:$4 sm:$0xff]   ;;  %v8944_v0 = vld [vmem:[#allocation8 + $0x34c] ss:$16 sps:$4 sm:$0xff]  }
 0x57d   : > { %v5454_v54 = vpack.c.bf16 %v5417_v34, %v5417_v34  ;;  %v5453_v1 = vpack.c.bf16 %v5400_v62, %v5400_v62  ;;  %v8939_v62 = vld [vmem:[#allocation8 + $0x340] ss:$16 sps:$4 sm:$0xff]  }
 0x57f   : > { %6279 = vmatprep.mubr.bf16.mxu0 %v5454_v54  ;;  %6361 = vmatprep.mubr.bf16.mxu1 %v5454_v54  ;;  %v8942_v54 = vld [vmem:[#allocation8 + $0x348] ss:$16 sps:$4 sm:$0xff]  }
 0x580   : > { %v7505_v53 = vpop.f32.mrb[76].mxu1  ;;  %6280 = vmatmul.mubr.bf16.vlgmr.msra.gmra.mrb[88].mxu0 %v5453_v1  ;;  %6362 = vmatmul.mubr.bf16.vlgmr.msra.gmra.mrb[88].mxu1 %v5453_v1  ;;  %v8947_v1 = vld [vmem:[#allocation8 + $0x364] ss:$16 sps:$4 sm:$0xff]  }
 0x581   : > { %v7506_v21 = vpop.f32.mrb[77].mxu1  ;;  %6289 = vmatpush1.bf16.msra.mxu0 %v8879_v57  ;;  %6371 = vmatpush1.bf16.msra.mxu1 %v8882_v58  ;;  %v8950_v57 = vld [vmem:[#allocation8 + $0x36c] ss:$16 sps:$4 sm:$0xff]  }
 0x582   : > { %v7507_v60 = vadd.f32 %v7506_v21, %v7505_v53  ;;  %v7508_v44 = vpop.f32.mrb[78].mxu1  ;;  %6290 = vmatprep.subr.bf16.mxu0 %v8887_v50  ;;  %6372 = vmatprep.subr.bf16.mxu1 %v8890_v61  ;;  %v8945_v61 = vld [vmem:[#allocation8 + $0x360] ss:$16 sps:$4 sm:$0xff]   ;;  %v8948_v53 = vld [vmem:[#allocation8 + $0x368] ss:$16 sps:$4 sm:$0xff]  }
 0x583   : > { %v7509_v63 = vpop.f32.mrb[79].mxu1 }
 0x584   : > { %v5185_v17 = vadd.f32 %v7507_v60, %v7485_v25  ;;  %v8956_v60 = vld [vmem:[#allocation8 + $0x38c] ss:$16 sps:$4 sm:$0xff]   ;;  %v8954_v63 = vld [vmem:[#allocation8 + $0x388] ss:$16 sps:$4 sm:$0xff]  }
 0x585   : > { %6291 = vmatpush1.bf16.msra.mxu0 %v8885_v32  ;;  %6373 = vmatpush1.bf16.msra.mxu1 %v8888_v36  ;;  %v8953_v36 = vld [vmem:[#allocation8 + $0x384] ss:$16 sps:$4 sm:$0xff]  }
 0x586   : > { %6292 = vmatprep.subr.bf16.mxu0 %v8893_v27  ;;  %6374 = vmatprep.subr.bf16.mxu1 %v8896_v6  ;;  %v8951_v6 = vld [vmem:[#allocation8 + $0x380] ss:$16 sps:$4 sm:$0xff]  }
 0x588   : > { %v5224_v8 = vpop.f32.mrb[80].mxu0 }
 0x589   : > { %v5225_v28 = vadd.f32 %v5224_v8, %v5185_v17  ;;  %v7835_v14 = vpop.f32.mrb[81].mxu0  ;;  %6293 = vmatpush1.bf16.msra.mxu0 %v8891_v40  ;;  %6375 = vmatpush1.bf16.msra.mxu1 %v8894_v47  ;;  %v8959_v17 = vld [vmem:[#allocation8 + $0x3a4] ss:$16 sps:$4 sm:$0xff]   ;;  %v8962_v40 = vld [vmem:[#allocation8 + $0x3ac] ss:$16 sps:$4 sm:$0xff]  }
 0x58a   : > { %v5227_v51 = vpop.f32.mrb[82].mxu0  ;;  %6294 = vmatprep.subr.bf16.mxu0 %v8899_v11  ;;  %6376 = vmatprep.subr.bf16.mxu1 %v8902_v35  ;;  %v8957_v11 = vld [vmem:[#allocation8 + $0x3a0] ss:$16 sps:$4 sm:$0xff]   ;;  %v8960_v35 = vld [vmem:[#allocation8 + $0x3a8] ss:$16 sps:$4 sm:$0xff]  }
 0x58b   : > { %v5362_v38 = vmul.f32 %v11295_v43, %v5225_v28  ;;  %v7836_v18 = vpop.f32.mrb[83].mxu0  ;;  %v8965_v14 = vld [vmem:[#allocation8 + $0x3c4] ss:$16 sps:$4 sm:$0xff]  }
 0x58d   : > { %v5373_v39 = vadd.f32 %v11301_v59, %v5362_v38  ;;  %6295 = vmatpush1.bf16.msra.mxu0 %v8897_v41  ;;  %6377 = vmatpush1.bf16.msra.mxu1 %v8900_v10  ;;  %v8968_v41 = vld [vmem:[#allocation8 + $0x3cc] ss:$16 sps:$4 sm:$0xff]  }
 0x58e   : > { %6296 = vmatprep.subr.bf16.mxu0 %v8905_v56  ;;  %6378 = vmatprep.subr.bf16.mxu1 %v8908_v55 }
 0x58f   : > { %v5377_v5 = vmax.f32 %v5373_v39, 0.0  ;;  %v8963_v39 = vld [vmem:[#allocation8 + $0x3c0] ss:$16 sps:$4 sm:$0xff]  }
 0x591   : > { %5381 = vst [vmem:[#allocation7 + $0x8] sm:$0xf] %v5377_v5  ;;  %6297 = vmatpush1.bf16.msra.mxu0 %v8903_v49  ;;  %6379 = vmatpush1.bf16.msra.mxu1 %v8906_v19  ;;  %v8966_v49 = vld [vmem:[#allocation8 + $0x3c8] ss:$16 sps:$4 sm:$0xff]   ;;  %v8974_v5 = vld [vmem:[#allocation8 + $0x3ec] ss:$16 sps:$4 sm:$0xff]  }
 0x592   : > { %6298 = vmatprep.subr.bf16.mxu0 %v8911_v31  ;;  %6380 = vmatprep.subr.bf16.mxu1 %v8914_v12  ;;  %v8971_v12 = vld [vmem:[#allocation8 + $0x3e4] ss:$16 sps:$4 sm:$0xff]  }
 0x595   : > { %6299 = vmatpush1.bf16.msra.mxu0 %v8909_v33  ;;  %6381 = vmatpush1.bf16.msra.mxu1 %v8912_v15 }
 0x596   : > { %6300 = vmatprep.subr.bf16.mxu0 %v8917_v42  ;;  %6382 = vmatprep.subr.bf16.mxu1 %v8920_v37  ;;  %v8975_v37 = vld [vmem:[%s11480_s12 + $0x40] sm:$0xff]  }
 0x598   : > { %v5436_v51 = vld [vmem:[#allocation7 + $0xa] sm:$0x3]  ;;  %v5419_v56 = vld [vmem:[#allocation7 + $0x8] sm:$0x3] }
 0x599   : > { %6301 = vmatpush1.bf16.msra.mxu0 %v8915_v23  ;;  %6383 = vmatpush1.bf16.msra.mxu1 %v8918_v26  ;;  %v5438_v19 = vsel %vm5385_vm5, %v5436_v51, -inf  ;;  %v5421_v31 = vsel %vm5385_vm5, %v5419_v56, -inf  ;;  %v8976_v23 = vld [vmem:[%s11480_s12 + $0xc0] sm:$0xff]  }
 0x59a   : > { %6302 = vmatprep.subr.bf16.mxu0 %v8923_v7  ;;  %6384 = vmatprep.subr.bf16.mxu1 %v8926_v48  ;;  %v5439_v15 = vrot.slane %v5438_v19, 4  ;;  %v5422_v42 = vrot.slane %v5421_v31, 4  ;;  %v8993_v51 = vld [vmem:[%s11480_s12 + $0x20] sm:$0xff]  }
 0x59b   : > { %v8994_v56 = vld [vmem:[%s11480_s12 + $0xa0] sm:$0xff]  }
 0x59c   : > { %v5440_v26 = vmax.f32 %v5438_v19, %v5439_v15  ;;  %v5423_v7 = vmax.f32 %v5421_v31, %v5422_v42  ;;  %v9000_v19 = vld [vmem:[%s11480_s12 + $0xf0] sm:$0xff]   ;;  %v9005_v15 = vld [vmem:[%s11480_s12 + $0x38] sm:$0xff]  }
 0x59d   : > { %6303 = vmatpush1.bf16.msra.mxu0 %v8921_v29  ;;  %6385 = vmatpush1.bf16.msra.mxu1 %v8924_v22  ;;  %v9001_v31 = vld [vmem:[%s11480_s12 + $0x30] sm:$0xff]   ;;  %v9006_v42 = vld [vmem:[%s11480_s12 + $0xb8] sm:$0xff]  }
 0x59e   : > { %6304 = vmatprep.subr.bf16.mxu0 %v8929_v2  ;;  %6386 = vmatprep.subr.bf16.mxu1 %v8932_v20  ;;  %v5441_v29 = vrot.slane %v5440_v26, 2  ;;  %v5424_v2 = vrot.slane %v5423_v7, 2 }
 0x5a0   : > { %v7532_v13 = vpop.f32.mrb[80].mxu1 }
 0x5a1   : > { %v7533_v9 = vpop.f32.mrb[81].mxu1  ;;  %6305 = vmatpush1.bf16.msra.mxu0 %v8927_v4  ;;  %6387 = vmatpush1.bf16.msra.mxu1 %v8930_v52 }
 0x5a2   : > { %v7534_v24 = vadd.f32 %v7533_v9, %v7532_v13  ;;  %v7535_v25 = vpop.f32.mrb[82].mxu1  ;;  %6306 = vmatprep.subr.bf16.mxu0 %v8935_v3  ;;  %6388 = vmatprep.subr.bf16.mxu1 %v8938_v45  ;;  %v5442_v45 = vmax.f32 %v5440_v26, %v5441_v29  ;;  %v5425_v9 = vmax.f32 %v5423_v7, %v5424_v2  ;;  %v5585_v26 = vld [vmem:[%s11479_s11] sm:$0xf] }
 0x5a3   : > { %v7536_v34 = vpop.f32.mrb[83].mxu1 }
 0x5a4   : > { %v5443_v25 = vrot.slane %v5442_v45, 1 }
 0x5a5   : > { %6307 = vmatpush1.bf16.msra.mxu0 %v8933_v16  ;;  %6389 = vmatpush1.bf16.msra.mxu1 %v8936_v46 }
 0x5a6   : > { %6308 = vmatprep.subr.bf16.mxu0 %v8941_v30  ;;  %6390 = vmatprep.subr.bf16.mxu1 %v8944_v0  ;;  %v5426_v0 = vrot.slane %v5425_v9, 1 }
 0x5a8   : > { %v7554_v58 = vpop.f32.mrb[84].mxu0 }
 0x5a9   : > { %v7555_v50 = vpop.f32.mrb[85].mxu0  ;;  %6309 = vmatpush1.bf16.msra.mxu0 %v8939_v62  ;;  %6391 = vmatpush1.bf16.msra.mxu1 %v8942_v54 }
 0x5aa   : > { %v7556_v21 = vadd.f32 %v7555_v50, %v7554_v58  ;;  %v7557_v32 = vpop.f32.mrb[86].mxu0  ;;  %6310 = vmatprep.subr.bf16.mxu0 %v8947_v1  ;;  %6392 = vmatprep.subr.bf16.mxu1 %v8950_v57  ;;  %v5444_v1 = vmax.f32 %v5442_v45, %v5443_v25  ;;  %v5427_v58 = vmax.f32 %v5425_v9, %v5426_v0 }
 0x5ab   : > { %v7558_v44 = vpop.f32.mrb[87].mxu0 }
 0x5ac   : > { %v5308_v27 = vadd.f32 %v7556_v21, %v7534_v24  ;;  %v8979_v44 = vld [vmem:[%s11480_s12 + $0x48] sm:$0xff]  }
 0x5ad   : > { %6311 = vmatpush1.bf16.msra.mxu0 %v8945_v61  ;;  %6393 = vmatpush1.bf16.msra.mxu1 %v8948_v53 }
 0x5ae   : > { %6312 = vmatprep.subr.bf16.mxu0 %v8953_v36  ;;  %6394 = vmatprep.subr.bf16.mxu1 %v8956_v60  ;;  %v8977_v36 = vld [vmem:[%s11480_s12] sm:$0xff]  }
 0x5af   : > { %v8978_v60 = vld [vmem:[%s11480_s12 + $0x80] sm:$0xff]  }
 0x5b0   : > { %v5347_v47 = vpop.f32.mrb[84].mxu1 }
 0x5b1   : > { %v5348_v8 = vadd.f32 %v5347_v47, %v5308_v27  ;;  %v7847_v28 = vpop.f32.mrb[85].mxu1  ;;  %6313 = vmatpush1.bf16.msra.mxu0 %v8951_v6  ;;  %6395 = vmatpush1.bf16.msra.mxu1 %v8954_v63  ;;  %v8980_v27 = vld [vmem:[%s11480_s12 + $0xc8] sm:$0xff]   ;;  %v8985_v47 = vld [vmem:[%s11480_s12 + $0x10] sm:$0xff]  }
 0x5b2   : > { %v5350_v10 = vpop.f32.mrb[86].mxu1  ;;  %6314 = vmatprep.subr.bf16.mxu0 %v8959_v17  ;;  %6396 = vmatprep.subr.bf16.mxu1 %v8962_v40  ;;  %v8981_v6 = vld [vmem:[%s11480_s12 + $0x8] sm:$0xff]   ;;  %v8983_v17 = vld [vmem:[%s11480_s12 + $0x50] sm:$0xff]   ;;  %v8989_v28 = vld [vmem:[%s11480_s12 + $0x18] sm:$0xff]  }
 0x5b3   : > { %v5363_v55 = vmul.f32 %v11295_v43, %v5348_v8  ;;  %v7848_v38 = vpop.f32.mrb[87].mxu1  ;;  %v8969_v43 = vld [vmem:[#allocation8 + $0x3e0] ss:$16 sps:$4 sm:$0xff]   ;;  %v8982_v63 = vld [vmem:[%s11480_s12 + $0x88] sm:$0xff]   ;;  %v8988_v8 = vld [vmem:[%s11480_s12 + $0xd8] sm:$0xff]  }
 0x5b4   : > { %v8984_v40 = vld [vmem:[%s11480_s12 + $0xd0] sm:$0xff]   ;;  %v8992_v10 = vld [vmem:[%s11480_s12 + $0xe0] sm:$0xff]   ;;  %v8996_v38 = vld [vmem:[%s11480_s12 + $0xe8] sm:$0xff]  }
 0x5b5   : > { %v5374_v18 = vadd.f32 %v11301_v59, %v5363_v55  ;;  %6315 = vmatpush1.bf16.msra.mxu0 %v8957_v11  ;;  %6397 = vmatpush1.bf16.msra.mxu1 %v8960_v35  ;;  %v8972_v59 = vld [vmem:[#allocation8 + $0x3e8] ss:$16 sps:$4 sm:$0xff]   ;;  %v8986_v11 = vld [vmem:[%s11480_s12 + $0x90] sm:$0xff]  }
 0x5b6   : > { %6316 = vmatprep.subr.bf16.mxu0 %v8965_v14  ;;  %6398 = vmatprep.subr.bf16.mxu1 %v8968_v41  ;;  %v8987_v35 = vld [vmem:[%s11480_s12 + $0x58] sm:$0xff]   ;;  %v8991_v41 = vld [vmem:[%s11480_s12 + $0x60] sm:$0xff]   ;;  %v8995_v55 = vld [vmem:[%s11480_s12 + $0x68] sm:$0xff]  }
 0x5b7   : > { %v5378_v33 = vmax.f32 %v5374_v18, 0.0  ;;  %v8990_v14 = vld [vmem:[%s11480_s12 + $0x98] sm:$0xff]   ;;  %v8997_v18 = vld [vmem:[%s11480_s12 + $0x28] sm:$0xff]  }
 0x5b9   : > { %5382 = vst [vmem:[#allocation7 + $0xc] sm:$0xf] %v5378_v33  ;;  %6317 = vmatpush1.bf16.msra.mxu0 %v8963_v39  ;;  %6399 = vmatpush1.bf16.msra.mxu1 %v8966_v49  ;;  %v8998_v39 = vld [vmem:[%s11480_s12 + $0xa8] sm:$0xff]   ;;  %v8999_v49 = vld [vmem:[%s11480_s12 + $0x70] sm:$0xff]   ;;  %v9004_v33 = vld [vmem:[%s11480_s12 + $0xf8] sm:$0xff]  }
 0x5ba   : > { %6318 = vmatprep.subr.bf16.mxu0 %v8971_v12  ;;  %6400 = vmatprep.subr.bf16.mxu1 %v8974_v5  ;;  %v9002_v12 = vld [vmem:[%s11480_s12 + $0xb0] sm:$0xff]   ;;  %v9003_v5 = vld [vmem:[%s11480_s12 + $0x78] sm:$0xff]  }
 0x5bd   : > { %6319 = vmatpush1.bf16.msra.mxu0 %v8969_v43  ;;  %6401 = vmatpush1.bf16.msra.mxu1 %v8972_v59  ;;  %v6227_v43 = vlaneseq }
 0x5be   : > { %7565 = vmatprep.subr.bf16.mxu0 %v8975_v37  ;;  %7587 = vmatprep.subr.bf16.mxu1 %v8976_v23 }
 0x5bf   : > { %v6228_v59 = vshrl.u32 %v6227_v43, 7 }
 0x5c0   : > { %v5437_v48 = vld [vmem:[#allocation7 + $0xe] sm:$0x3]  ;;  %v5420_v22 = vld [vmem:[#allocation7 + $0xc] sm:$0x3] }
 0x5c1   : > { %v5445_v20 = vsel %vm5385_vm5, %v5437_v48, -inf  ;;  %v5428_v4 = vsel %vm5385_vm5, %v5420_v22, -inf  ;;  %v6229_v37 = vsub.s32 0, %v6228_v59  ;;  %v6237_v23 = vsub.s32 2, %v6228_v59 }
 0x5c2   : > { %v5446_v52 = vrot.slane %v5445_v20, 4  ;;  %v5429_v3 = vrot.slane %v5428_v4, 4  ;;  %v6233_v7 = vsub.s32 1, %v6228_v59  ;;  %v6241_v48 = vsub.s32 3, %v6228_v59 }
 0x5c3   : > { %v6230_v29 = vrot.slane %v5585_v26, %v6229_v37  ;;  %v6238_v22 = vrot.slane %v5585_v26, %v6237_v23 }
 0x5c4   : > { %v5447_v13 = vmax.f32 %v5445_v20, %v5446_v52  ;;  %v5430_v16 = vmax.f32 %v5428_v4, %v5429_v3  ;;  %v6234_v2 = vrot.slane %v5585_v26, %v6233_v7  ;;  %v6242_v20 = vrot.slane %v5585_v26, %v6241_v48 }
 0x5c6   : > { %v5448_v46 = vrot.slane %v5447_v13, 2  ;;  %v5431_v24 = vrot.slane %v5430_v16, 2 }
 0x5c8   : > { %v5449_v30 = vmax.f32 %v5447_v13, %v5448_v46  ;;  %v5432_v34 = vmax.f32 %v5430_v16, %v5431_v24 }
 0x5ca   : > { %v5450_v62 = vrot.slane %v5449_v30, 1  ;;  %v5433_v54 = vrot.slane %v5432_v34, 1 }
 0x5cc   : > { %v5451_v57 = vmax.f32 %v5449_v30, %v5450_v62  ;;  %v5434_v50 = vmax.f32 %v5432_v34, %v5433_v54 }
 0x5ce   : > { %v5452_v61 = vmax.f32 %v5444_v1, %v5451_v57  ;;  %v5435_v53 = vmax.f32 %v5427_v58, %v5434_v50 }
 0x5d0   : > { %v5456_v21 = vpack.c.bf16 %v5452_v61, %v5452_v61  ;;  %v5455_v32 = vpack.c.bf16 %v5435_v53, %v5435_v53 }
 0x5d2   : > { %6320 = vmatprep.mubr.bf16.mxu0 %v5456_v21  ;;  %6402 = vmatprep.mubr.bf16.mxu1 %v5456_v21 }
 0x5d3   : > { %6321 = vmatmul.mubr.bf16.vlgmr.msra.gmra.mrb[88].mxu0 %v5455_v32  ;;  %6403 = vmatmul.mubr.bf16.vlgmr.msra.gmra.mrb[88].mxu1 %v5455_v32  ;;  %v6483_v32 = vld [vmem:[%s11481_s13] sm:$0x1] }
 0x5d4   : > { %7566 = vmatpush3.bf16.msra.mxu0 %v8977_v36  ;;  %7588 = vmatpush3.bf16.msra.mxu1 %v8978_v60 }
 0x5d5   : > { %7567 = vmatprep.subr.bf16.mxu0 %v8979_v44  ;;  %7589 = vmatprep.subr.bf16.mxu1 %v8980_v27 }
 0x5d8   : > { %7568 = vmatpush3.bf16.msra.mxu0 %v8981_v6  ;;  %7590 = vmatpush3.bf16.msra.mxu1 %v8982_v63 }
 0x5d9   : > { %7569 = vmatprep.subr.bf16.mxu0 %v8983_v17  ;;  %7591 = vmatprep.subr.bf16.mxu1 %v8984_v40 }
 0x5dc   : > { %7570 = vmatpush3.bf16.msra.mxu0 %v8985_v47  ;;  %7592 = vmatpush3.bf16.msra.mxu1 %v8986_v11 }
 0x5dd   : > { %7571 = vmatprep.subr.bf16.mxu0 %v8987_v35  ;;  %7593 = vmatprep.subr.bf16.mxu1 %v8988_v8 }
 0x5e0   : > { %7572 = vmatpush3.bf16.msra.mxu0 %v8989_v28  ;;  %7594 = vmatpush3.bf16.msra.mxu1 %v8990_v14 }
 0x5e1   : > { %7573 = vmatprep.subr.bf16.mxu0 %v8991_v41  ;;  %7595 = vmatprep.subr.bf16.mxu1 %v8992_v10 }
 0x5e4   : > { %7574 = vmatpush3.bf16.msra.mxu0 %v8993_v51  ;;  %7596 = vmatpush3.bf16.msra.mxu1 %v8994_v56 }
 0x5e5   : > { %7575 = vmatprep.subr.bf16.mxu0 %v8995_v55  ;;  %7597 = vmatprep.subr.bf16.mxu1 %v8996_v38 }
 0x5e8   : > { %7576 = vmatpush3.bf16.msra.mxu0 %v8997_v18  ;;  %7598 = vmatpush3.bf16.msra.mxu1 %v8998_v39 }
 0x5e9   : > { %7577 = vmatprep.subr.bf16.mxu0 %v8999_v49  ;;  %7599 = vmatprep.subr.bf16.mxu1 %v9000_v19 }
 0x5ec   : > { %7578 = vmatpush3.bf16.msra.mxu0 %v9001_v31  ;;  %7600 = vmatpush3.bf16.msra.mxu1 %v9002_v12 }
 0x5ed   : > { %7579 = vmatprep.subr.bf16.mxu0 %v9003_v5  ;;  %7601 = vmatprep.subr.bf16.mxu1 %v9004_v33 }
 0x5f0   : > { %7580 = vmatpush3.bf16.msra.mxu0 %v9005_v15  ;;  %7602 = vmatpush3.bf16.msra.mxu1 %v9006_v42 }
 0x6a6   : > { %v6322_v4 = vpop.f32.mrb[88].mxu0  ;;  %v6404_v52 = vpop.f32.mrb[88].mxu1 }
 0x6a7   : > { %v7849_v3 = vadd.f32 %v6322_v4, %v6230_v29  ;;  %v7851_v45 = vadd.f32 %v6404_v52, %v6238_v22  ;;  %v6324_v13 = vpop.f32.mrb[89].mxu0  ;;  %v6406_v9 = vpop.f32.mrb[89].mxu1 }
 0x6a8   : > { %v7850_v16 = vadd.f32 %v6324_v13, %v6234_v2  ;;  %v7852_v46 = vadd.f32 %v6406_v9, %v6242_v20  ;;  %v6326_v24 = vpop.f32.mrb[90].mxu0  ;;  %v6408_v25 = vpop.f32.mrb[90].mxu1 }
 0x6a9   : > { %v6411_v30 = vmax.f32 %v7849_v3, 0.0  ;;  %v6413_v0 = vmax.f32 %v7851_v45, 0.0  ;;  %v6327_v34 = vpop.f32.mrb[91].mxu0  ;;  %v6409_v62 = vpop.f32.mrb[91].mxu1 }
 0x6aa   : > { %v6412_v54 = vmax.f32 %v7850_v16, 0.0  ;;  %v6414_v1 = vmax.f32 %v7852_v46, 0.0 }
 0x6ab   : > { %v6415_v50 = vpack.c.bf16 %v6411_v30, %v6411_v30  ;;  %v6417_v61 = vpack.c.bf16 %v6413_v0, %v6413_v0 }
 0x6ac   : > { %v6416_v57 = vpack.c.bf16 %v6412_v54, %v6412_v54  ;;  %v6418_v58 = vpack.c.bf16 %v6414_v1, %v6414_v1 }
 0x6ae   : > { %6708 = vmatprep.mubr.bf16.mxu0 %v6416_v57  ;;  %6748 = vmatprep.mubr.bf16.mxu1 %v6418_v58 }
 0x6af   : > { %6709 = vmatmul.mubr.bf16.vlgmr.msra.gmra.mrb[92].mxu0 %v6415_v50  ;;  %6749 = vmatmul.mubr.bf16.vlgmr.msra.gmra.mrb[92].mxu1 %v6417_v61 }
 0x782   : > { %v7581_v53 = vpop.f32.mrb[92].mxu0  ;;  %v7603_v21 = vpop.f32.mrb[92].mxu1 }
 0x783   : > { %v7582_v36 = vpop.f32.mrb[93].mxu0  ;;  %v7604_v60 = vpop.f32.mrb[93].mxu1 }
 0x784   : > { %v7583_v44 = vadd.f32 %v7582_v36, %v7581_v53  ;;  %v7605_v27 = vadd.f32 %v7604_v60, %v7603_v21  ;;  %v7584_v6 = vpop.f32.mrb[94].mxu0  ;;  %v7606_v63 = vpop.f32.mrb[94].mxu1 }
 0x785   : > { %v7585_v17 = vpop.f32.mrb[95].mxu0  ;;  %v7607_v40 = vpop.f32.mrb[95].mxu1 }
 0x786   : > { %v6711_v47 = vadd.f32 %v7583_v44, %v6483_v32 }
 0x788   : > { %v6751_v11 = vadd.f32 %v7605_v27, %v6711_v47 }
 0x78a   : > { %6756 = vst [vmem:[%s474_s26] sm:$0x1] %v6751_v11 }
 0x78b   : > { %9076 = shalt.err (!%p9073_p7)
}
 0x78c   : > { %s9077_s24 = scalar_lea.hbm %s11426_s18, 16  ;;  %s9081_s22 = scalar_lea.hbm %s11482_s14, 32 }
 0x78d   : > { %p9078_p8 = scmp.ne.s32.totalorder %s11426_s18, %s9077_s24  ;;  %p9082_p1 = scmp.lt.u32.totalorder %s11426_s18, %s11482_s14 }
 0x78e   : > { %p9083_p0 = scmp.lt.u32.totalorder %s9081_s22, %s9077_s24  ;;  %p9085_p6 = scmp.lt.u32.totalorder %s9077_s24, %s11426_s18 }
 0x78f   : > { %p9079_p11 = pnand %p9078_p8, %p11501_p9 }
 0x790   : > { %p9084_p5 = por %p9083_p0, %p9082_p1 }
 0x791   : > { %p9080_p13 = pneg %p9079_p11 }
 0x792   : > { %p9086_p10 = por %p9085_p6, %p9084_p5 }
 0x794   : > { %p9087_p12 = pnand %p9086_p10, %p9080_p13 }
 0x796   : > { %9090 = shalt.err (!%p9087_p12)
}
 0x797   : > { %7865 = dma.vmem_to_hbm [thread:$0]  (%p11501_p9), %s11428_s19, 16, %s11426_s18, %s6758_s20  }
 0x798 PF: > { %s11502_s27 = sld [smem:[#allocation17_spill]]  ;;  %p7877_p2 = scmp.ge.s32.totalorder %s9129_s16, 2 }
 0x799   : > { %s6782_s28 = sand.u32 1, %s9117_s29  }
 0x79a   : > { %s6783_s25 = scalar_lea.sflag [#allocation10], %s6782_s28 }
 0x79e   : > { %p11503_p3 = scmp.ne.s32.totalorder %s11502_s27, 0 }
 0x7a0   : > { %p7872_p4 = pnand %p7877_p2, %p11503_p3 }
 0x7a2   : > { %9112 = dma.done.wait (!%p7872_p4), %s6783_s25, 16  }
 0x7a3   : > { %9114 = vsyncadd (!%p7872_p4), %s6783_s25, 4294967280  ;;  %s11504_s16 = sld [smem:[#allocation15_spill]]  ;;  %s11505_s24 = sld [smem:[#allocation14_spill]] }
 0x7a4   : > { %s11506_s15 = sld [smem:[#allocation16_spill]]  ;;  %s11507_s29 = smov %s9121_s30 }
 0x7a9   : > { %p25_p7 = scmp.ge.s32.totalorder %s11504_s16, 4   ;;  %s11508_s30 = smov %s11505_s24 }
 0x7ab   :  { %27 = sbr.rel (!%p25_p7) target bundleno = 4 (0x4), region = 172 }
 0x7b2   :  { %6787 = vsyncpa [#allocation9], 1 }
 0x7b3   :  { %6789 = vsyncpa [#allocation9 + $0x1], 1 }
 0x7b4   :  { %6790 = vsyncpa [#allocation10], 1 }
 0x7b5   :  { %6792 = vsyncpa [#allocation10 + $0x1], 1 }

</bundles_post_ra>
